<compile_context>
chip_gen: v7x
topology: tpu7x:2x2x1
jax: 0.10.0
libtpu: 0.0.40
codegen_flags: <defaults>
</compile_context>

<pallas_src>
import math

import jax
import jax.numpy as jnp
from jax.experimental import pallas as pl
from jax.experimental.pallas import tpu as pltpu

# ---------------- scaled-down CLIP config ----------------
BATCH = 2
N_VOCAB = 512      # real: 49408
N_EMBD = 128       # real: 768
N_TOKEN = 16       # real: 77
N_HEAD = 4         # real: 12
N_LAYERS = 12      # real: 12
D_HEAD = N_EMBD // N_HEAD
LN_EPS = 1e-5
NEG_BIG = -1e30    # additive causal-mask bias (kept in f32; stand-in for -inf)


# ---------------- in-kernel helpers ----------------
def _layernorm(h, w, b):
    mu = jnp.mean(h, axis=-1, keepdims=True)
    var = jnp.mean(jnp.square(h - mu), axis=-1, keepdims=True)
    return (h - mu) * jax.lax.rsqrt(var + LN_EPS) * w + b


# ---------------- fused Pallas kernel (single invocation, no grid) -----------
def clip_fused_kernel(x0_ref, ln1w_ref, ln1b_ref,
                      wq_ref, wk_ref, wv_ref, bq_ref, bk_ref, bv_ref,
                      wo_ref, bo_ref, ln2w_ref, ln2b_ref,
                      w1_ref, b1_ref, w2_ref, b2_ref,
                      lnfw_ref, lnfb_ref, o_ref):
    x = x0_ref[...]                                       # (B, S, D) f32
    B, S, D = x.shape

    # causal additive bias, built once (hoisted out of the layer loop)
    q_idx = jax.lax.broadcasted_iota(jnp.int32, (S, S), 0)
    k_idx = jax.lax.broadcasted_iota(jnp.int32, (S, S), 1)
    bias = jnp.where(q_idx >= k_idx,
                     jnp.float32(0.0), jnp.float32(NEG_BIG))[None]   # (1,S,S)
    scale = jnp.float32(1.0 / math.sqrt(D_HEAD))

    def layer_step(l, x):
        # ---------- attention block ----------
        h = _layernorm(x, ln1w_ref[l], ln1b_ref[l])
        hb = h.reshape(B * S, D).astype(jnp.bfloat16)     # (B*S, D)

        # full-width q/k/v matmuls (K=128, N=128 on the MXU)
        q = (jnp.dot(hb, wq_ref[l], preferred_element_type=jnp.float32)
             + bq_ref[l]) * scale
        k = jnp.dot(hb, wk_ref[l], preferred_element_type=jnp.float32) + bk_ref[l]
        v = jnp.dot(hb, wv_ref[l], preferred_element_type=jnp.float32) + bv_ref[l]

        # ONE reshape exposes heads on a non-lane axis; no 32-lane-offset slices
        q4 = q.reshape(B, S, N_HEAD, D_HEAD).astype(jnp.bfloat16)
        k4 = k.reshape(B, S, N_HEAD, D_HEAD).astype(jnp.bfloat16)
        v4 = v.reshape(B, S, N_HEAD, D_HEAD).astype(jnp.bfloat16)

        heads = []
        for hh in range(N_HEAD):                          # static head loop
            s = jnp.einsum('bqd,bkd->bqk', q4[:, :, hh, :], k4[:, :, hh, :],
                           preferred_element_type=jnp.float32) + bias
            m = jnp.max(s, axis=-1, keepdims=True)
            p = jnp.exp(s - m)
            p = p / jnp.sum(p, axis=-1, keepdims=True)    # exact softmax
            heads.append(jnp.einsum('bqk,bkd->bqd', p.astype(jnp.bfloat16),
                                    v4[:, :, hh, :],
                                    preferred_element_type=jnp.float32))
        o = jnp.concatenate(heads, axis=-1).reshape(B * S, D)

        # ONE K=128 output projection (was 4 partial K=32 matmuls)
        att = jnp.dot(o.astype(jnp.bfloat16), wo_ref[l],
                      preferred_element_type=jnp.float32) + bo_ref[l]
        x = x + att.reshape(B, S, D)

        # ---------- MLP block ----------
        h = _layernorm(x, ln2w_ref[l], ln2b_ref[l])
        h = jnp.dot(h.reshape(B * S, D).astype(jnp.bfloat16), w1_ref[l],
                    preferred_element_type=jnp.float32) + b1_ref[l]
        h = h * jax.nn.sigmoid(1.702 * h)                 # quick-GELU (f32, v5e-safe)
        x = x + (jnp.dot(h.astype(jnp.bfloat16), w2_ref[l],
                         preferred_element_type=jnp.float32)
                 + b2_ref[l]).reshape(B, S, D)
        return x

    x = jax.lax.fori_loop(0, N_LAYERS, layer_step, x)

    # final LayerNorm, single HBM writeback
    o_ref[...] = _layernorm(x, lnfw_ref[...], lnfb_ref[...])


# ---------------- wrapper ----------------
PARAM_ORDER = ['ln1_w', 'ln1_b', 'wq', 'wk', 'wv', 'bq', 'bk', 'bv',
               'wo', 'bo', 'ln2_w', 'ln2_b', 'w1', 'b1', 'w2', 'b2',
               'ln_f_w', 'ln_f_b']


@jax.jit
def clip_forward(tokens, params):
    # TODO(synk): embedding-table gather is a data-dependent row lookup; kept in
    # plain-JAX glue (could move in-kernel via PrefetchScalarGridSpec + pl.Element).
    x0 = (jnp.take(params['token_embedding'], tokens, axis=0)
          + params['position_embedding']).astype(jnp.float32)        # (B, S, D)
    B, S, D = x0.shape

    args = [params[k] for k in PARAM_ORDER]

    # advisory cost estimate so XLA schedules the gather / transfers around us
    mm_flops = 2 * B * S * D * D * (3 + 1 + 4 + 4) * N_LAYERS
    attn_flops = 2 * 2 * B * N_HEAD * S * S * D_HEAD * N_LAYERS
    transcendentals = N_LAYERS * (B * N_HEAD * S * S + B * S * 4 * D)
    bytes_accessed = (sum(int(a.size) * a.dtype.itemsize for a in args)
                      + 2 * int(x0.size) * 4)
    cost = pl.CostEstimate(flops=mm_flops + attn_flops,
                           transcendentals=transcendentals,
                           bytes_accessed=bytes_accessed)

    vmem_spec = pl.BlockSpec(memory_space=pltpu.MemorySpace.VMEM)     # whole array, VMEM-resident

    return pl.pallas_call(
        clip_fused_kernel,
        out_shape=jax.ShapeDtypeStruct((B, S, D), jnp.float32),
        in_specs=[vmem_spec] * (1 + len(args)),
        out_specs=vmem_spec,
        cost_estimate=cost,
        compiler_params=pltpu.CompilerParams(vmem_limit_bytes=32 * 1024 * 1024),
    )(x0, *args)


# ---------------- deterministic parameter init (layer-stacked) ----------------
def init_params(key):
    keys = iter(jax.random.split(key, 20))

    def nrm(shape, scale=0.02):
        return scale * jax.random.normal(next(keys), shape, dtype=jnp.float32)

    L, D = N_LAYERS, N_EMBD
    return {
        'token_embedding': nrm((N_VOCAB, D)),
        'position_embedding': nrm((N_TOKEN, D)),
        'ln_f_w': jnp.ones((1, D), jnp.float32),
        'ln_f_b': jnp.zeros((1, D), jnp.float32),
        'ln1_w': jnp.ones((L, 1, D), jnp.float32),
        'ln1_b': jnp.zeros((L, 1, D), jnp.float32),
        'ln2_w': jnp.ones((L, 1, D), jnp.float32),
        'ln2_b': jnp.zeros((L, 1, D), jnp.float32),
        # weight matrices stored (in, out), stacked over layers, bf16 for the MXU
        'wq': nrm((L, D, D)).astype(jnp.bfloat16),
        'wk': nrm((L, D, D)).astype(jnp.bfloat16),
        'wv': nrm((L, D, D)).astype(jnp.bfloat16),
        'bq': nrm((L, 1, D)),
        'bk': nrm((L, 1, D)),
        'bv': nrm((L, 1, D)),
        'wo': nrm((L, D, D)).astype(jnp.bfloat16),
        'bo': nrm((L, 1, D)),
        'w1': nrm((L, D, 4 * D)).astype(jnp.bfloat16),
        'b1': nrm((L, 1, 4 * D)),
        'w2': nrm((L, 4 * D, D)).astype(jnp.bfloat16),
        'b2': nrm((L, 1, D)),
    }


# ---------------- pure-JAX reference (same bf16-weight numerics) ----------------
def clip_reference(tokens, params):
    def ln(h, w, b):
        mu = h.mean(-1, keepdims=True)
        var = ((h - mu) ** 2).mean(-1, keepdims=True)
        return (h - mu) / jnp.sqrt(var + LN_EPS) * w + b

    def bdot(a, w):  # bf16 MXU matmul, f32 accumulate (mirrors kernel numerics)
        return jnp.dot(a.astype(jnp.bfloat16), w,
                       preferred_element_type=jnp.float32)

    B, S = tokens.shape
    D, H, dh = N_EMBD, N_HEAD, D_HEAD
    x = jnp.take(params['token_embedding'], tokens, axis=0) + params['position_embedding']
    mask = jnp.tril(jnp.ones((S, S), bool))
    bias = jnp.where(mask, 0.0, NEG_BIG).astype(jnp.float32)
    scale = 1.0 / math.sqrt(dh)

    for l in range(N_LAYERS):
        res = x
        h = ln(x, params['ln1_w'][l], params['ln1_b'][l])
        h2 = h.reshape(B * S, D)
        q = (bdot(h2, params['wq'][l]) + params['bq'][l]) * scale
        k = bdot(h2, params['wk'][l]) + params['bk'][l]
        v = bdot(h2, params['wv'][l]) + params['bv'][l]

        def sh(t):
            return t.reshape(B, S, H, dh).transpose(0, 2, 1, 3).astype(jnp.bfloat16)

        qh, kh, vh = sh(q), sh(k), sh(v)
        s = jnp.einsum('bhqd,bhkd->bhqk', qh, kh,
                       preferred_element_type=jnp.float32) + bias
        p = jax.nn.softmax(s, axis=-1)
        o = jnp.einsum('bhqk,bhkd->bhqd', p.astype(jnp.bfloat16), vh,
                       preferred_element_type=jnp.float32)
        o = o.transpose(0, 2, 1, 3).reshape(B * S, D)
        x = res + (bdot(o, params['wo'][l]) + params['bo'][l]).reshape(B, S, D)

        res = x
        h = ln(x, params['ln2_w'][l], params['ln2_b'][l])
        h = bdot(h.reshape(B * S, D), params['w1'][l]) + params['b1'][l]   # (B*S, 4D)
        h = h * jax.nn.sigmoid(1.702 * h)
        x = res + (bdot(h, params['w2'][l]) + params['b2'][l]).reshape(B, S, D)
    return ln(x, params['ln_f_w'], params['ln_f_b'])


if __name__ == "__main__":
    key = jax.random.PRNGKey(0)
    pkey, tkey = jax.random.split(key)
    params = init_params(pkey)
    tokens = jax.random.randint(tkey, (BATCH, N_TOKEN), 0, N_VOCAB, dtype=jnp.int32)

    out = jax.block_until_ready(clip_forward(tokens, params))
    ref = clip_reference(tokens, params)

    assert out.shape == (BATCH, N_TOKEN, N_EMBD), out.shape
    max_err = float(jnp.max(jnp.abs(out - ref)))
    assert jnp.allclose(out, ref, atol=5e-3, rtol=5e-3), f"max_err={max_err}"

    print("KERNEL_OK")
</pallas_src>

<mosaic_0001>
module attributes {stable_mosaic.version = 11 : i64} {
  func.func @clip_fused_kernel(%arg0: memref<2x16x128xf32, #tpu.memory_space<vmem>>, %arg1: memref<12x1x128xf32, #tpu.memory_space<vmem>>, %arg2: memref<12x1x128xf32, #tpu.memory_space<vmem>>, %arg3: memref<12x128x128xbf16, #tpu.memory_space<vmem>>, %arg4: memref<12x128x128xbf16, #tpu.memory_space<vmem>>, %arg5: memref<12x128x128xbf16, #tpu.memory_space<vmem>>, %arg6: memref<12x1x128xf32, #tpu.memory_space<vmem>>, %arg7: memref<12x1x128xf32, #tpu.memory_space<vmem>>, %arg8: memref<12x1x128xf32, #tpu.memory_space<vmem>>, %arg9: memref<12x128x128xbf16, #tpu.memory_space<vmem>>, %arg10: memref<12x1x128xf32, #tpu.memory_space<vmem>>, %arg11: memref<12x1x128xf32, #tpu.memory_space<vmem>>, %arg12: memref<12x1x128xf32, #tpu.memory_space<vmem>>, %arg13: memref<12x128x512xbf16, #tpu.memory_space<vmem>>, %arg14: memref<12x1x512xf32, #tpu.memory_space<vmem>>, %arg15: memref<12x512x128xbf16, #tpu.memory_space<vmem>>, %arg16: memref<12x1x128xf32, #tpu.memory_space<vmem>>, %arg17: memref<1x128xf32, #tpu.memory_space<vmem>>, %arg18: memref<1x128xf32, #tpu.memory_space<vmem>>, %arg19: memref<2x16x128xf32, #tpu.memory_space<vmem>>) attributes {dimension_semantics = [], scalar_prefetch = 0 : i64, scratch_operands = 0 : i64, tpu.core_type = #tpu.core_type<tc>} {
    %c0 = arith.constant 0 : index
    %c0_0 = arith.constant 0 : index
    %c0_1 = arith.constant 0 : index
    %0 = vector.load %arg0[%c0, %c0_0, %c0_1] : memref<2x16x128xf32, #tpu.memory_space<vmem>>, vector<2x16x128xf32>
    %1 = tpu.iota {dimensions = array<i32: 0>} : vector<16x16xi32>
    %2 = tpu.iota {dimensions = array<i32: 1>} : vector<16x16xi32>
    %3 = arith.cmpi sge, %1, %2 : vector<16x16xi32>
    %cst = arith.constant 0.000000e+00 : f32
    %cst_2 = arith.constant -1.000000e+30 : f32
    %4 = vector.broadcast %cst : f32 to vector<16x16xf32>
    %5 = vector.broadcast %cst_2 : f32 to vector<16x16xf32>
    %6 = arith.select %3, %4, %5 : vector<16x16xi1>, vector<16x16xf32>
    %7 = vector.shape_cast %6 : vector<16x16xf32> to vector<1x16x16xf32>
    %cst_3 = arith.constant 0.176776692 : f32
    %c0_i32 = arith.constant 0 : i32
    %c12_i32 = arith.constant 12 : i32
    %8 = arith.addi %c0_i32, %c12_i32 : i32
    %c1_i32 = arith.constant 1 : i32
    %9 = scf.for %arg20 = %c0_i32 to %8 step %c1_i32 iter_args(%arg21 = %0) -> (vector<2x16x128xf32>)  : i32 {
      %37 = arith.index_cast %arg20 : i32 to index
      %c0_17 = arith.constant 0 : index
      %c0_18 = arith.constant 0 : index
      %38 = vector.load %arg1[%37, %c0_17, %c0_18] : memref<12x1x128xf32, #tpu.memory_space<vmem>>, vector<1x1x128xf32>
      %39 = vector.shape_cast %38 : vector<1x1x128xf32> to vector<1x128xf32>
      %40 = arith.index_cast %arg20 : i32 to index
      %c0_19 = arith.constant 0 : index
      %c0_20 = arith.constant 0 : index
      %41 = vector.load %arg2[%40, %c0_19, %c0_20] : memref<12x1x128xf32, #tpu.memory_space<vmem>>, vector<1x1x128xf32>
      %42 = vector.shape_cast %41 : vector<1x1x128xf32> to vector<1x128xf32>
      %cst_21 = arith.constant dense<0.000000e+00> : vector<2x16xf32>
      %43 = vector.multi_reduction <add>, %arg21, %cst_21 [2] : vector<2x16x128xf32> to vector<2x16xf32>
      %44 = vector.shape_cast %43 : vector<2x16xf32> to vector<2x16x1xf32>
      %cst_22 = arith.constant 1.280000e+02 : f32
      %45 = vector.broadcast %cst_22 : f32 to vector<2x16x1xf32>
      %46 = arith.divf %44, %45 : vector<2x16x1xf32>
      %47 = vector.broadcast %46 : vector<2x16x1xf32> to vector<2x16x128xf32>
      %48 = arith.subf %arg21, %47 : vector<2x16x128xf32>
      %49 = arith.mulf %48, %48 : vector<2x16x128xf32>
      %cst_23 = arith.constant dense<0.000000e+00> : vector<2x16xf32>
      %50 = vector.multi_reduction <add>, %49, %cst_23 [2] : vector<2x16x128xf32> to vector<2x16xf32>
      %51 = vector.shape_cast %50 : vector<2x16xf32> to vector<2x16x1xf32>
      %cst_24 = arith.constant 1.280000e+02 : f32
      %52 = vector.broadcast %cst_24 : f32 to vector<2x16x1xf32>
      %53 = arith.divf %51, %52 : vector<2x16x1xf32>
      %54 = vector.broadcast %46 : vector<2x16x1xf32> to vector<2x16x128xf32>
      %55 = arith.subf %arg21, %54 : vector<2x16x128xf32>
      %cst_25 = arith.constant 9.99999974E-6 : f32
      %56 = vector.broadcast %cst_25 : f32 to vector<2x16x1xf32>
      %57 = arith.addf %53, %56 : vector<2x16x1xf32>
      %58 = math.rsqrt %57 : vector<2x16x1xf32>
      %59 = vector.broadcast %58 : vector<2x16x1xf32> to vector<2x16x128xf32>
      %60 = arith.mulf %55, %59 : vector<2x16x128xf32>
      %61 = vector.shape_cast %39 : vector<1x128xf32> to vector<1x1x128xf32>
      %62 = vector.broadcast %61 : vector<1x1x128xf32> to vector<2x16x128xf32>
      %63 = arith.mulf %60, %62 : vector<2x16x128xf32>
      %64 = vector.shape_cast %42 : vector<1x128xf32> to vector<1x1x128xf32>
      %65 = vector.broadcast %64 : vector<1x1x128xf32> to vector<2x16x128xf32>
      %66 = arith.addf %63, %65 : vector<2x16x128xf32>
      %67 = vector.shape_cast %66 : vector<2x16x128xf32> to vector<32x128xf32>
      %68 = arith.truncf %67 : vector<32x128xf32> to vector<32x128xbf16>
      %69 = arith.index_cast %arg20 : i32 to index
      %c0_26 = arith.constant 0 : index
      %c0_27 = arith.constant 0 : index
      %70 = vector.load %arg3[%69, %c0_26, %c0_27] : memref<12x128x128xbf16, #tpu.memory_space<vmem>>, vector<1x128x128xbf16>
      %71 = vector.shape_cast %70 : vector<1x128x128xbf16> to vector<128x128xbf16>
      %cst_28 = arith.constant dense<0.000000e+00> : vector<32x128xf32>
      %72 = tpu.matmul %68, %71, %cst_28 {dimension_numbers = #tpu.dot_dimension_numbers<[1], [0], [0], [1], [0, 0, 1, 1], [], []>} : vector<32x128xbf16>, vector<128x128xbf16>, vector<32x128xf32> -> vector<32x128xf32>
      %73 = arith.index_cast %arg20 : i32 to index
      %c0_29 = arith.constant 0 : index
      %c0_30 = arith.constant 0 : index
      %74 = vector.load %arg6[%73, %c0_29, %c0_30] : memref<12x1x128xf32, #tpu.memory_space<vmem>>, vector<1x1x128xf32>
      %75 = vector.shape_cast %74 : vector<1x1x128xf32> to vector<1x128xf32>
      %76 = vector.broadcast %75 : vector<1x128xf32> to vector<32x128xf32>
      %77 = arith.addf %72, %76 : vector<32x128xf32>
      %78 = vector.broadcast %cst_3 : f32 to vector<32x128xf32>
      %79 = arith.mulf %77, %78 : vector<32x128xf32>
      %80 = arith.index_cast %arg20 : i32 to index
      %c0_31 = arith.constant 0 : index
      %c0_32 = arith.constant 0 : index
      %81 = vector.load %arg4[%80, %c0_31, %c0_32] : memref<12x128x128xbf16, #tpu.memory_space<vmem>>, vector<1x128x128xbf16>
      %82 = vector.shape_cast %81 : vector<1x128x128xbf16> to vector<128x128xbf16>
      %cst_33 = arith.constant dense<0.000000e+00> : vector<32x128xf32>
      %83 = tpu.matmul %68, %82, %cst_33 {dimension_numbers = #tpu.dot_dimension_numbers<[1], [0], [0], [1], [0, 0, 1, 1], [], []>} : vector<32x128xbf16>, vector<128x128xbf16>, vector<32x128xf32> -> vector<32x128xf32>
      %84 = arith.index_cast %arg20 : i32 to index
      %c0_34 = arith.constant 0 : index
      %c0_35 = arith.constant 0 : index
      %85 = vector.load %arg7[%84, %c0_34, %c0_35] : memref<12x1x128xf32, #tpu.memory_space<vmem>>, vector<1x1x128xf32>
      %86 = vector.shape_cast %85 : vector<1x1x128xf32> to vector<1x128xf32>
      %87 = vector.broadcast %86 : vector<1x128xf32> to vector<32x128xf32>
      %88 = arith.addf %83, %87 : vector<32x128xf32>
      %89 = arith.index_cast %arg20 : i32 to index
      %c0_36 = arith.constant 0 : index
      %c0_37 = arith.constant 0 : index
      %90 = vector.load %arg5[%89, %c0_36, %c0_37] : memref<12x128x128xbf16, #tpu.memory_space<vmem>>, vector<1x128x128xbf16>
      %91 = vector.shape_cast %90 : vector<1x128x128xbf16> to vector<128x128xbf16>
      %cst_38 = arith.constant dense<0.000000e+00> : vector<32x128xf32>
      %92 = tpu.matmul %68, %91, %cst_38 {dimension_numbers = #tpu.dot_dimension_numbers<[1], [0], [0], [1], [0, 0, 1, 1], [], []>} : vector<32x128xbf16>, vector<128x128xbf16>, vector<32x128xf32> -> vector<32x128xf32>
      %93 = arith.index_cast %arg20 : i32 to index
      %c0_39 = arith.constant 0 : index
      %c0_40 = arith.constant 0 : index
      %94 = vector.load %arg8[%93, %c0_39, %c0_40] : memref<12x1x128xf32, #tpu.memory_space<vmem>>, vector<1x1x128xf32>
      %95 = vector.shape_cast %94 : vector<1x1x128xf32> to vector<1x128xf32>
      %96 = vector.broadcast %95 : vector<1x128xf32> to vector<32x128xf32>
      %97 = arith.addf %92, %96 : vector<32x128xf32>
      %98 = vector.shape_cast %79 : vector<32x128xf32> to vector<2x16x4x32xf32>
      %99 = arith.truncf %98 : vector<2x16x4x32xf32> to vector<2x16x4x32xbf16>
      %100 = vector.shape_cast %88 : vector<32x128xf32> to vector<2x16x4x32xf32>
      %101 = arith.truncf %100 : vector<2x16x4x32xf32> to vector<2x16x4x32xbf16>
      %102 = vector.shape_cast %97 : vector<32x128xf32> to vector<2x16x4x32xf32>
      %103 = arith.truncf %102 : vector<2x16x4x32xf32> to vector<2x16x4x32xbf16>
      %104 = vector.extract_strided_slice %99 {offsets = [0, 0, 0, 0], sizes = [2, 16, 1, 32], strides = [1, 1, 1, 1]} : vector<2x16x4x32xbf16> to vector<2x16x1x32xbf16>
      %105 = vector.shape_cast %104 : vector<2x16x1x32xbf16> to vector<2x16x32xbf16>
      %106 = vector.extract_strided_slice %101 {offsets = [0, 0, 0, 0], sizes = [2, 16, 1, 32], strides = [1, 1, 1, 1]} : vector<2x16x4x32xbf16> to vector<2x16x1x32xbf16>
      %107 = vector.shape_cast %106 : vector<2x16x1x32xbf16> to vector<2x16x32xbf16>
      "tpu.trace_start"() <{level = 10 : i32, message = "bqd,bkd->bqk"}> : () -> ()
      %cst_41 = arith.constant dense<0.000000e+00> : vector<2x16x16xf32>
      %108 = tpu.matmul %105, %107, %cst_41 {dimension_numbers = #tpu.dot_dimension_numbers<[2], [2], [1], [1], [0, 0, 0, 1, 1, 1], [0], [0]>} : vector<2x16x32xbf16>, vector<2x16x32xbf16>, vector<2x16x16xf32> -> vector<2x16x16xf32>
      "tpu.trace_stop"() : () -> ()
      %109 = vector.broadcast %7 : vector<1x16x16xf32> to vector<2x16x16xf32>
      %110 = arith.addf %108, %109 : vector<2x16x16xf32>
      %cst_42 = arith.constant dense<0xFF800000> : vector<2x16xf32>
      %111 = vector.multi_reduction <maximumf>, %110, %cst_42 [2] : vector<2x16x16xf32> to vector<2x16xf32>
      %112 = vector.shape_cast %111 : vector<2x16xf32> to vector<2x16x1xf32>
      %113 = vector.broadcast %112 : vector<2x16x1xf32> to vector<2x16x16xf32>
      %114 = arith.subf %110, %113 : vector<2x16x16xf32>
      %115 = math.exp %114 : vector<2x16x16xf32>
      %cst_43 = arith.constant dense<0.000000e+00> : vector<2x16xf32>
      %116 = vector.multi_reduction <add>, %115, %cst_43 [2] : vector<2x16x16xf32> to vector<2x16xf32>
      %117 = vector.shape_cast %116 : vector<2x16xf32> to vector<2x16x1xf32>
      %118 = vector.broadcast %117 : vector<2x16x1xf32> to vector<2x16x16xf32>
      %119 = arith.divf %115, %118 : vector<2x16x16xf32>
      %120 = arith.truncf %119 : vector<2x16x16xf32> to vector<2x16x16xbf16>
      %121 = vector.extract_strided_slice %103 {offsets = [0, 0, 0, 0], sizes = [2, 16, 1, 32], strides = [1, 1, 1, 1]} : vector<2x16x4x32xbf16> to vector<2x16x1x32xbf16>
      %122 = vector.shape_cast %121 : vector<2x16x1x32xbf16> to vector<2x16x32xbf16>
      "tpu.trace_start"() <{level = 10 : i32, message = "bqk,bkd->bqd"}> : () -> ()
      %cst_44 = arith.constant dense<0.000000e+00> : vector<2x16x32xf32>
      %123 = tpu.matmul %120, %122, %cst_44 {dimension_numbers = #tpu.dot_dimension_numbers<[2], [1], [1], [2], [0, 0, 0, 1, 1, 2], [0], [0]>} : vector<2x16x16xbf16>, vector<2x16x32xbf16>, vector<2x16x32xf32> -> vector<2x16x32xf32>
      "tpu.trace_stop"() : () -> ()
      %124 = vector.extract_strided_slice %99 {offsets = [0, 0, 1, 0], sizes = [2, 16, 1, 32], strides = [1, 1, 1, 1]} : vector<2x16x4x32xbf16> to vector<2x16x1x32xbf16>
      %125 = vector.shape_cast %124 : vector<2x16x1x32xbf16> to vector<2x16x32xbf16>
      %126 = vector.extract_strided_slice %101 {offsets = [0, 0, 1, 0], sizes = [2, 16, 1, 32], strides = [1, 1, 1, 1]} : vector<2x16x4x32xbf16> to vector<2x16x1x32xbf16>
      %127 = vector.shape_cast %126 : vector<2x16x1x32xbf16> to vector<2x16x32xbf16>
      "tpu.trace_start"() <{level = 10 : i32, message = "bqd,bkd->bqk"}> : () -> ()
      %cst_45 = arith.constant dense<0.000000e+00> : vector<2x16x16xf32>
      %128 = tpu.matmul %125, %127, %cst_45 {dimension_numbers = #tpu.dot_dimension_numbers<[2], [2], [1], [1], [0, 0, 0, 1, 1, 1], [0], [0]>} : vector<2x16x32xbf16>, vector<2x16x32xbf16>, vector<2x16x16xf32> -> vector<2x16x16xf32>
      "tpu.trace_stop"() : () -> ()
      %129 = vector.broadcast %7 : vector<1x16x16xf32> to vector<2x16x16xf32>
      %130 = arith.addf %128, %129 : vector<2x16x16xf32>
      %cst_46 = arith.constant dense<0xFF800000> : vector<2x16xf32>
      %131 = vector.multi_reduction <maximumf>, %130, %cst_46 [2] : vector<2x16x16xf32> to vector<2x16xf32>
      %132 = vector.shape_cast %131 : vector<2x16xf32> to vector<2x16x1xf32>
      %133 = vector.broadcast %132 : vector<2x16x1xf32> to vector<2x16x16xf32>
      %134 = arith.subf %130, %133 : vector<2x16x16xf32>
      %135 = math.exp %134 : vector<2x16x16xf32>
      %cst_47 = arith.constant dense<0.000000e+00> : vector<2x16xf32>
      %136 = vector.multi_reduction <add>, %135, %cst_47 [2] : vector<2x16x16xf32> to vector<2x16xf32>
      %137 = vector.shape_cast %136 : vector<2x16xf32> to vector<2x16x1xf32>
      %138 = vector.broadcast %137 : vector<2x16x1xf32> to vector<2x16x16xf32>
      %139 = arith.divf %135, %138 : vector<2x16x16xf32>
      %140 = arith.truncf %139 : vector<2x16x16xf32> to vector<2x16x16xbf16>
      %141 = vector.extract_strided_slice %103 {offsets = [0, 0, 1, 0], sizes = [2, 16, 1, 32], strides = [1, 1, 1, 1]} : vector<2x16x4x32xbf16> to vector<2x16x1x32xbf16>
      %142 = vector.shape_cast %141 : vector<2x16x1x32xbf16> to vector<2x16x32xbf16>
      "tpu.trace_start"() <{level = 10 : i32, message = "bqk,bkd->bqd"}> : () -> ()
      %cst_48 = arith.constant dense<0.000000e+00> : vector<2x16x32xf32>
      %143 = tpu.matmul %140, %142, %cst_48 {dimension_numbers = #tpu.dot_dimension_numbers<[2], [1], [1], [2], [0, 0, 0, 1, 1, 2], [0], [0]>} : vector<2x16x16xbf16>, vector<2x16x32xbf16>, vector<2x16x32xf32> -> vector<2x16x32xf32>
      "tpu.trace_stop"() : () -> ()
      %144 = vector.extract_strided_slice %99 {offsets = [0, 0, 2, 0], sizes = [2, 16, 1, 32], strides = [1, 1, 1, 1]} : vector<2x16x4x32xbf16> to vector<2x16x1x32xbf16>
      %145 = vector.shape_cast %144 : vector<2x16x1x32xbf16> to vector<2x16x32xbf16>
      %146 = vector.extract_strided_slice %101 {offsets = [0, 0, 2, 0], sizes = [2, 16, 1, 32], strides = [1, 1, 1, 1]} : vector<2x16x4x32xbf16> to vector<2x16x1x32xbf16>
      %147 = vector.shape_cast %146 : vector<2x16x1x32xbf16> to vector<2x16x32xbf16>
      "tpu.trace_start"() <{level = 10 : i32, message = "bqd,bkd->bqk"}> : () -> ()
      %cst_49 = arith.constant dense<0.000000e+00> : vector<2x16x16xf32>
      %148 = tpu.matmul %145, %147, %cst_49 {dimension_numbers = #tpu.dot_dimension_numbers<[2], [2], [1], [1], [0, 0, 0, 1, 1, 1], [0], [0]>} : vector<2x16x32xbf16>, vector<2x16x32xbf16>, vector<2x16x16xf32> -> vector<2x16x16xf32>
      "tpu.trace_stop"() : () -> ()
      %149 = vector.broadcast %7 : vector<1x16x16xf32> to vector<2x16x16xf32>
      %150 = arith.addf %148, %149 : vector<2x16x16xf32>
      %cst_50 = arith.constant dense<0xFF800000> : vector<2x16xf32>
      %151 = vector.multi_reduction <maximumf>, %150, %cst_50 [2] : vector<2x16x16xf32> to vector<2x16xf32>
      %152 = vector.shape_cast %151 : vector<2x16xf32> to vector<2x16x1xf32>
      %153 = vector.broadcast %152 : vector<2x16x1xf32> to vector<2x16x16xf32>
      %154 = arith.subf %150, %153 : vector<2x16x16xf32>
      %155 = math.exp %154 : vector<2x16x16xf32>
      %cst_51 = arith.constant dense<0.000000e+00> : vector<2x16xf32>
      %156 = vector.multi_reduction <add>, %155, %cst_51 [2] : vector<2x16x16xf32> to vector<2x16xf32>
      %157 = vector.shape_cast %156 : vector<2x16xf32> to vector<2x16x1xf32>
      %158 = vector.broadcast %157 : vector<2x16x1xf32> to vector<2x16x16xf32>
      %159 = arith.divf %155, %158 : vector<2x16x16xf32>
      %160 = arith.truncf %159 : vector<2x16x16xf32> to vector<2x16x16xbf16>
      %161 = vector.extract_strided_slice %103 {offsets = [0, 0, 2, 0], sizes = [2, 16, 1, 32], strides = [1, 1, 1, 1]} : vector<2x16x4x32xbf16> to vector<2x16x1x32xbf16>
      %162 = vector.shape_cast %161 : vector<2x16x1x32xbf16> to vector<2x16x32xbf16>
      "tpu.trace_start"() <{level = 10 : i32, message = "bqk,bkd->bqd"}> : () -> ()
      %cst_52 = arith.constant dense<0.000000e+00> : vector<2x16x32xf32>
      %163 = tpu.matmul %160, %162, %cst_52 {dimension_numbers = #tpu.dot_dimension_numbers<[2], [1], [1], [2], [0, 0, 0, 1, 1, 2], [0], [0]>} : vector<2x16x16xbf16>, vector<2x16x32xbf16>, vector<2x16x32xf32> -> vector<2x16x32xf32>
      "tpu.trace_stop"() : () -> ()
      %164 = vector.extract_strided_slice %99 {offsets = [0, 0, 3, 0], sizes = [2, 16, 1, 32], strides = [1, 1, 1, 1]} : vector<2x16x4x32xbf16> to vector<2x16x1x32xbf16>
      %165 = vector.shape_cast %164 : vector<2x16x1x32xbf16> to vector<2x16x32xbf16>
      %166 = vector.extract_strided_slice %101 {offsets = [0, 0, 3, 0], sizes = [2, 16, 1, 32], strides = [1, 1, 1, 1]} : vector<2x16x4x32xbf16> to vector<2x16x1x32xbf16>
      %167 = vector.shape_cast %166 : vector<2x16x1x32xbf16> to vector<2x16x32xbf16>
      "tpu.trace_start"() <{level = 10 : i32, message = "bqd,bkd->bqk"}> : () -> ()
      %cst_53 = arith.constant dense<0.000000e+00> : vector<2x16x16xf32>
      %168 = tpu.matmul %165, %167, %cst_53 {dimension_numbers = #tpu.dot_dimension_numbers<[2], [2], [1], [1], [0, 0, 0, 1, 1, 1], [0], [0]>} : vector<2x16x32xbf16>, vector<2x16x32xbf16>, vector<2x16x16xf32> -> vector<2x16x16xf32>
      "tpu.trace_stop"() : () -> ()
      %169 = vector.broadcast %7 : vector<1x16x16xf32> to vector<2x16x16xf32>
      %170 = arith.addf %168, %169 : vector<2x16x16xf32>
      %cst_54 = arith.constant dense<0xFF800000> : vector<2x16xf32>
      %171 = vector.multi_reduction <maximumf>, %170, %cst_54 [2] : vector<2x16x16xf32> to vector<2x16xf32>
      %172 = vector.shape_cast %171 : vector<2x16xf32> to vector<2x16x1xf32>
      %173 = vector.broadcast %172 : vector<2x16x1xf32> to vector<2x16x16xf32>
      %174 = arith.subf %170, %173 : vector<2x16x16xf32>
      %175 = math.exp %174 : vector<2x16x16xf32>
      %cst_55 = arith.constant dense<0.000000e+00> : vector<2x16xf32>
      %176 = vector.multi_reduction <add>, %175, %cst_55 [2] : vector<2x16x16xf32> to vector<2x16xf32>
      %177 = vector.shape_cast %176 : vector<2x16xf32> to vector<2x16x1xf32>
      %178 = vector.broadcast %177 : vector<2x16x1xf32> to vector<2x16x16xf32>
      %179 = arith.divf %175, %178 : vector<2x16x16xf32>
      %180 = arith.truncf %179 : vector<2x16x16xf32> to vector<2x16x16xbf16>
      %181 = vector.extract_strided_slice %103 {offsets = [0, 0, 3, 0], sizes = [2, 16, 1, 32], strides = [1, 1, 1, 1]} : vector<2x16x4x32xbf16> to vector<2x16x1x32xbf16>
      %182 = vector.shape_cast %181 : vector<2x16x1x32xbf16> to vector<2x16x32xbf16>
      "tpu.trace_start"() <{level = 10 : i32, message = "bqk,bkd->bqd"}> : () -> ()
      %cst_56 = arith.constant dense<0.000000e+00> : vector<2x16x32xf32>
      %183 = tpu.matmul %180, %182, %cst_56 {dimension_numbers = #tpu.dot_dimension_numbers<[2], [1], [1], [2], [0, 0, 0, 1, 1, 2], [0], [0]>} : vector<2x16x16xbf16>, vector<2x16x32xbf16>, vector<2x16x32xf32> -> vector<2x16x32xf32>
      "tpu.trace_stop"() : () -> ()
      %184 = tpu.concatenate %123, %143, %163, %183 in 2 : vector<2x16x32xf32>, vector<2x16x32xf32>, vector<2x16x32xf32>, vector<2x16x32xf32> -> vector<2x16x128xf32>
      %185 = vector.shape_cast %184 : vector<2x16x128xf32> to vector<32x128xf32>
      %186 = arith.truncf %185 : vector<32x128xf32> to vector<32x128xbf16>
      %187 = arith.index_cast %arg20 : i32 to index
      %c0_57 = arith.constant 0 : index
      %c0_58 = arith.constant 0 : index
      %188 = vector.load %arg9[%187, %c0_57, %c0_58] : memref<12x128x128xbf16, #tpu.memory_space<vmem>>, vector<1x128x128xbf16>
      %189 = vector.shape_cast %188 : vector<1x128x128xbf16> to vector<128x128xbf16>
      %cst_59 = arith.constant dense<0.000000e+00> : vector<32x128xf32>
      %190 = tpu.matmul %186, %189, %cst_59 {dimension_numbers = #tpu.dot_dimension_numbers<[1], [0], [0], [1], [0, 0, 1, 1], [], []>} : vector<32x128xbf16>, vector<128x128xbf16>, vector<32x128xf32> -> vector<32x128xf32>
      %191 = arith.index_cast %arg20 : i32 to index
      %c0_60 = arith.constant 0 : index
      %c0_61 = arith.constant 0 : index
      %192 = vector.load %arg10[%191, %c0_60, %c0_61] : memref<12x1x128xf32, #tpu.memory_space<vmem>>, vector<1x1x128xf32>
      %193 = vector.shape_cast %192 : vector<1x1x128xf32> to vector<1x128xf32>
      %194 = vector.broadcast %193 : vector<1x128xf32> to vector<32x128xf32>
      %195 = arith.addf %190, %194 : vector<32x128xf32>
      %196 = vector.shape_cast %195 : vector<32x128xf32> to vector<2x16x128xf32>
      %197 = arith.addf %arg21, %196 : vector<2x16x128xf32>
      %198 = arith.index_cast %arg20 : i32 to index
      %c0_62 = arith.constant 0 : index
      %c0_63 = arith.constant 0 : index
      %199 = vector.load %arg11[%198, %c0_62, %c0_63] : memref<12x1x128xf32, #tpu.memory_space<vmem>>, vector<1x1x128xf32>
      %200 = vector.shape_cast %199 : vector<1x1x128xf32> to vector<1x128xf32>
      %201 = arith.index_cast %arg20 : i32 to index
      %c0_64 = arith.constant 0 : index
      %c0_65 = arith.constant 0 : index
      %202 = vector.load %arg12[%201, %c0_64, %c0_65] : memref<12x1x128xf32, #tpu.memory_space<vmem>>, vector<1x1x128xf32>
      %203 = vector.shape_cast %202 : vector<1x1x128xf32> to vector<1x128xf32>
      %cst_66 = arith.constant dense<0.000000e+00> : vector<2x16xf32>
      %204 = vector.multi_reduction <add>, %197, %cst_66 [2] : vector<2x16x128xf32> to vector<2x16xf32>
      %205 = vector.shape_cast %204 : vector<2x16xf32> to vector<2x16x1xf32>
      %cst_67 = arith.constant 1.280000e+02 : f32
      %206 = vector.broadcast %cst_67 : f32 to vector<2x16x1xf32>
      %207 = arith.divf %205, %206 : vector<2x16x1xf32>
      %208 = vector.broadcast %207 : vector<2x16x1xf32> to vector<2x16x128xf32>
      %209 = arith.subf %197, %208 : vector<2x16x128xf32>
      %210 = arith.mulf %209, %209 : vector<2x16x128xf32>
      %cst_68 = arith.constant dense<0.000000e+00> : vector<2x16xf32>
      %211 = vector.multi_reduction <add>, %210, %cst_68 [2] : vector<2x16x128xf32> to vector<2x16xf32>
      %212 = vector.shape_cast %211 : vector<2x16xf32> to vector<2x16x1xf32>
      %cst_69 = arith.constant 1.280000e+02 : f32
      %213 = vector.broadcast %cst_69 : f32 to vector<2x16x1xf32>
      %214 = arith.divf %212, %213 : vector<2x16x1xf32>
      %215 = vector.broadcast %207 : vector<2x16x1xf32> to vector<2x16x128xf32>
      %216 = arith.subf %197, %215 : vector<2x16x128xf32>
      %cst_70 = arith.constant 9.99999974E-6 : f32
      %217 = vector.broadcast %cst_70 : f32 to vector<2x16x1xf32>
      %218 = arith.addf %214, %217 : vector<2x16x1xf32>
      %219 = math.rsqrt %218 : vector<2x16x1xf32>
      %220 = vector.broadcast %219 : vector<2x16x1xf32> to vector<2x16x128xf32>
      %221 = arith.mulf %216, %220 : vector<2x16x128xf32>
      %222 = vector.shape_cast %200 : vector<1x128xf32> to vector<1x1x128xf32>
      %223 = vector.broadcast %222 : vector<1x1x128xf32> to vector<2x16x128xf32>
      %224 = arith.mulf %221, %223 : vector<2x16x128xf32>
      %225 = vector.shape_cast %203 : vector<1x128xf32> to vector<1x1x128xf32>
      %226 = vector.broadcast %225 : vector<1x1x128xf32> to vector<2x16x128xf32>
      %227 = arith.addf %224, %226 : vector<2x16x128xf32>
      %228 = vector.shape_cast %227 : vector<2x16x128xf32> to vector<32x128xf32>
      %229 = arith.truncf %228 : vector<32x128xf32> to vector<32x128xbf16>
      %230 = arith.index_cast %arg20 : i32 to index
      %c0_71 = arith.constant 0 : index
      %c0_72 = arith.constant 0 : index
      %231 = vector.load %arg13[%230, %c0_71, %c0_72] : memref<12x128x512xbf16, #tpu.memory_space<vmem>>, vector<1x128x512xbf16>
      %232 = vector.shape_cast %231 : vector<1x128x512xbf16> to vector<128x512xbf16>
      %cst_73 = arith.constant dense<0.000000e+00> : vector<32x512xf32>
      %233 = tpu.matmul %229, %232, %cst_73 {dimension_numbers = #tpu.dot_dimension_numbers<[1], [0], [0], [1], [0, 0, 1, 1], [], []>} : vector<32x128xbf16>, vector<128x512xbf16>, vector<32x512xf32> -> vector<32x512xf32>
      %234 = arith.index_cast %arg20 : i32 to index
      %c0_74 = arith.constant 0 : index
      %c0_75 = arith.constant 0 : index
      %235 = vector.load %arg14[%234, %c0_74, %c0_75] : memref<12x1x512xf32, #tpu.memory_space<vmem>>, vector<1x1x512xf32>
      %236 = vector.shape_cast %235 : vector<1x1x512xf32> to vector<1x512xf32>
      %237 = vector.broadcast %236 : vector<1x512xf32> to vector<32x512xf32>
      %238 = arith.addf %233, %237 : vector<32x512xf32>
      %cst_76 = arith.constant 1.702000e+00 : f32
      %239 = vector.broadcast %cst_76 : f32 to vector<32x512xf32>
      %240 = arith.mulf %239, %238 : vector<32x512xf32>
      %241 = arith.negf %240 : vector<32x512xf32>
      %242 = math.exp %241 : vector<32x512xf32>
      %cst_77 = arith.constant 1.000000e+00 : f32
      %243 = vector.broadcast %cst_77 : f32 to vector<32x512xf32>
      %244 = arith.addf %243, %242 : vector<32x512xf32>
      %245 = arith.divf %243, %244 : vector<32x512xf32>
      %246 = arith.mulf %238, %245 : vector<32x512xf32>
      %247 = arith.truncf %246 : vector<32x512xf32> to vector<32x512xbf16>
      %248 = arith.index_cast %arg20 : i32 to index
      %c0_78 = arith.constant 0 : index
      %c0_79 = arith.constant 0 : index
      %249 = vector.load %arg15[%248, %c0_78, %c0_79] : memref<12x512x128xbf16, #tpu.memory_space<vmem>>, vector<1x512x128xbf16>
      %250 = vector.shape_cast %249 : vector<1x512x128xbf16> to vector<512x128xbf16>
      %cst_80 = arith.constant dense<0.000000e+00> : vector<32x128xf32>
      %251 = tpu.matmul %247, %250, %cst_80 {dimension_numbers = #tpu.dot_dimension_numbers<[1], [0], [0], [1], [0, 0, 1, 1], [], []>} : vector<32x512xbf16>, vector<512x128xbf16>, vector<32x128xf32> -> vector<32x128xf32>
      %252 = arith.index_cast %arg20 : i32 to index
      %c0_81 = arith.constant 0 : index
      %c0_82 = arith.constant 0 : index
      %253 = vector.load %arg16[%252, %c0_81, %c0_82] : memref<12x1x128xf32, #tpu.memory_space<vmem>>, vector<1x1x128xf32>
      %254 = vector.shape_cast %253 : vector<1x1x128xf32> to vector<1x128xf32>
      %255 = vector.broadcast %254 : vector<1x128xf32> to vector<32x128xf32>
      %256 = arith.addf %251, %255 : vector<32x128xf32>
      %257 = vector.shape_cast %256 : vector<32x128xf32> to vector<2x16x128xf32>
      %258 = arith.addf %197, %257 : vector<2x16x128xf32>
      scf.yield %258 : vector<2x16x128xf32>
    }
    %c12_i32_4 = arith.constant 12 : i32
    %c0_5 = arith.constant 0 : index
    %c0_6 = arith.constant 0 : index
    %10 = vector.load %arg17[%c0_5, %c0_6] : memref<1x128xf32, #tpu.memory_space<vmem>>, vector<1x128xf32>
    %c0_7 = arith.constant 0 : index
    %c0_8 = arith.constant 0 : index
    %11 = vector.load %arg18[%c0_7, %c0_8] : memref<1x128xf32, #tpu.memory_space<vmem>>, vector<1x128xf32>
    %cst_9 = arith.constant dense<0.000000e+00> : vector<2x16xf32>
    %12 = vector.multi_reduction <add>, %9, %cst_9 [2] : vector<2x16x128xf32> to vector<2x16xf32>
    %13 = vector.shape_cast %12 : vector<2x16xf32> to vector<2x16x1xf32>
    %cst_10 = arith.constant 1.280000e+02 : f32
    %14 = vector.broadcast %cst_10 : f32 to vector<2x16x1xf32>
    %15 = arith.divf %13, %14 : vector<2x16x1xf32>
    %16 = vector.broadcast %15 : vector<2x16x1xf32> to vector<2x16x128xf32>
    %17 = arith.subf %9, %16 : vector<2x16x128xf32>
    %18 = arith.mulf %17, %17 : vector<2x16x128xf32>
    %cst_11 = arith.constant dense<0.000000e+00> : vector<2x16xf32>
    %19 = vector.multi_reduction <add>, %18, %cst_11 [2] : vector<2x16x128xf32> to vector<2x16xf32>
    %20 = vector.shape_cast %19 : vector<2x16xf32> to vector<2x16x1xf32>
    %cst_12 = arith.constant 1.280000e+02 : f32
    %21 = vector.broadcast %cst_12 : f32 to vector<2x16x1xf32>
    %22 = arith.divf %20, %21 : vector<2x16x1xf32>
    %23 = vector.broadcast %15 : vector<2x16x1xf32> to vector<2x16x128xf32>
    %24 = arith.subf %9, %23 : vector<2x16x128xf32>
    %cst_13 = arith.constant 9.99999974E-6 : f32
    %25 = vector.broadcast %cst_13 : f32 to vector<2x16x1xf32>
    %26 = arith.addf %22, %25 : vector<2x16x1xf32>
    %27 = math.rsqrt %26 : vector<2x16x1xf32>
    %28 = vector.broadcast %27 : vector<2x16x1xf32> to vector<2x16x128xf32>
    %29 = arith.mulf %24, %28 : vector<2x16x128xf32>
    %30 = vector.shape_cast %10 : vector<1x128xf32> to vector<1x1x128xf32>
    %31 = vector.broadcast %30 : vector<1x1x128xf32> to vector<2x16x128xf32>
    %32 = arith.mulf %29, %31 : vector<2x16x128xf32>
    %33 = vector.shape_cast %11 : vector<1x128xf32> to vector<1x1x128xf32>
    %34 = vector.broadcast %33 : vector<1x1x128xf32> to vector<2x16x128xf32>
    %35 = arith.addf %32, %34 : vector<2x16x128xf32>
    %c0_14 = arith.constant 0 : index
    %c0_15 = arith.constant 0 : index
    %c0_16 = arith.constant 0 : index
    %36 = vector.load %arg19[%c0_14, %c0_15, %c0_16] : memref<2x16x128xf32, #tpu.memory_space<vmem>>, vector<2x16x128xf32>
    tpu.vector_store %arg19[%c0_14, %c0_15, %c0_16], %35 {strides = array<i32>} : memref<2x16x128xf32, #tpu.memory_space<vmem>>, vector<2x16x128xf32>,
    return
  }
}

</mosaic_0001>

<bundles_post_ra>
// kernel: clip_forward.1
= control target key start
LH: loop header
LB: loop body
LE: loop exit
PB: predicated region body
PF: predicated region fallthrough
CT: control target
= control target key end

     0   :  { %s8780_s0 = inlined_call_operand.vmem [shape: f32[2,16,128], index: 0, kind: input, shape index: {}]   ;;  %s8781_s1 = inlined_call_operand.hbm [shape: f32[12,1,128], index: 1, kind: input, shape index: {}]   ;;  %s8782_s2 = inlined_call_operand.hbm [shape: f32[12,1,128], index: 2, kind: input, shape index: {}]   ;;  %s8783_s3 = inlined_call_operand.hbm [shape: bf16[12,128,128], index: 3, kind: input, shape index: {}]   ;;  %s8784_s4 = inlined_call_operand.hbm [shape: bf16[12,128,128], index: 4, kind: input, shape index: {}]   ;;  %s8785_s5 = inlined_call_operand.hbm [shape: bf16[12,128,128], index: 5, kind: input, shape index: {}]   ;;  %s8786_s6 = inlined_call_operand.hbm [shape: f32[12,1,128], index: 6, kind: input, shape index: {}]   ;;  %s8787_s7 = inlined_call_operand.hbm [shape: f32[12,1,128], index: 7, kind: input, shape index: {}]   ;;  %s8788_s8 = inlined_call_operand.hbm [shape: f32[12,1,128], index: 8, kind: input, shape index: {}]   ;;  %s8789_s9 = inlined_call_operand.hbm [shape: bf16[12,128,128], index: 9, kind: input, shape index: {}]   ;;  %s8790_s10 = inlined_call_operand.hbm [shape: f32[12,1,128], index: 10, kind: input, shape index: {}]   ;;  %s8791_s11 = inlined_call_operand.hbm [shape: f32[12,1,128], index: 11, kind: input, shape index: {}]   ;;  %s8792_s12 = inlined_call_operand.hbm [shape: f32[12,1,128], index: 12, kind: input, shape index: {}]   ;;  %s8793_s13 = inlined_call_operand.hbm [shape: bf16[12,128,512], index: 13, kind: input, shape index: {}]   ;;  %s8794_s14 = inlined_call_operand.hbm [shape: f32[12,1,512], index: 14, kind: input, shape index: {}]   ;;  %s8795_s15 = inlined_call_operand.hbm [shape: bf16[12,512,128], index: 15, kind: input, shape index: {}]   ;;  %s8796_s16 = inlined_call_operand.hbm [shape: f32[12,1,128], index: 16, kind: input, shape index: {}]   ;;  %s8797_s17 = inlined_call_operand.hbm [shape: f32[1,128], index: 17, kind: input, shape index: {}]   ;;  %s8798_s18 = inlined_call_operand.hbm [shape: f32[1,128], index: 18, kind: input, shape index: {}]   ;;  %s8799_s19 = inlined_call_operand.hbm [shape: f32[2,16,128], index: 19, kind: output, shape index: {}]  }
   0x1   :  { %8905 = sst [smem:[#allocation113_spill]] %s8780_s0 }
   0x2   :  { %8906 = sst [smem:[#allocation114_spill]] %s8781_s1 }
   0x3   :  { %8907 = sst [smem:[#allocation115_spill]] %s8782_s2 }
   0x4   :  { %8908 = sst [smem:[#allocation116_spill]] %s8783_s3 }
   0x5   :  { %8909 = sst [smem:[#allocation117_spill]] %s8798_s18 }
   0x6   :  { %8910 = sst [smem:[#allocation118_spill]] %s8799_s19 }
   0x7   :  { %24 = vsyncpa [#allocation3], 0 }
   0x8   :  { %25 = vsyncpa [#allocation6], 0 }
   0x9   :  { %26 = vsyncpa [#allocation9], 0 }
   0xa   :  { %27 = vsyncpa [#allocation12], 0 }
   0xb   :  { %28 = vsyncpa [#allocation15], 0 }
   0xc   :  { %29 = vsyncpa [#allocation18], 0 }
   0xd   :  { %30 = vsyncpa [#allocation21], 0 }
   0xe   :  { %31 = vsyncpa [#allocation24], 0 }
   0xf   :  { %32 = vsyncpa [#allocation27], 0 }
  0x10   :  { %33 = vsyncpa [#allocation30], 0 }
  0x11   :  { %34 = vsyncpa [#allocation4], 0  ;;  %s6155_s0 = smov [#allocation5]   ;;  %s8911_s1 = sld [smem:[#allocation115_spill]] }
  0x12   :  { %s54_s30 = sshll.u32 %s6155_s0, 4  ;;  %s55_s30 = int_to_ptr.vmem [resolvable:$true] %s54_s30 }
  0x17   :  { %s5675_s22 = scalar_lea.hbm %s8911_s1, 192 }
  0x18   :  { %p5676_p0 = scmp.ne.s32.totalorder %s8911_s1, %s5675_s22  ;;  %p5679_p1 = scmp.lt.u32.totalorder %s5675_s22, %s8911_s1 }
  0x1a   :  { %p5681_p2 = pnand %p5679_p1, %p5676_p0 }
  0x1c   :  { %5684 = shalt.err (!%p5681_p2)
}
  0x1d   :  { %s5685_s3 = scalar_lea.vmem %s55_s30, 192  ;;  %p5690_p4 = scmp.lt.s32.totalorder %s55_s30, %s55_s30 }
  0x1e   :  { %p5686_p3 = scmp.ne.s32.totalorder %s55_s30, %s5685_s3  ;;  %p5691_p5 = scmp.lt.s32.totalorder %s5685_s3, %s5685_s3 }
  0x20   :  { %p5692_p6 = por %p5691_p5, %p5690_p4 }
  0x22   :  { %p5693_p7 = pnand %p5692_p6, %p5686_p3 }
  0x24   :  { %5696 = shalt.err (!%p5693_p7)
}
  0x25   :  { %s6156_s26 = smov 16   ;;  %s6157_s27 = smov 1  }
  0x26   :  { %60 = dma.hbm_to_vmem [thread:$0]  %s8911_s1, 192, %s55_s30, [#allocation6], %s6156_s26, %s6156_s26, %s6157_s27  }
  0x27   :  { %s6158_s0 = smov [#allocation8]   ;;  %s6159_s21 = smov [#allocation11]  }
  0x28   :  { %s78_s20 = sshll.u32 %s6158_s0, 4  ;;  %s102_s22 = sshll.u32 %s6159_s21, 4  ;;  %s79_s20 = int_to_ptr.vmem [resolvable:$true] %s78_s20  ;;  %s103_s22 = int_to_ptr.vmem [resolvable:$true] %s102_s22 }
  0x29   :  { %s5697_s24 = scalar_lea.hbm %s8784_s4, 12288 }
  0x2a   :  { %p5698_p8 = scmp.ne.s32.totalorder %s8784_s4, %s5697_s24  ;;  %p5701_p9 = scmp.lt.u32.totalorder %s5697_s24, %s8784_s4 }
  0x2c   :  { %p5703_p10 = pnand %p5701_p9, %p5698_p8 }
  0x2e   :  { %5706 = shalt.err (!%p5703_p10)
}
  0x2f   :  { %s5707_s30 = scalar_lea.vmem %s79_s20, 12288  ;;  %p5712_p12 = scmp.lt.s32.totalorder %s79_s20, %s79_s20 }
  0x30   :  { %p5708_p11 = scmp.ne.s32.totalorder %s79_s20, %s5707_s30  ;;  %p5713_p13 = scmp.lt.s32.totalorder %s5707_s30, %s5707_s30 }
  0x32   :  { %p5714_p0 = por %p5713_p13, %p5712_p12 }
  0x34   :  { %p5715_p1 = pnand %p5714_p0, %p5708_p11 }
  0x36   :  { %5718 = shalt.err (!%p5715_p1)
}
  0x37   :  { %s6160_s1 = smov 64   ;;  %s6161_s28 = smov 4  }
  0x38   :  { %84 = dma.hbm_to_vmem [thread:$0]  %s8784_s4, 12288, %s79_s20, [#allocation9], %s6160_s1, %s6160_s1, %s6161_s28  }
  0x39   :  { %s5719_s21 = scalar_lea.hbm %s8786_s6, 192 }
  0x3a   :  { %p5720_p2 = scmp.ne.s32.totalorder %s8786_s6, %s5719_s21  ;;  %p5723_p3 = scmp.lt.u32.totalorder %s5719_s21, %s8786_s6 }
  0x3c   :  { %p5725_p4 = pnand %p5723_p3, %p5720_p2 }
  0x3e   :  { %5728 = shalt.err (!%p5725_p4)
}
  0x3f   :  { %s5729_s3 = scalar_lea.vmem %s103_s22, 192  ;;  %p5734_p6 = scmp.lt.s32.totalorder %s103_s22, %s103_s22 }
  0x40   :  { %p5730_p5 = scmp.ne.s32.totalorder %s103_s22, %s5729_s3  ;;  %p5735_p7 = scmp.lt.s32.totalorder %s5729_s3, %s5729_s3 }
  0x42   :  { %p5736_p8 = por %p5735_p7, %p5734_p6 }
  0x44   :  { %p5737_p9 = pnand %p5736_p8, %p5730_p5 }
  0x46   :  { %5740 = shalt.err (!%p5737_p9)
}
  0x47   :  { %108 = dma.hbm_to_vmem [thread:$0]  %s8786_s6, 192, %s103_s22, [#allocation12], %s6156_s26, %s6156_s26, %s6157_s27  }
  0x48   :  { %s6162_s30 = smov [#allocation14]   ;;  %s6163_s0 = smov [#allocation17]  }
  0x49   :  { %s126_s29 = sshll.u32 %s6162_s30, 4  ;;  %s150_s18 = sshll.u32 %s6163_s0, 4  ;;  %s127_s29 = int_to_ptr.vmem [resolvable:$true] %s126_s29  ;;  %s151_s18 = int_to_ptr.vmem [resolvable:$true] %s150_s18 }
  0x4a   :  { %s5741_s2 = scalar_lea.hbm %s8788_s8, 192 }
  0x4b   :  { %p5742_p10 = scmp.ne.s32.totalorder %s8788_s8, %s5741_s2  ;;  %p5745_p11 = scmp.lt.u32.totalorder %s5741_s2, %s8788_s8 }
  0x4d   :  { %p5747_p12 = pnand %p5745_p11, %p5742_p10 }
  0x4f   :  { %5750 = shalt.err (!%p5747_p12)
}
  0x50   :  { %s5751_s6 = scalar_lea.vmem %s127_s29, 192  ;;  %p5756_p0 = scmp.lt.s32.totalorder %s127_s29, %s127_s29 }
  0x51   :  { %p5752_p13 = scmp.ne.s32.totalorder %s127_s29, %s5751_s6  ;;  %p5757_p1 = scmp.lt.s32.totalorder %s5751_s6, %s5751_s6 }
  0x53   :  { %p5758_p2 = por %p5757_p1, %p5756_p0 }
  0x55   :  { %p5759_p3 = pnand %p5758_p2, %p5752_p13 }
  0x57   :  { %5762 = shalt.err (!%p5759_p3)
}
  0x58   :  { %132 = dma.hbm_to_vmem [thread:$0]  %s8788_s8, 192, %s127_s29, [#allocation15], %s6156_s26, %s6156_s26, %s6157_s27  }
  0x59   :  { %s5763_s0 = scalar_lea.hbm %s8790_s10, 192 }
  0x5a   :  { %p5764_p4 = scmp.ne.s32.totalorder %s8790_s10, %s5763_s0  ;;  %p5767_p5 = scmp.lt.u32.totalorder %s5763_s0, %s8790_s10 }
  0x5c   :  { %p5769_p6 = pnand %p5767_p5, %p5764_p4 }
  0x5e   :  { %5772 = shalt.err (!%p5769_p6)
}
  0x5f   :  { %s5773_s24 = scalar_lea.vmem %s151_s18, 192  ;;  %p5778_p8 = scmp.lt.s32.totalorder %s151_s18, %s151_s18 }
  0x60   :  { %p5774_p7 = scmp.ne.s32.totalorder %s151_s18, %s5773_s24  ;;  %p5779_p9 = scmp.lt.s32.totalorder %s5773_s24, %s5773_s24 }
  0x62   :  { %p5780_p10 = por %p5779_p9, %p5778_p8 }
  0x64   :  { %p5781_p11 = pnand %p5780_p10, %p5774_p7 }
  0x66   :  { %5784 = shalt.err (!%p5781_p11)
}
  0x67   :  { %156 = dma.hbm_to_vmem [thread:$0]  %s8790_s10, 192, %s151_s18, [#allocation18], %s6156_s26, %s6156_s26, %s6157_s27  }
  0x68   :  { %s6164_s25 = smov [#allocation20]   ;;  %s6165_s6 = smov [#allocation23]  }
  0x69   :  { %s174_s3 = sshll.u32 %s6164_s25, 4  ;;  %s198_s22 = sshll.u32 %s6165_s6, 4  ;;  %s175_s3 = int_to_ptr.vmem [resolvable:$true] %s174_s3  ;;  %s199_s22 = int_to_ptr.vmem [resolvable:$true] %s198_s22 }
  0x6a   :  { %s5785_s30 = scalar_lea.hbm %s8792_s12, 192 }
  0x6b   :  { %p5786_p12 = scmp.ne.s32.totalorder %s8792_s12, %s5785_s30  ;;  %p5789_p13 = scmp.lt.u32.totalorder %s5785_s30, %s8792_s12 }
  0x6d   :  { %p5791_p0 = pnand %p5789_p13, %p5786_p12 }
  0x6f   :  { %5794 = shalt.err (!%p5791_p0)
}
  0x70   :  { %s5795_s10 = scalar_lea.vmem %s175_s3, 192  ;;  %p5800_p2 = scmp.lt.s32.totalorder %s175_s3, %s175_s3 }
  0x71   :  { %p5796_p1 = scmp.ne.s32.totalorder %s175_s3, %s5795_s10  ;;  %p5801_p3 = scmp.lt.s32.totalorder %s5795_s10, %s5795_s10 }
  0x73   :  { %p5802_p4 = por %p5801_p3, %p5800_p2 }
  0x75   :  { %p5803_p5 = pnand %p5802_p4, %p5796_p1 }
  0x77   :  { %5806 = shalt.err (!%p5803_p5)
}
  0x78   :  { %180 = dma.hbm_to_vmem [thread:$0]  %s8792_s12, 192, %s175_s3, [#allocation21], %s6156_s26, %s6156_s26, %s6157_s27  }
  0x79   :  { %s5807_s29 = scalar_lea.hbm %s8794_s14, 768 }
  0x7a   :  { %p5808_p6 = scmp.ne.s32.totalorder %s8794_s14, %s5807_s29  ;;  %p5811_p7 = scmp.lt.u32.totalorder %s5807_s29, %s8794_s14 }
  0x7c   :  { %p5813_p8 = pnand %p5811_p7, %p5808_p6 }
  0x7e   :  { %5816 = shalt.err (!%p5813_p8)
}
  0x7f   :  { %s5817_s30 = scalar_lea.vmem %s199_s22, 768  ;;  %p5822_p10 = scmp.lt.s32.totalorder %s199_s22, %s199_s22 }
  0x80   :  { %p5818_p9 = scmp.ne.s32.totalorder %s199_s22, %s5817_s30  ;;  %p5823_p11 = scmp.lt.s32.totalorder %s5817_s30, %s5817_s30 }
  0x82   :  { %p5824_p12 = por %p5823_p11, %p5822_p10 }
  0x84   :  { %p5825_p13 = pnand %p5824_p12, %p5818_p9 }
  0x86   :  { %5828 = shalt.err (!%p5825_p13)
}
  0x87   :  { %204 = dma.hbm_to_vmem [thread:$0]  %s8794_s14, 768, %s199_s22, [#allocation24], %s6160_s1, %s6160_s1, %s6161_s28  }
  0x88   :  { %s6166_s0 = smov [#allocation26]   ;;  %s6167_s21 = smov [#allocation2]  }
  0x89   :  { %s222_s19 = sshll.u32 %s6166_s0, 4  ;;  %s42_s2 = sshll.u32 %s6167_s21, 4  ;;  %s223_s19 = int_to_ptr.vmem [resolvable:$true] %s222_s19  ;;  %s43_s2 = int_to_ptr.vmem [resolvable:$true] %s42_s2 }
  0x8a   :  { %s5829_s23 = scalar_lea.hbm %s8796_s16, 192 }
  0x8b   :  { %p5830_p0 = scmp.ne.s32.totalorder %s8796_s16, %s5829_s23  ;;  %p5833_p1 = scmp.lt.u32.totalorder %s5829_s23, %s8796_s16 }
  0x8d   :  { %p5835_p2 = pnand %p5833_p1, %p5830_p0 }
  0x8f   :  { %5838 = shalt.err (!%p5835_p2)
}
  0x90   :  { %s5839_s14 = scalar_lea.vmem %s223_s19, 192  ;;  %p5844_p4 = scmp.lt.s32.totalorder %s223_s19, %s223_s19 }
  0x91   :  { %p5840_p3 = scmp.ne.s32.totalorder %s223_s19, %s5839_s14  ;;  %p5845_p5 = scmp.lt.s32.totalorder %s5839_s14, %s5839_s14 }
  0x93   :  { %p5846_p6 = por %p5845_p5, %p5844_p4 }
  0x95   :  { %p5847_p7 = pnand %p5846_p6, %p5840_p3 }
  0x97   :  { %5850 = shalt.err (!%p5847_p7)
}
  0x98   :  { %228 = dma.hbm_to_vmem [thread:$0]  %s8796_s16, 192, %s223_s19, [#allocation27], %s6156_s26, %s6156_s26, %s6157_s27  }
  0x99   :  { %s8912_s30 = sld [smem:[#allocation114_spill]] }
  0x9f   :  { %s5851_s12 = scalar_lea.hbm %s8912_s30, 192 }
  0xa0   :  { %p5852_p8 = scmp.ne.s32.totalorder %s8912_s30, %s5851_s12  ;;  %p5855_p9 = scmp.lt.u32.totalorder %s5851_s12, %s8912_s30 }
  0xa2   :  { %p5857_p10 = pnand %p5855_p9, %p5852_p8 }
  0xa4   :  { %5860 = shalt.err (!%p5857_p10)
}
  0xa5   :  { %s5861_s18 = scalar_lea.vmem %s43_s2, 192  ;;  %p5866_p12 = scmp.lt.s32.totalorder %s43_s2, %s43_s2 }
  0xa6   :  { %p5862_p11 = scmp.ne.s32.totalorder %s43_s2, %s5861_s18  ;;  %p5867_p13 = scmp.lt.s32.totalorder %s5861_s18, %s5861_s18 }
  0xa8   :  { %p5868_p0 = por %p5867_p13, %p5866_p12 }
  0xaa   :  { %p5869_p1 = pnand %p5868_p0, %p5862_p11 }
  0xac   :  { %5872 = shalt.err (!%p5869_p1)
}
  0xad   :  { %48 = dma.hbm_to_vmem [thread:$0]  %s8912_s30, 192, %s43_s2, [#allocation3], %s6156_s26, %s6156_s26, %s6157_s27  }
  0xae   :  { %s6168_s23 = smov [#allocation7]   ;;  %s6169_s8 = smov [#allocation10]  }
  0xaf   :  { %s66_s24 = sshll.u32 %s6168_s23, 4  ;;  %s90_s29 = sshll.u32 %s6169_s8, 4  ;;  %s67_s24 = int_to_ptr.vmem [resolvable:$true] %s66_s24  ;;  %s91_s29 = int_to_ptr.vmem [resolvable:$true] %s90_s29 }
  0xb0   :  { %s8913_s22 = sld [smem:[#allocation116_spill]] }
  0xb6   :  { %s5873_s6 = scalar_lea.hbm %s8913_s22, 12288 }
  0xb7   :  { %p5874_p2 = scmp.ne.s32.totalorder %s8913_s22, %s5873_s6  ;;  %p5877_p3 = scmp.lt.u32.totalorder %s5873_s6, %s8913_s22 }
  0xb9   :  { %p5879_p4 = pnand %p5877_p3, %p5874_p2 }
  0xbb   :  { %5882 = shalt.err (!%p5879_p4)
}
  0xbc   :  { %s5883_s2 = scalar_lea.vmem %s67_s24, 12288  ;;  %p5888_p6 = scmp.lt.s32.totalorder %s67_s24, %s67_s24 }
  0xbd   :  { %p5884_p5 = scmp.ne.s32.totalorder %s67_s24, %s5883_s2  ;;  %p5889_p7 = scmp.lt.s32.totalorder %s5883_s2, %s5883_s2 }
  0xbf   :  { %p5890_p8 = por %p5889_p7, %p5888_p6 }
  0xc1   :  { %p5891_p9 = pnand %p5890_p8, %p5884_p5 }
  0xc3   :  { %5894 = shalt.err (!%p5891_p9)
}
  0xc4   :  { %72 = dma.hbm_to_vmem [thread:$0]  %s8913_s22, 12288, %s67_s24, [#allocation6], %s6160_s1, %s6160_s1, %s6161_s28  }
  0xc5   :  { %s5895_s18 = scalar_lea.hbm %s8785_s5, 12288 }
  0xc6   :  { %p5896_p10 = scmp.ne.s32.totalorder %s8785_s5, %s5895_s18  ;;  %p5899_p11 = scmp.lt.u32.totalorder %s5895_s18, %s8785_s5 }
  0xc8   :  { %p5901_p12 = pnand %p5899_p11, %p5896_p10 }
  0xca   :  { %5904 = shalt.err (!%p5901_p12)
}
  0xcb   :  { %s5905_s25 = scalar_lea.vmem %s91_s29, 12288  ;;  %p5910_p0 = scmp.lt.s32.totalorder %s91_s29, %s91_s29 }
  0xcc   :  { %p5906_p13 = scmp.ne.s32.totalorder %s91_s29, %s5905_s25  ;;  %p5911_p1 = scmp.lt.s32.totalorder %s5905_s25, %s5905_s25 }
  0xce   :  { %p5912_p2 = por %p5911_p1, %p5910_p0 }
  0xd0   :  { %p5913_p3 = pnand %p5912_p2, %p5906_p13 }
  0xd2   :  { %5916 = shalt.err (!%p5913_p3)
}
  0xd3   :  { %96 = dma.hbm_to_vmem [thread:$0]  %s8785_s5, 12288, %s91_s29, [#allocation9], %s6160_s1, %s6160_s1, %s6161_s28  }
  0xd4   :  { %s6170_s22 = smov [#allocation13]   ;;  %s6171_s4 = smov [#allocation16]  }
  0xd5   :  { %s114_s6 = sshll.u32 %s6170_s22, 4  ;;  %s138_s20 = sshll.u32 %s6171_s4, 4  ;;  %s115_s6 = int_to_ptr.vmem [resolvable:$true] %s114_s6  ;;  %s139_s20 = int_to_ptr.vmem [resolvable:$true] %s138_s20 }
  0xd6   :  { %s5917_s2 = scalar_lea.hbm %s8787_s7, 192 }
  0xd7   :  { %p5918_p4 = scmp.ne.s32.totalorder %s8787_s7, %s5917_s2  ;;  %p5921_p5 = scmp.lt.u32.totalorder %s5917_s2, %s8787_s7 }
  0xd9   :  { %p5923_p6 = pnand %p5921_p5, %p5918_p4 }
  0xdb   :  { %5926 = shalt.err (!%p5923_p6)
}
  0xdc   :  { %s5927_s5 = scalar_lea.vmem %s115_s6, 192  ;;  %p5932_p8 = scmp.lt.s32.totalorder %s115_s6, %s115_s6 }
  0xdd   :  { %p5928_p7 = scmp.ne.s32.totalorder %s115_s6, %s5927_s5  ;;  %p5933_p9 = scmp.lt.s32.totalorder %s5927_s5, %s5927_s5 }
  0xdf   :  { %p5934_p10 = por %p5933_p9, %p5932_p8 }
  0xe1   :  { %p5935_p11 = pnand %p5934_p10, %p5928_p7 }
  0xe3   :  { %5938 = shalt.err (!%p5935_p11)
}
  0xe4   :  { %120 = dma.hbm_to_vmem [thread:$0]  %s8787_s7, 192, %s115_s6, [#allocation12], %s6156_s26, %s6156_s26, %s6157_s27  }
  0xe5   :  { %s5939_s23 = scalar_lea.hbm %s8789_s9, 12288 }
  0xe6   :  { %p5940_p12 = scmp.ne.s32.totalorder %s8789_s9, %s5939_s23  ;;  %p5943_p13 = scmp.lt.u32.totalorder %s5939_s23, %s8789_s9 }
  0xe8   :  { %p5945_p0 = pnand %p5943_p13, %p5940_p12 }
  0xea   :  { %5948 = shalt.err (!%p5945_p0)
}
  0xeb   :  { %s5949_s22 = scalar_lea.vmem %s139_s20, 12288  ;;  %p5954_p2 = scmp.lt.s32.totalorder %s139_s20, %s139_s20 }
  0xec   :  { %p5950_p1 = scmp.ne.s32.totalorder %s139_s20, %s5949_s22  ;;  %p5955_p3 = scmp.lt.s32.totalorder %s5949_s22, %s5949_s22 }
  0xee   :  { %p5956_p4 = por %p5955_p3, %p5954_p2 }
  0xf0   :  { %p5957_p5 = pnand %p5956_p4, %p5950_p1 }
  0xf2   :  { %5960 = shalt.err (!%p5957_p5)
}
  0xf3   :  { %144 = dma.hbm_to_vmem [thread:$0]  %s8789_s9, 12288, %s139_s20, [#allocation15], %s6160_s1, %s6160_s1, %s6161_s28  }
  0xf4   :  { %s6172_s4 = smov [#allocation19]   ;;  %s6173_s3 = smov [#allocation22]  }
  0xf5   :  { %s162_s12 = sshll.u32 %s6172_s4, 4  ;;  %s186_s2 = sshll.u32 %s6173_s3, 4  ;;  %s163_s12 = int_to_ptr.vmem [resolvable:$true] %s162_s12  ;;  %s187_s2 = int_to_ptr.vmem [resolvable:$true] %s186_s2 }
  0xf6   :  { %s5961_s21 = scalar_lea.hbm %s8791_s11, 192 }
  0xf7   :  { %p5962_p6 = scmp.ne.s32.totalorder %s8791_s11, %s5961_s21  ;;  %p5965_p7 = scmp.lt.u32.totalorder %s5961_s21, %s8791_s11 }
  0xf9   :  { %p5967_p8 = pnand %p5965_p7, %p5962_p6 }
  0xfb   :  { %5970 = shalt.err (!%p5967_p8)
}
  0xfc   :  { %s5971_s9 = scalar_lea.vmem %s163_s12, 192  ;;  %p5976_p10 = scmp.lt.s32.totalorder %s163_s12, %s163_s12 }
  0xfd   :  { %p5972_p9 = scmp.ne.s32.totalorder %s163_s12, %s5971_s9  ;;  %p5977_p11 = scmp.lt.s32.totalorder %s5971_s9, %s5971_s9 }
  0xff   :  { %p5978_p12 = por %p5977_p11, %p5976_p10 }
 0x101   :  { %p5979_p13 = pnand %p5978_p12, %p5972_p9 }
 0x103   :  { %5982 = shalt.err (!%p5979_p13)
}
 0x104   :  { %168 = dma.hbm_to_vmem [thread:$0]  %s8791_s11, 192, %s163_s12, [#allocation18], %s6156_s26, %s6156_s26, %s6157_s27  }
 0x105   :  { %s5983_s8 = scalar_lea.hbm %s8793_s13, 49152 }
 0x106   :  { %p5984_p0 = scmp.ne.s32.totalorder %s8793_s13, %s5983_s8  ;;  %p5987_p1 = scmp.lt.u32.totalorder %s5983_s8, %s8793_s13 }
 0x108   :  { %p5989_p2 = pnand %p5987_p1, %p5984_p0 }
 0x10a   :  { %5992 = shalt.err (!%p5989_p2)
}
 0x10b   :  { %s5993_s7 = scalar_lea.vmem %s187_s2, 49152  ;;  %p5998_p4 = scmp.lt.s32.totalorder %s187_s2, %s187_s2 }
 0x10c   :  { %p5994_p3 = scmp.ne.s32.totalorder %s187_s2, %s5993_s7  ;;  %p5999_p5 = scmp.lt.s32.totalorder %s5993_s7, %s5993_s7 }
 0x10e   :  { %p6000_p6 = por %p5999_p5, %p5998_p4 }
 0x110   :  { %p6001_p7 = pnand %p6000_p6, %p5994_p3 }
 0x112   :  { %6004 = shalt.err (!%p6001_p7)
}
 0x113   :  { %s6174_s11 = smov 256   ;;  %s6175_s4 = smov [#allocation25]  }
 0x114   :  { %192 = dma.hbm_to_vmem [thread:$0]  %s8793_s13, 49152, %s187_s2, [#allocation21], %s6174_s11, %s6174_s11, %s6156_s26  }
 0x115   :  { %s210_s12 = sshll.u32 %s6175_s4, 4  ;;  %s6176_s3 = smov [#allocation28]   ;;  %s211_s12 = int_to_ptr.vmem [resolvable:$true] %s210_s12 }
 0x116   :  { %s235_s30 = sshll.u32 %s6176_s3, 4  ;;  %s6005_s10 = scalar_lea.hbm %s8795_s15, 49152  ;;  %s236_s30 = int_to_ptr.vmem [resolvable:$true] %s235_s30 }
 0x117   :  { %p6006_p8 = scmp.ne.s32.totalorder %s8795_s15, %s6005_s10  ;;  %p6009_p9 = scmp.lt.u32.totalorder %s6005_s10, %s8795_s15 }
 0x119   :  { %p6011_p10 = pnand %p6009_p9, %p6006_p8 }
 0x11b   :  { %6014 = shalt.err (!%p6011_p10)
}
 0x11c   :  { %s6015_s13 = scalar_lea.vmem %s211_s12, 49152  ;;  %p6020_p12 = scmp.lt.s32.totalorder %s211_s12, %s211_s12 }
 0x11d   :  { %p6016_p11 = scmp.ne.s32.totalorder %s211_s12, %s6015_s13  ;;  %p6021_p13 = scmp.lt.s32.totalorder %s6015_s13, %s6015_s13 }
 0x11f   :  { %p6022_p0 = por %p6021_p13, %p6020_p12 }
 0x121   :  { %p6023_p1 = pnand %p6022_p0, %p6016_p11 }
 0x123   :  { %6026 = shalt.err (!%p6023_p1)
}
 0x124   :  { %216 = dma.hbm_to_vmem [thread:$0]  %s8795_s15, 49152, %s211_s12, [#allocation24], %s6160_s1, %s6160_s1, %s6161_s28  }
 0x125   :  { %s6027_s19 = scalar_lea.hbm %s8797_s17, 16 }
 0x126   :  { %p6028_p2 = scmp.ne.s32.totalorder %s8797_s17, %s6027_s19  ;;  %p6031_p3 = scmp.lt.u32.totalorder %s6027_s19, %s8797_s17 }
 0x128   :  { %p6033_p4 = pnand %p6031_p3, %p6028_p2 }
 0x12a   :  { %6036 = shalt.err (!%p6033_p4)
}
 0x12b   :  { %s6037_s14 = scalar_lea.vmem %s236_s30, 16  ;;  %s6041_s22 = scalar_lea.vmem %s236_s30, 32 }
 0x12c   :  { %p6038_p5 = scmp.ne.s32.totalorder %s236_s30, %s6037_s14  ;;  %p6042_p6 = scmp.lt.s32.totalorder %s236_s30, %s236_s30 }
 0x12d   :  { %p6043_p7 = scmp.lt.s32.totalorder %s6041_s22, %s6037_s14 }
 0x12f   :  { %p6044_p8 = por %p6043_p7, %p6042_p6 }
 0x131   :  { %p6045_p9 = pnand %p6044_p8, %p6038_p5 }
 0x133   :  { %6048 = shalt.err (!%p6045_p9)
}
 0x134   :  { %238 = dma.hbm_to_vmem [thread:$0]  %s8797_s17, 16, %s236_s30, [#allocation27]  }
 0x135   :  { %s6177_s28 = smov [#allocation29]   ;;  %s8914_s6 = sld [smem:[#allocation117_spill]] }
 0x136   :  { %s245_s7 = sshll.u32 %s6177_s28, 4  ;;  %s246_s7 = int_to_ptr.vmem [resolvable:$true] %s245_s7 }
 0x13b   :  { %s6049_s4 = scalar_lea.hbm %s8914_s6, 16 }
 0x13c   :  { %p6050_p10 = scmp.ne.s32.totalorder %s8914_s6, %s6049_s4  ;;  %p6053_p11 = scmp.lt.u32.totalorder %s6049_s4, %s8914_s6 }
 0x13e   :  { %p6055_p12 = pnand %p6053_p11, %p6050_p10 }
 0x140   :  { %6058 = shalt.err (!%p6055_p12)
}
 0x141   :  { %s6059_s10 = scalar_lea.vmem %s246_s7, 16  ;;  %s6063_s17 = scalar_lea.vmem %s246_s7, 32 }
 0x142   :  { %p6060_p13 = scmp.ne.s32.totalorder %s246_s7, %s6059_s10  ;;  %p6064_p0 = scmp.lt.s32.totalorder %s246_s7, %s246_s7 }
 0x143   :  { %p6065_p1 = scmp.lt.s32.totalorder %s6063_s17, %s6059_s10 }
 0x145   :  { %p6066_p2 = por %p6065_p1, %p6064_p0 }
 0x147   :  { %p6067_p3 = pnand %p6066_p2, %p6060_p13 }
 0x149   :  { %6070 = shalt.err (!%p6067_p3)
}
 0x14a   :  { %248 = dma.hbm_to_vmem [thread:$0]  %s8914_s6, 16, %s246_s7, [#allocation30]  }
 0x14b   :  { %6113 = dma.done.wait [#allocation3], 192  }
 0x14c   :  { %6114 = vsyncadd [#allocation3], 4294967104 }
 0x14d   :  { %6115 = dma.done.wait [#allocation6], 12480  }
 0x14e   :  { %6116 = vsyncadd [#allocation6], 4294954816 }
 0x14f   :  { %6117 = dma.done.wait [#allocation9], 24576  }
 0x150   :  { %6118 = vsyncadd [#allocation9], 4294942720 }
 0x151   :  { %6119 = dma.done.wait [#allocation12], 384  }
 0x152   :  { %6120 = vsyncadd [#allocation12], 4294966912 }
 0x153   :  { %6121 = dma.done.wait [#allocation15], 12480  }
 0x154   :  { %6122 = vsyncadd [#allocation15], 4294954816 }
 0x155   :  { %6123 = dma.done.wait [#allocation18], 384  }
 0x156   :  { %6124 = vsyncadd [#allocation18], 4294966912 }
 0x157   :  { %6125 = dma.done.wait [#allocation21], 49344  }
 0x158   :  { %6126 = vsyncadd [#allocation21], 4294917952 }
 0x159   :  { %6127 = dma.done.wait [#allocation24], 49920  }
 0x15a   :  { %6128 = vsyncadd [#allocation24], 4294917376 }
 0x15b   :  { %6129 = dma.done.wait [#allocation27], 208  }
 0x15c   :  { %6130 = vsyncadd [#allocation27], 4294967088 }
 0x15d   :  { %6131 = dma.done.wait [#allocation30], 16  }
 0x15e   :  { %6132 = vsyncadd [#allocation30], 4294967280  ;;  %v308_v0 = vlaneseq  ;;  %v6178_v4 = vmov -1e+30   ;;  %s8917_s9 = sld [smem:[#allocation113_spill]]  ;;  %s6580_s23 = smov 0  }
 0x160   :  { %v6552_v1 = vshrl.u32 %v308_v0, 7  ;;  %v312_v2 = vand.u32 127, %v308_v0 }
 0x162   :  { %8915 = vst [vmem:[#allocation43_spill] sm:$0xff] %v6552_v1  ;;  %v310_v3 = vadd.s32 8, %v6552_v1  ;;  %vm313_vm0 = vcmp.ge.s32.totalorder %v6552_v1, %v312_v2 }
 0x163   :  { %v6556_v5 = vsel %vm313_vm0, 0.0, %v6178_v4 }
 0x164   :  { %8916 = vst [vmem:[#allocation44_spill] sm:$0xff] %v6556_v5  ;;  %vm314_vm1 = vcmp.ge.s32.totalorder %v310_v3, %v312_v2  ;;  %v304_v6 = vld [vmem:[%s8917_s9] sm:$0xff]   ;;  %v305_v7 = vld [vmem:[%s8917_s9 + $0x8] sm:$0xff]   ;;  %v306_v8 = vld [vmem:[%s8917_s9 + $0x10] sm:$0xff]  }
 0x165   :  { %v6567_v9 = vsel %vm314_vm1, 0.0, %v6178_v4  ;;  %v307_v10 = vld [vmem:[%s8917_s9 + $0x18] sm:$0xff]  }
 0x166   :  { %8918 = vst [vmem:[#allocation45_spill] sm:$0xff] %v6567_v9 }
 0x167 LB: > { %8920 = vst [vmem:[#allocation46_spill] sm:$0xff] %v6137_v10  ;;  %8921 = vst [vmem:[#allocation47_spill] sm:$0xff] %v6141_v8  ;;  %331 = vadd.xlane.f32.xlu0 %v6149_v6  ;;  %335 = vadd.xlane.f32.xlu1 %v6141_v8  ;;  %s6602_s8 = sshll.u32 %s6153_s23, 6  ;;  %s327_s22 = scalar_lea.vmem [#allocation2], %s6153_s23  ;;  %vm1837_vm2 = vcmask 1041409   ;;  %vm1840_vm3 = vcmask 1042434   ;;  %v6137_v10 = vphi %v307_v10, %v9242_v10   ;;  %s6153_s23 = sphi %s6580_s23, %s322_s23   ;;  %v6149_v6 = vphi %v304_v6, %v9245_v6   ;;  %v6145_v7 = vphi %v305_v7, %v9244_v7   ;;  %v6141_v8 = vphi %v306_v8, %v9243_v8  }
 0x168   : > { %8922 = vst [vmem:[#allocation48_spill] sm:$0xff] %v6145_v7  ;;  %8923 = vst [vmem:[#allocation49_spill] sm:$0xff] %v6149_v6  ;;  %s6605_s25 = scalar_lea.vmem [#allocation7], %s6602_s8  ;;  %s6609_s24 = scalar_lea.vmem [#allocation8], %s6602_s8  ;;  %v4848_v58 = vld [vmem:[%s327_s22] ss:$0 sm:$0xff] }
 0x169   : > { %v8919_v1 = vld [vmem:[#allocation43_spill] sm:$0xff]  ;;  %v5413_v29 = vld [vmem:[%s6605_s25 + $0x8] sm:$0xff]   ;;  %v5415_v31 = vld [vmem:[%s6605_s25 + $0x10] sm:$0xff]   ;;  %s6647_s14 = scalar_lea.vmem [#allocation10], %s6602_s8  ;;  %s329_s15 = scalar_lea.vmem [#allocation5], %s6153_s23  ;;  %vm1843_vm4 = vcmask 1043459  }
 0x16a   : > { %v5411_v11 = vld [vmem:[%s6605_s25] sm:$0xff]   ;;  %v5414_v30 = vld [vmem:[%s6609_s24 + $0x8] sm:$0xff]   ;;  %v5416_v32 = vld [vmem:[%s6609_s24 + $0x10] sm:$0xff]   ;;  %s544_s1 = scalar_lea.vmem [#allocation13], %s6153_s23  ;;  %s6180_s28 = smov 96   ;;  %vm1846_vm5 = vcmask 1044484  }
 0x16b   : > { %333 = vadd.xlane.f32.xlu0 %v6145_v7  ;;  %337 = vadd.xlane.f32.xlu1 %v6137_v10  ;;  %v5412_v12 = vld [vmem:[%s6609_s24] sm:$0xff]   ;;  %v5417_v33 = vld [vmem:[%s6605_s25 + $0x18] sm:$0xff]   ;;  %v5421_v37 = vld [vmem:[%s6605_s25 + $0x28] sm:$0xff]   ;;  %s6181_s7 = smov 64   ;;  %s6182_s11 = smov 32   ;;  %vm1849_vm6 = vcmask 1045509  }
 0x16c   : > { %5130 = vmatprep.subr.bf16.mxu0 %v5411_v11  ;;  %5150 = vmatprep.subr.bf16.mxu1 %v5412_v12  ;;  %v5418_v34 = vld [vmem:[%s6609_s24 + $0x18] sm:$0xff]   ;;  %v5419_v35 = vld [vmem:[%s6605_s25 + $0x20] sm:$0xff]   ;;  %v5422_v38 = vld [vmem:[%s6609_s24 + $0x28] sm:$0xff]   ;;  %s417_s27 = scalar_lea.vmem [#allocation11], %s6153_s23  ;;  %s667_s6 = scalar_lea.vmem [#allocation14], %s6153_s23  ;;  %vm1852_vm7 = vcmask 1046534  }
 0x16d   : > { %5131 = vmatpush3.bf16.msra.mxu0 %v5411_v11  ;;  %5151 = vmatpush3.bf16.msra.mxu1 %v5412_v12  ;;  %v5420_v36 = vld [vmem:[%s6609_s24 + $0x20] sm:$0xff]   ;;  %v5423_v39 = vld [vmem:[%s6605_s25 + $0x30] sm:$0xff]   ;;  %v5425_v41 = vld [vmem:[%s6605_s25 + $0x38] sm:$0xff]   ;;  %vm1855_vm8 = vcmask 1047559   ;;  %vm1933_vm9 = vcmask 261120   ;;  %vm6185_vm10 = vmmov 0  }
 0x16e   : > { %5132 = vmatprep.subr.bf16.mxu0 %v5413_v29  ;;  %5152 = vmatprep.subr.bf16.mxu1 %v5414_v30  ;;  %v5424_v40 = vld [vmem:[%s6609_s24 + $0x30] sm:$0xff]   ;;  %v5426_v42 = vld [vmem:[%s6609_s24 + $0x38] sm:$0xff]   ;;  %v5427_v43 = vld [vmem:[%s6647_s14] sm:$0xff]   ;;  %vm2150_vm11 = vcmask 130048   ;;  %vm3673_vm12 = vcmask 523264   ;;  %s8528_s4 = scalar_lea.vmem [#allocation16], %s6602_s8 }
 0x16f   : > { %v4849_v0 = vld [vmem:[%s329_s15] ss:$0 sm:$0xff]  ;;  %vm3678_vm13 = vcmask 785408   ;;  %s3703_s12 = scalar_lea.vmem [#allocation17], %s6153_s23  ;;  %s5000_s3 = sshll.u32 %s6153_s23, 8 }
 0x170   : > { %s8567_s0 = scalar_lea.vmem [#allocation22], %s5000_s3  ;;  %s8577_s21 = scalar_lea.vmem [#allocation25], %s5000_s3 }
 0x171   : > { %5133 = vmatpush3.bf16.msra.mxu0 %v5413_v29  ;;  %5153 = vmatpush3.bf16.msra.mxu1 %v5414_v30  ;;  %s3812_s10 = scalar_lea.vmem [#allocation19], %s6153_s23  ;;  %s3814_s17 = scalar_lea.vmem [#allocation20], %s6153_s23 }
 0x172   : > { %5134 = vmatprep.subr.bf16.mxu0 %v5415_v31  ;;  %5154 = vmatprep.subr.bf16.mxu1 %v5416_v32  ;;  %s4911_s30 = sshll.u32 %s6153_s23, 2  ;;  %s4409_s29 = scalar_lea.vmem [#allocation26], %s6153_s23 }
 0x173   : > { %s3918_s5 = scalar_lea.vmem [#allocation23], %s4911_s30  ;;  %s322_s23 = sadd.s32 1, %s6153_s23  }
 0x174   : > { %p319_p4 = scmp.ge.s32.totalorder %s322_s23, 12  }
 0x175   : > { %5135 = vmatpush3.bf16.msra.mxu0 %v5415_v31  ;;  %5155 = vmatpush3.bf16.msra.mxu1 %v5416_v32  ;;  %s6187_s18 = smov (%p319_p4), [#allocation31]  }
 0x176   : > { %5136 = vmatprep.subr.bf16.mxu0 %v5417_v33  ;;  %5156 = vmatprep.subr.bf16.mxu1 %v5418_v34  ;;  %s4787_s9 = sshll.u32 (%p319_p4), %s6187_s18, 4  ;;  %s4788_s9 = int_to_ptr.vmem [resolvable:$true] %s4787_s9 }
 0x177   :  { %s6071_s13 = scalar_lea.vmem (%p319_p4), %s4788_s9, 512  ;;  %p6076_p6 = scmp.lt.s32.totalorder (%p319_p4), %s4788_s9, %s4788_s9 }
 0x178   :  { %p6072_p5 = scmp.ne.s32.totalorder (%p319_p4), %s4788_s9, %s6071_s13  ;;  %p6077_p7 = scmp.lt.s32.totalorder (%p319_p4), %s6071_s13, %s6071_s13 }
 0x179   : > { %5137 = vmatpush3.bf16.msra.mxu0 %v5417_v33  ;;  %5157 = vmatpush3.bf16.msra.mxu1 %v5418_v34 }
 0x17a   : > { %5138 = vmatprep.subr.bf16.mxu0 %v5419_v35  ;;  %5158 = vmatprep.subr.bf16.mxu1 %v5420_v36  ;;  %p6078_p8 = por (%p319_p4), %p6077_p7, %p6076_p6 }
 0x17c   :  { %p6079_p9 = pnand (%p319_p4), %p6078_p8, %p6072_p5 }
 0x17d   : > { %5139 = vmatpush3.bf16.msra.mxu0 %v5419_v35  ;;  %5159 = vmatpush3.bf16.msra.mxu1 %v5420_v36 }
 0x17e   : > { %5140 = vmatprep.subr.bf16.mxu0 %v5421_v37  ;;  %5160 = vmatprep.subr.bf16.mxu1 %v5422_v38 }
 0x181   : > { %5141 = vmatpush3.bf16.msra.mxu0 %v5421_v37  ;;  %5161 = vmatpush3.bf16.msra.mxu1 %v5422_v38 }
 0x182   : > { %5142 = vmatprep.subr.bf16.mxu0 %v5423_v39  ;;  %5162 = vmatprep.subr.bf16.mxu1 %v5424_v40 }
 0x185   : > { %5143 = vmatpush3.bf16.msra.mxu0 %v5423_v39  ;;  %5163 = vmatpush3.bf16.msra.mxu1 %v5424_v40  ;;  %v4852_v39 = vld [vmem:[%s417_s27] ss:$0 sm:$0xff] }
 0x186   : > { %5144 = vmatprep.subr.bf16.mxu0 %v5425_v41  ;;  %5164 = vmatprep.subr.bf16.mxu1 %v5426_v42 }
 0x189   : > { %5145 = vmatpush3.bf16.msra.mxu0 %v5425_v41  ;;  %5165 = vmatpush3.bf16.msra.mxu1 %v5426_v42 }
 0x18a   : > { %5170 = vmatprep.subr.bf16.mxu0 %v5427_v43 }
 0x1f4   : > { %v332_v13 = vpop.xlane.xlu0 %331  ;;  %v336_v14 = vpop.xlane.xlu1 %335 }
 0x1f5   : > { %v340_v15 = vmul.f32 0.0078125, %v332_v13  ;;  %v342_v16 = vmul.f32 0.0078125, %v336_v14 }
 0x1f7   : > { %v6613_v17 = vsub.f32 %v6149_v6, %v340_v15  ;;  %v6616_v18 = vsub.f32 %v6141_v8, %v342_v16 }
 0x1f8   : > { %v334_v19 = vpop.xlane.xlu0 %333  ;;  %v338_v20 = vpop.xlane.xlu1 %337 }
 0x1f9   : > { %v341_v21 = vmul.f32 0.0078125, %v334_v19  ;;  %v348_v22 = vmul.f32 %v6613_v17, %v6613_v17  ;;  %v343_v23 = vmul.f32 0.0078125, %v338_v20  ;;  %v350_v26 = vmul.f32 %v6616_v18, %v6616_v18  ;;  %v5428_v19 = vld [vmem:[%s6647_s14 + $0x8] sm:$0xff]   ;;  %v5429_v20 = vld [vmem:[%s6647_s14 + $0x10] sm:$0xff]  }
 0x1fb   : > { %v6621_v24 = vsub.f32 %v6145_v7, %v341_v21  ;;  %352 = vadd.xlane.f32.xlu0 %v348_v22  ;;  %v6624_v25 = vsub.f32 %v6137_v10, %v343_v23  ;;  %v5430_v21 = vld [vmem:[%s6647_s14 + $0x18] sm:$0xff]   ;;  %v5431_v22 = vld [vmem:[%s6647_s14 + $0x20] sm:$0xff]   ;;  %v5432_v23 = vld [vmem:[%s6647_s14 + $0x28] sm:$0xff]  }
 0x1fd   : > { %v349_v27 = vmul.f32 %v6621_v24, %v6621_v24  ;;  %v351_v28 = vmul.f32 %v6624_v25, %v6624_v25 }
 0x1ff   : > { %356 = vadd.xlane.f32.xlu0 %v350_v26  ;;  %354 = vadd.xlane.f32.xlu1 %v349_v27  ;;  %v8809_v26 = vmov 0.0   ;;  %v4862_v27 = vld [vmem:[%s544_s1] ss:$0 sm:$0xff] }
 0x200   : > { %5190 = vmatprep.subr.bf16.mxu1 %v8809_v26 }
 0x203   : > { %358 = vadd.xlane.f32.xlu1 %v351_v28 }
 0x288   : > { %v353_v44 = vpop.xlane.xlu0 %352 }
 0x289   : > { %v360_v45 = vmul.f32 0.0078125, %v353_v44 }
 0x28b   : > { %v364_v46 = vadd.f32 1e-05, %v360_v45 }
 0x28c   : > { %v357_v47 = vpop.xlane.xlu0 %356  ;;  %v355_v48 = vpop.xlane.xlu1 %354 }
 0x28d   : > { %5523 = vrsqrt.f32 %v364_v46  ;;  %v362_v49 = vmul.f32 0.0078125, %v357_v47  ;;  %v361_v50 = vmul.f32 0.0078125, %v355_v48 }
 0x28f   : > { %v366_v51 = vadd.f32 1e-05, %v362_v49  ;;  %v365_v52 = vadd.f32 1e-05, %v361_v50 }
 0x290   : > { %v359_v53 = vpop.xlane.xlu1 %358 }
 0x291   : > { %5525 = vrsqrt.f32 %v366_v51  ;;  %v363_v54 = vmul.f32 0.0078125, %v359_v53  ;;  %v4872_v53 = vld [vmem:[%s667_s6] ss:$0 sm:$0xff] }
 0x292   : > { %5527 = vrsqrt.f32 %v365_v52 }
 0x293   : > { %v367_v55 = vadd.f32 1e-05, %v363_v54 }
 0x295   : > { %5529 = vrsqrt.f32 %v367_v55 }
 0x297   : > { %v5524_v56 = vpop.eup %5523 }
 0x298   : > { %v372_v57 = vmul.f32 %v5524_v56, %v6613_v17 }
 0x29a   : > { %v382_v63 = vmul.f32 %v4848_v58, %v372_v57 }
 0x29b   : > { %v5526_v59 = vpop.eup %5525 }
 0x29c   : > { %v5528_v60 = vpop.eup %5527  ;;  %v374_v61 = vmul.f32 %v5526_v59, %v6616_v18  ;;  %v392_v12 = vadd.f32 %v4849_v0, %v382_v63  ;;  %v6183_v59 = vmov 1983009808  }
 0x29d   : > { %v373_v62 = vmul.f32 %v5528_v60, %v6621_v24  ;;  %v5433_v24 = vld [vmem:[%s6647_s14 + $0x30] sm:$0xff]   ;;  %v815_v60 = vunpack.c.l.s4 %v6183_v59 }
 0x29e   : > { %v384_v11 = vmul.f32 %v4848_v58, %v374_v61 }
 0x29f   : > { %v5530_v2 = vpop.eup %5529  ;;  %v383_v3 = vmul.f32 %v4848_v58, %v373_v62  ;;  %v6184_v62 = vmov 1934713408  }
 0x2a0   : > { %v375_v4 = vmul.f32 %v5530_v2, %v6624_v25  ;;  %v394_v16 = vadd.f32 %v4849_v0, %v384_v11  ;;  %v5434_v25 = vld [vmem:[%s6647_s14 + $0x38] sm:$0xff]   ;;  %v847_v63 = vunpack.c.l.s4 %v6184_v62  ;;  %v816_v2 = vunpack.c.0.s8 %v815_v60 }
 0x2a1   : > { %v393_v13 = vadd.f32 %v4849_v0, %v383_v3 }
 0x2a2   : > { %v385_v14 = vmul.f32 %v4848_v58, %v375_v4  ;;  %v848_v4 = vunpack.c.0.s8 %v847_v63 }
 0x2a3   : > { %v396_v15 = vpack.c.bf16 %v393_v13, %v392_v12 }
 0x2a4   : > { %v395_v17 = vadd.f32 %v4849_v0, %v385_v14  ;;  %v6759_v14 = vsub.s32 %v816_v2, %v8919_v1 }
 0x2a5   : > { %5146 = vmatprep.mubr.bf16.mxu0 %v396_v15  ;;  %5166 = vmatprep.mubr.bf16.mxu1 %v396_v15 }
 0x2a6   : > { %v397_v18 = vpack.c.bf16 %v395_v17, %v394_v16  ;;  %8926 = vst [vmem:[#allocation52_spill] sm:$0xff] %v6759_v14 }
 0x2a8   : > { %5147 = vmatmul.mubr.bf16.vlgmr.msra.gmra.mrb[0].mxu0 %v397_v18  ;;  %5167 = vmatmul.mubr.bf16.vlgmr.msra.gmra.mrb[0].mxu1 %v397_v18 }
 0x2a9   : > { %5171 = vmatpush3.bf16.msra.mxu0 %v5427_v43  ;;  %5186 = vmatprep.mubr.bf16.mxu0 %v396_v15 }
 0x2aa   : > { %5172 = vmatprep.subr.bf16.mxu0 %v5428_v19 }
 0x2ad   : > { %5173 = vmatpush3.bf16.msra.mxu0 %v5428_v19  ;;  %v6763_v19 = vsub.s32 %v848_v4, %v8919_v1 }
 0x2ae   : > { %5174 = vmatprep.subr.bf16.mxu0 %v5429_v20 }
 0x2af   : > { %8927 = vst [vmem:[#allocation53_spill] sm:$0xff] %v6763_v19 }
 0x2b1   : > { %5175 = vmatpush3.bf16.msra.mxu0 %v5429_v20 }
 0x2b2   : > { %5176 = vmatprep.subr.bf16.mxu0 %v5430_v21 }
 0x2b5   : > { %5177 = vmatpush3.bf16.msra.mxu0 %v5430_v21 }
 0x2b6   : > { %5178 = vmatprep.subr.bf16.mxu0 %v5431_v22 }
 0x2b9   : > { %5179 = vmatpush3.bf16.msra.mxu0 %v5431_v22 }
 0x2ba   : > { %5180 = vmatprep.subr.bf16.mxu0 %v5432_v23 }
 0x2bd   : > { %5181 = vmatpush3.bf16.msra.mxu0 %v5432_v23 }
 0x2be   : > { %5182 = vmatprep.subr.bf16.mxu0 %v5433_v24 }
 0x2c1   : > { %5183 = vmatpush3.bf16.msra.mxu0 %v5433_v24 }
 0x2c2   : > { %5184 = vmatprep.subr.bf16.mxu0 %v5434_v25 }
 0x2c5   : > { %5185 = vmatpush3.bf16.msra.mxu0 %v5434_v25 }
 0x2c6   : > { %5238 = vmatprep.subr.bf16.mxu0 %v8809_v26 }
 0x2c8   : > { %5187 = vmatmul.mubr.bf16.vlgmr.msra.gmra.mrb[4].mxu0 %v397_v18 }
 0x37b   : > { %v5148_v28 = vpop.f32.mrb[0].mxu0  ;;  %v5168_v29 = vpop.f32.mrb[0].mxu1 }
 0x37c   : > { %v6666_v30 = vadd.f32 %v5168_v29, %v4862_v27  ;;  %v507_v31 = vpop.f32.mrb[1].mxu0  ;;  %v634_v32 = vpop.f32.mrb[1].mxu1  ;;  %v516_v40 = vadd.f32 %v5148_v28, %v4852_v39 }
 0x37d   : > { %v6668_v33 = vadd.f32 %v4862_v27, %v634_v32  ;;  %v5149_v34 = vpop.f32.mrb[2].mxu0  ;;  %v5169_v35 = vpop.f32.mrb[2].mxu1  ;;  %v508_v43 = vadd.f32 %v4852_v39, %v507_v31 }
 0x37e   : > { %1124 = vrot.lane.b32.xlu0 %v6666_v30, %s6180_s28  ;;  %v510_v36 = vpop.f32.mrb[3].mxu0  ;;  %v637_v37 = vpop.f32.mrb[3].mxu1  ;;  %v6674_v38 = vadd.f32 %v5169_v35, %v4862_v27  ;;  %v6695_v42 = vmul.f32 0.17677669, %v516_v40  ;;  %v519_v45 = vadd.f32 %v5149_v34, %v4852_v39 }
 0x37f   : > { %1132 = vrot.lane.b32.xlu1 %v6668_v33, %s6181_s7  ;;  %v6689_v41 = vadd.f32 %v4862_v27, %v637_v37  ;;  %v6701_v44 = vmul.f32 0.17677669, %v508_v43  ;;  %v511_v47 = vadd.f32 %v4852_v39, %v510_v36 }
 0x380   : > { %v6707_v46 = vmul.f32 0.17677669, %v519_v45 }
 0x381   : > { %v6713_v50 = vmul.f32 0.17677669, %v511_v47 }
 0x382   : > { %1136 = vrot.lane.b32.xlu0 %v6666_v30, %s6181_s7 }
 0x383   : > { %1126 = vrot.lane.b32.xlu1 %v6674_v38, %s6180_s28 }
 0x386   : > { %1148 = vrot.lane.b32.xlu0 %v6666_v30, %s6182_s11 }
 0x387   : > { %1138 = vrot.lane.b32.xlu1 %v6674_v38, %s6181_s7 }
 0x38a   : > { %1120 = vrot.lane.b32.xlu0 %v6668_v33, %s6180_s28 }
 0x38b   : > { %1150 = vrot.lane.b32.xlu1 %v6674_v38, %s6182_s11 }
 0x38e   : > { %1144 = vrot.lane.b32.xlu0 %v6668_v33, %s6182_s11 }
 0x38f   : > { %1122 = vrot.lane.b32.xlu1 %v6689_v41, %s6180_s28 }
 0x392   : > { %780 = vrot.lane.b32.xlu0 %v6695_v42, %s6180_s28 }
 0x393   : > { %1134 = vrot.lane.b32.xlu1 %v6689_v41, %s6181_s7 }
 0x396   : > { %776 = vrot.lane.b32.xlu0 %v6701_v44, %s6180_s28 }
 0x397   : > { %1146 = vrot.lane.b32.xlu1 %v6689_v41, %s6182_s11 }
 0x39a   : > { %788 = vrot.lane.b32.xlu0 %v6701_v44, %s6181_s7 }
 0x39b   : > { %v5188_v48 = vpop.f32.mrb[4].mxu0  ;;  %782 = vrot.lane.b32.xlu1 %v6707_v46, %s6180_s28 }
 0x39c   : > { %v757_v49 = vpop.f32.mrb[5].mxu0  ;;  %v6728_v54 = vadd.f32 %v5188_v48, %v4872_v53 }
 0x39d   : > { %v5189_v51 = vpop.f32.mrb[6].mxu0  ;;  %v6734_v55 = vadd.f32 %v4872_v53, %v757_v49 }
 0x39e   : > { %v760_v52 = vpop.f32.mrb[7].mxu0  ;;  %800 = vrot.lane.b32.xlu0 %v6701_v44, %s6182_s11  ;;  %8924 = vst [vmem:[#allocation50_spill] sm:$0xff] %v6728_v54  ;;  %v6744_v56 = vadd.f32 %v5189_v51, %v4872_v53 }
 0x39f   : > { %778 = vrot.lane.b32.xlu1 %v6713_v50, %s6180_s28  ;;  %v6748_v57 = vadd.f32 %v4872_v53, %v760_v52 }
 0x3a0   : > { %8925 = vst [vmem:[#allocation51_spill] sm:$0xff] %v6744_v56 }
 0x3a2   : > { %792 = vrot.lane.b32.xlu0 %v6695_v42, %s6181_s7 }
 0x3a3   : > { %790 = vrot.lane.b32.xlu1 %v6713_v50, %s6181_s7 }
 0x3a6   : > { %804 = vrot.lane.b32.xlu0 %v6695_v42, %s6182_s11 }
 0x3a7   : > { %802 = vrot.lane.b32.xlu1 %v6713_v50, %s6182_s11 }
 0x3aa   : > { %1468 = vrot.lane.b32.xlu0 %v6728_v54, %s6180_s28 }
 0x3ab   : > { %794 = vrot.lane.b32.xlu1 %v6707_v46, %s6181_s7 }
 0x3ae   : > { %1464 = vrot.lane.b32.xlu0 %v6734_v55, %s6180_s28 }
 0x3af   : > { %806 = vrot.lane.b32.xlu1 %v6707_v46, %s6182_s11 }
 0x3b2   : > { %1488 = vrot.lane.b32.xlu0 %v6734_v55, %s6182_s11 }
 0x3b3   : > { %1476 = vrot.lane.b32.xlu1 %v6734_v55, %s6181_s7 }
 0x3b7   : > { %1470 = vrot.lane.b32.xlu1 %v6744_v56, %s6180_s28 }
 0x3bb   : > { %1466 = vrot.lane.b32.xlu1 %v6748_v57, %s6180_s28 }
 0x3bf   : > { %1478 = vrot.lane.b32.xlu1 %v6748_v57, %s6181_s7 }
 0x3c3   : > { %1490 = vrot.lane.b32.xlu1 %v6748_v57, %s6182_s11 }
 0x3f0   : > { %v1125_v58 = vpop.permute.xlu0 %1124 }
 0x3f1   : > { %v1133_v61 = vpop.permute.xlu1 %1132 }
 0x3f2   : > { %v1156_v18 = vcombine.low %v6668_v33, %v1133_v61 }
 0x3f4   : > { %v1137_v0 = vpop.permute.xlu0 %1136  ;;  %v6771_v31 = vrot.slane %v1156_v18, %v6759_v14 }
 0x3f5   : > { %v1127_v3 = vpop.permute.xlu1 %1126  ;;  %v1292_v11 = vcombine.low %v6666_v30, %v1137_v0  ;;  %v1293_v12 = vcombine.high %v6666_v30, %v1137_v0  ;;  %v1157_v30 = vcombine.high %v6668_v33, %v1133_v61 }
 0x3f7   : > { %v1300_v20 = vrot.slane %v1292_v11, %v6759_v14  ;;  %v1307_v21 = vrot.slane %v1293_v12, %v6759_v14 }
 0x3f8   : > { %v1149_v13 = vpop.permute.xlu0 %1148 }
 0x3f9   : > { %v1308_v15 = vcombine.low %v1125_v58, %v1149_v13  ;;  %v1309_v16 = vcombine.high %v1125_v58, %v1149_v13  ;;  %v1139_v17 = vpop.permute.xlu1 %1138 }
 0x3fa   : > { %v1360_v39 = vcombine.low %v6674_v38, %v1139_v17  ;;  %v1361_v40 = vcombine.high %v6674_v38, %v1139_v17  ;;  %v6786_v38 = vrot.slane %v1157_v30, %v6759_v14 }
 0x3fb   : > { %v1316_v22 = vrot.slane %v1308_v15, %v6759_v14  ;;  %v1323_v23 = vrot.slane %v1309_v16, %v6759_v14 }
 0x3fc   : > { %v6777_v37 = vpop.permute.xlu0 %1120  ;;  %v1368_v2 = vrot.slane %v1360_v39, %v6759_v14  ;;  %v1375_v11 = vrot.slane %v1361_v40, %v6759_v14 }
 0x3fd   : > { %v1324_v24 = vcombine.low %v1300_v20, %v1316_v22  ;;  %v1325_v25 = vcombine.high %v1300_v20, %v1316_v22  ;;  %v1340_v27 = vcombine.low %v1307_v21, %v1323_v23  ;;  %v1341_v28 = vcombine.high %v1307_v21, %v1323_v23  ;;  %v1151_v29 = vpop.permute.xlu1 %1150 }
 0x3fe   : > { %v1376_v43 = vcombine.low %v1127_v3, %v1151_v29  ;;  %v1377_v33 = vcombine.high %v1127_v3, %v1151_v29 }
 0x3ff   : > { %v1332_v32 = vrot.slane %v1324_v24, %v6763_v19  ;;  %v1339_v34 = vrot.slane %v1325_v25, %v6763_v19  ;;  %v1348_v35 = vrot.slane %v1340_v27, %v6763_v19  ;;  %v1355_v36 = vrot.slane %v1341_v28, %v6763_v19 }
 0x400   : > { %v1384_v12 = vrot.slane %v1376_v43, %v6759_v14  ;;  %v1145_v13 = vpop.permute.xlu0 %1144  ;;  %v1391_v18 = vrot.slane %v1377_v33, %v6759_v14 }
 0x401   : > { %v1356_v45 = vcombine.high %v1332_v32, %v8809_v26  ;;  %v1357_v47 = vcombine.high %v1339_v34, %v8809_v26  ;;  %v1358_v48 = vcombine.high %v1348_v35, %v8809_v26  ;;  %v1359_v49 = vcombine.high %v1355_v36, %v8809_v26  ;;  %v6811_v24 = vpop.permute.xlu1 %1122 }
 0x402   : > { %v1444_v51 = vpack.c.bf16 %v1332_v32, %v1332_v32  ;;  %v1446_v52 = vpack.c.bf16 %v1339_v34, %v1339_v34  ;;  %v1448_v53 = vpack.c.bf16 %v1348_v35, %v1348_v35  ;;  %v1450_v58 = vpack.c.bf16 %v1355_v36, %v1355_v36 }
 0x403   : > { %v1445_v59 = vpack.c.bf16 %v1356_v45, %v1356_v45  ;;  %v1447_v60 = vpack.c.bf16 %v1357_v47, %v1357_v47  ;;  %v1449_v61 = vpack.c.bf16 %v1358_v48, %v1358_v48  ;;  %v1451_v62 = vpack.c.bf16 %v1359_v49, %v1359_v49 }
 0x404   : > { %v6788_v63 = vunpack.c.l.b16 %v1444_v51  ;;  %v6790_v0 = vunpack.c.l.b16 %v1446_v52  ;;  %v6799_v15 = vunpack.c.l.b16 %v1448_v53  ;;  %v6801_v16 = vunpack.c.l.b16 %v1450_v58  ;;  %v6831_v49 = vpop.permute.xlu0 %780 }
 0x405   : > { %v6793_v3 = vunpack.c.l.b16 %v1445_v59  ;;  %v6795_v4 = vunpack.c.l.b16 %v1447_v60  ;;  %v6805_v20 = vunpack.c.l.b16 %v1449_v61  ;;  %v6807_v21 = vunpack.c.l.b16 %v1451_v62 }
 0x406   : > { %8928 = vst [vmem:[#allocation54_spill] sm:$0xff] %v6788_v63  ;;  %8929 = vst [vmem:[#allocation55_spill] sm:$0xff] %v6790_v0  ;;  %v2543_v17 = vrot.slane %v6788_v63, 1  ;;  %v1392_v34 = vcombine.low %v1368_v2, %v1384_v12  ;;  %v1393_v35 = vcombine.high %v1368_v2, %v1384_v12  ;;  %v1408_v40 = vcombine.low %v1375_v11, %v1391_v18  ;;  %v6839_v2 = vpop.permute.xlu1 %1134 }
 0x407   : > { %8930 = vst [vmem:[#allocation56_spill] sm:$0xff] %v6793_v3  ;;  %8931 = vst [vmem:[#allocation57_spill] sm:$0xff] %v6795_v4  ;;  %v2074_v22 = vrot.slane %v6793_v3, 7  ;;  %v1409_v43 = vcombine.high %v1375_v11, %v1391_v18  ;;  %v1172_v53 = vcombine.low %v6777_v37, %v1145_v13  ;;  %v1173_v58 = vcombine.high %v6777_v37, %v1145_v13 }
 0x408   : > { %8932 = vst [vmem:[#allocation58_spill] sm:$0xff] %v6799_v15  ;;  %8933 = vst [vmem:[#allocation59_spill] sm:$0xff] %v6801_v16  ;;  %v6816_v27 = vsel %vm1837_vm2, %v6793_v3, %v2543_v17  ;;  %v1400_v47 = vrot.slane %v1392_v34, %v6763_v19  ;;  %v1407_v48 = vrot.slane %v1393_v35, %v6763_v19 }
 0x409   : > { %8934 = vst [vmem:[#allocation60_spill] sm:$0xff] %v6805_v20  ;;  %8935 = vst [vmem:[#allocation61_spill] sm:$0xff] %v6807_v21  ;;  %v6826_v33 = vsel %vm1837_vm2, %v2074_v22, %v6788_v63  ;;  %v1416_v51 = vrot.slane %v1408_v40, %v6763_v19  ;;  %v1423_v52 = vrot.slane %v1409_v43, %v6763_v19 }
 0x40a   : > { %8936 = vst [vmem:[#allocation62_spill] sm:$0xff] %v6816_v27  ;;  %v1424_v59 = vcombine.high %v1400_v47, %v8809_v26  ;;  %v1425_v60 = vcombine.high %v1407_v48, %v8809_v26  ;;  %v1452_v61 = vpack.c.bf16 %v1400_v47, %v1400_v47  ;;  %v1454_v62 = vpack.c.bf16 %v1407_v48, %v1407_v48 }
 0x40b   : > { %v1426_v11 = vcombine.high %v1416_v51, %v8809_v26  ;;  %v1427_v12 = vcombine.high %v1423_v52, %v8809_v26  ;;  %v1456_v17 = vpack.c.bf16 %v1416_v51, %v1416_v51  ;;  %v1458_v18 = vpack.c.bf16 %v1423_v52, %v1423_v52 }
 0x40c   : > { %v1453_v22 = vpack.c.bf16 %v1424_v59, %v1424_v59  ;;  %v1455_v34 = vpack.c.bf16 %v1425_v60, %v1425_v60  ;;  %v6843_v35 = vunpack.c.l.b16 %v1452_v61  ;;  %v6845_v40 = vunpack.c.l.b16 %v1454_v62  ;;  %v6856_v59 = vpop.permute.xlu0 %776 }
 0x40d   : > { %v1457_v13 = vpack.c.bf16 %v1426_v11, %v1426_v11  ;;  %v1459_v43 = vpack.c.bf16 %v1427_v12, %v1427_v12  ;;  %v1224_v47 = vcombine.low %v6689_v41, %v6839_v2  ;;  %v1180_v52 = vrot.slane %v1172_v53, %v6759_v14 }
 0x40e   : > { %8937 = vst [vmem:[#allocation63_spill] sm:$0xff] %v6843_v35  ;;  %8938 = vst [vmem:[#allocation64_spill] sm:$0xff] %v6845_v40  ;;  %v6850_v48 = vunpack.c.l.b16 %v1453_v22  ;;  %v6852_v45 = vunpack.c.l.b16 %v1455_v34  ;;  %v2557_v51 = vrot.slane %v6843_v35, 1  ;;  %v6858_v60 = vunpack.c.l.b16 %v1456_v17 }
 0x40f   : > { %v6860_v61 = vunpack.c.l.b16 %v1458_v18  ;;  %v1187_v62 = vrot.slane %v1173_v58, %v6759_v14  ;;  %v1225_v11 = vcombine.high %v6689_v41, %v6839_v2  ;;  %v6865_v12 = vunpack.c.l.b16 %v1457_v13  ;;  %v1147_v58 = vpop.permute.xlu1 %1146 }
 0x410   : > { %8939 = vst [vmem:[#allocation65_spill] sm:$0xff] %v6850_v48  ;;  %8940 = vst [vmem:[#allocation66_spill] sm:$0xff] %v6852_v45  ;;  %v2088_v22 = vrot.slane %v6850_v48, 7  ;;  %v6871_v53 = vsel %vm1837_vm2, %v6850_v48, %v2557_v51  ;;  %v6873_v37 = vunpack.c.l.b16 %v1459_v43  ;;  %v1188_v13 = vcombine.low %v6771_v31, %v1180_v52  ;;  %v789_v18 = vpop.permute.xlu0 %788 }
 0x411   : > { %8941 = vst [vmem:[#allocation67_spill] sm:$0xff] %v6858_v60  ;;  %8942 = vst [vmem:[#allocation68_spill] sm:$0xff] %v6860_v61  ;;  %v1189_v39 = vcombine.high %v6771_v31, %v1180_v52  ;;  %v1204_v43 = vcombine.low %v6786_v38, %v1187_v62  ;;  %v1205_v32 = vcombine.high %v6786_v38, %v1187_v62 }
 0x412   : > { %8943 = vst [vmem:[#allocation69_spill] sm:$0xff] %v6865_v12  ;;  %8944 = vst [vmem:[#allocation70_spill] sm:$0xff] %v6871_v53  ;;  %v6888_v29 = vsel %vm1837_vm2, %v2088_v22, %v6843_v35  ;;  %v1196_v2 = vrot.slane %v1188_v13, %v6763_v19  ;;  %v1232_v36 = vrot.slane %v1224_v47, %v6759_v14 }
 0x413   : > { %8945 = vst [vmem:[#allocation71_spill] sm:$0xff] %v6873_v37  ;;  %8946 = vst [vmem:[#allocation72_spill] sm:$0xff] %v6888_v29  ;;  %v1203_v41 = vrot.slane %v1189_v39, %v6763_v19  ;;  %v1212_v52 = vrot.slane %v1204_v43, %v6763_v19  ;;  %v1219_v51 = vrot.slane %v1205_v32, %v6763_v19  ;;  %v6940_v7 = vpop.permute.xlu1 %782 }
 0x414   : > { %v1220_v38 = vcombine.high %v1196_v2, %v8809_v26  ;;  %v1428_v22 = vpack.c.bf16 %v1196_v2, %v1196_v2  ;;  %v1239_v23 = vrot.slane %v1225_v11, %v6759_v14  ;;  %v1240_v2 = vcombine.low %v6811_v24, %v1147_v58 }
 0x415   : > { %v1221_v62 = vcombine.high %v1203_v41, %v8809_v26  ;;  %v1430_v30 = vpack.c.bf16 %v1203_v41, %v1203_v41  ;;  %v1222_v13 = vcombine.high %v1212_v52, %v8809_v26  ;;  %v1223_v39 = vcombine.high %v1219_v51, %v8809_v26 }
 0x416   : > { %v1432_v28 = vpack.c.bf16 %v1212_v52, %v1212_v52  ;;  %v1434_v17 = vpack.c.bf16 %v1219_v51, %v1219_v51  ;;  %v1429_v31 = vpack.c.bf16 %v1220_v38, %v1220_v38  ;;  %v6901_v43 = vunpack.c.l.b16 %v1428_v22  ;;  %v801_v52 = vpop.permute.xlu0 %800 }
 0x417   : > { %v1431_v34 = vpack.c.bf16 %v1221_v62, %v1221_v62  ;;  %v6903_v32 = vunpack.c.l.b16 %v1430_v30  ;;  %v1433_v47 = vpack.c.bf16 %v1222_v13, %v1222_v13  ;;  %v1435_v25 = vpack.c.bf16 %v1223_v39, %v1223_v39 }
 0x418   : > { %8947 = vst [vmem:[#allocation73_spill] sm:$0xff] %v6901_v43  ;;  %v6907_v41 = vunpack.c.l.b16 %v1429_v31  ;;  %v2438_v26 = vrot.slane %v6901_v43, 1  ;;  %v1241_v51 = vcombine.high %v6811_v24, %v1147_v58  ;;  %v6913_v38 = vunpack.c.l.b16 %v1432_v28 }
 0x419   : > { %v6909_v1 = vunpack.c.l.b16 %v1431_v34  ;;  %v6915_v62 = vunpack.c.l.b16 %v1434_v17  ;;  %v812_v30 = vcombine.low %v6701_v44, %v789_v18  ;;  %v813_v22 = vcombine.high %v6701_v44, %v789_v18 }
 0x41a   : > { %8948 = vst [vmem:[#allocation74_spill] sm:$0xff] %v6907_v41  ;;  %v6919_v11 = vunpack.c.l.b16 %v1433_v47  ;;  %v6921_v13 = vunpack.c.l.b16 %v1435_v25  ;;  %v6926_v31 = vsel %vm1837_vm2, %v6907_v41, %v2438_v26  ;;  %v1904_v24 = vrot.slane %v6907_v41, 7  ;;  %v6942_v44 = vpop.permute.xlu0 %792 }
 0x41b   : > { %8949 = vst [vmem:[#allocation75_spill] sm:$0xff] %v6926_v31  ;;  %v1248_v25 = vrot.slane %v1240_v2, %v6759_v14  ;;  %v1255_v39 = vrot.slane %v1241_v51, %v6759_v14  ;;  %v828_v34 = vcombine.low %v6856_v59, %v801_v52  ;;  %v829_v28 = vcombine.high %v6856_v59, %v801_v52 }
 0x41c   : > { %v6946_v2 = vsel %vm1837_vm2, %v1904_v24, %v6901_v43  ;;  %v820_v47 = vrot.slane %v812_v30, %v6759_v14  ;;  %v8950_v26 = vmov 0.0   ;;  %v949_v35 = vcombine.high %v6695_v42, %v6942_v44 }
 0x41d   : > { %v1256_v10 = vcombine.low %v1232_v36, %v1248_v25  ;;  %v1257_v17 = vcombine.high %v1232_v36, %v1248_v25  ;;  %v1272_v8 = vcombine.low %v1239_v23, %v1255_v39  ;;  %v1273_v58 = vcombine.high %v1239_v23, %v1255_v39  ;;  %5192 = vmatprep.mubr.msk.bf16.mxu1 %vm6185_vm10, %v8950_v26 }
 0x41e   : > { %v827_v25 = vrot.slane %v813_v22, %v6759_v14  ;;  %v836_v39 = vrot.slane %v828_v34, %v6759_v14  ;;  %v843_v24 = vrot.slane %v829_v28, %v6759_v14  ;;  %v6964_v28 = vpop.permute.xlu1 %778  ;;  %5240 = vmatprep.mubr.msk.bf16.mxu0 %vm6185_vm10, %v8950_v26 }
 0x41f   : > { %v1264_v59 = vrot.slane %v1256_v10, %v6763_v19  ;;  %v1271_v36 = vrot.slane %v1257_v17, %v6763_v19  ;;  %v1280_v23 = vrot.slane %v1272_v8, %v6763_v19  ;;  %v1287_v52 = vrot.slane %v1273_v58, %v6763_v19 }
 0x420   : > { %v844_v48 = vcombine.low %v820_v47, %v836_v39 }
 0x421   : > { %v1288_v18 = vcombine.high %v1264_v59, %v8950_v26  ;;  %v1289_v30 = vcombine.high %v1271_v36, %v8950_v26  ;;  %v1290_v10 = vcombine.high %v1280_v23, %v8950_v26  ;;  %v1291_v17 = vcombine.high %v1287_v52, %v8950_v26 }
 0x422   : > { %v1436_v8 = vpack.c.bf16 %v1264_v59, %v1264_v59  ;;  %v1438_v6 = vpack.c.bf16 %v1271_v36, %v1271_v36  ;;  %v1440_v58 = vpack.c.bf16 %v1280_v23, %v1280_v23  ;;  %v1442_v54 = vpack.c.bf16 %v1287_v52, %v1287_v52 }
 0x423   : > { %v1437_v22 = vpack.c.bf16 %v1288_v18, %v1288_v18  ;;  %v1439_v56 = vpack.c.bf16 %v1289_v30, %v1289_v30  ;;  %v1441_v34 = vpack.c.bf16 %v1290_v10, %v1290_v10  ;;  %v1443_v9 = vpack.c.bf16 %v1291_v17, %v1291_v17 }
 0x424   : > { %v6966_v5 = vunpack.c.l.b16 %v1436_v8  ;;  %v6968_v51 = vunpack.c.l.b16 %v1438_v6  ;;  %v845_v36 = vcombine.high %v820_v47, %v836_v39  ;;  %v860_v23 = vcombine.low %v827_v25, %v843_v24 }
 0x425   : > { %v6972_v3 = vunpack.c.l.b16 %v1437_v22  ;;  %v6974_v59 = vunpack.c.l.b16 %v1439_v56  ;;  %v6976_v18 = vunpack.c.l.b16 %v1440_v58  ;;  %v6978_v52 = vunpack.c.l.b16 %v1442_v54 }
 0x426   : > { %8951 = vst [vmem:[#allocation76_spill] sm:$0xff] %v6966_v5  ;;  %v2452_v30 = vrot.slane %v6966_v5, 1  ;;  %v861_v10 = vcombine.high %v827_v25, %v843_v24  ;;  %v6981_v17 = vunpack.c.l.b16 %v1441_v34  ;;  %v6983_v6 = vunpack.c.l.b16 %v1443_v9  ;;  %v6998_v34 = vpop.permute.xlu1 %790 }
 0x427   : > { %8952 = vst [vmem:[#allocation77_spill] sm:$0xff] %v6972_v3  ;;  %v1918_v56 = vrot.slane %v6972_v3, 7  ;;  %v852_v9 = vrot.slane %v844_v48, %v6763_v19  ;;  %v859_v58 = vrot.slane %v845_v36, %v6763_v19 }
 0x428   : > { %8953 = vst [vmem:[#allocation78_spill] sm:$0xff] %v6983_v6  ;;  %v6991_v39 = vsel %vm1837_vm2, %v6972_v3, %v2452_v30  ;;  %v868_v30 = vrot.slane %v860_v23, %v6763_v19  ;;  %v875_v8 = vrot.slane %v861_v10, %v6763_v19 }
 0x429   : > { %8954 = vst [vmem:[#allocation79_spill] sm:$0xff] %v6991_v39  ;;  %v876_v54 = vcombine.high %v852_v9, %v8950_v26  ;;  %v877_v25 = vcombine.high %v859_v58, %v8950_v26  ;;  %v1084_v24 = vpack.c.bf16 %v852_v9, %v852_v9  ;;  %v1086_v63 = vpack.c.bf16 %v859_v58, %v859_v58 }
 0x42a   : > { %v878_v48 = vcombine.high %v868_v30, %v8950_v26  ;;  %v879_v36 = vcombine.high %v875_v8, %v8950_v26  ;;  %v1088_v53 = vpack.c.bf16 %v868_v30, %v868_v30  ;;  %v1090_v27 = vpack.c.bf16 %v875_v8, %v875_v8  ;;  %v7015_v60 = vpop.permute.xlu1 %802 }
 0x42b   : > { %v1085_v22 = vpack.c.bf16 %v876_v54, %v876_v54  ;;  %v1087_v39 = vpack.c.bf16 %v877_v25, %v877_v25  ;;  %v1820_v47 = vunpack.c.l.b16 %v1084_v24  ;;  %v1822_v31 = vunpack.c.l.b16 %v1086_v63 }
 0x42c   : > { %v1089_v37 = vpack.c.bf16 %v878_v48, %v878_v48  ;;  %v1091_v23 = vpack.c.bf16 %v879_v36, %v879_v36  ;;  %v7008_v61 = vunpack.c.l.b16 %v1088_v53  ;;  %v7010_v10 = vunpack.c.l.b16 %v1090_v27 }
 0x42d   : > { %v1821_v9 = vunpack.c.l.b16 %v1085_v22  ;;  %v7013_v58 = vunpack.c.l.b16 %v1087_v39  ;;  %v2409_v45 = vrot.slane %v1820_v47, 1  ;;  %v7019_v8 = vsel %vm1837_vm2, %v1918_v56, %v6966_v5 }
 0x42e   : > { %v7022_v54 = vunpack.c.l.b16 %v1089_v37  ;;  %v8956_v27 = vcombine.low %v6695_v42, %v6942_v44  ;;  %v2411_v25 = vrot.slane %v1822_v31, 7  ;;  %v963_v24 = vrot.slane %v949_v35, %v6759_v14  ;;  %v7044_v29 = vpop.permute.xlu1 %794 }
 0x42f   : > { %8955 = vst [vmem:[#allocation80_spill] sm:$0xff] %v7013_v58  ;;  %v1836_v22 = vrot.slane %v1821_v9, 7  ;;  %v2410_v39 = vsel %vm1837_vm2, %v1821_v9, %v2409_v45  ;;  %v7030_v30 = vunpack.c.l.b16 %v1091_v23  ;;  %v1839_v56 = vrot.slane %v1822_v31, 6 }
 0x430   : > { %v956_v53 = vrot.slane %v8956_v27, %v6759_v14  ;;  %v7038_v44 = vsel %vm1840_vm3, %v2411_v25, %v2410_v39  ;;  %v2813_v23 = vrot.slane %v1820_v47, 2  ;;  %v2814_v27 = vrot.slane %v1821_v9, 1 }
 0x431   : > { %v1838_v37 = vsel %vm1837_vm2, %v1836_v22, %v1820_v47  ;;  %8957 = vst [vmem:[#allocation81_spill] sm:$0xff] %v7038_v44  ;;  %v3217_v36 = vrot.slane %v1820_v47, 3  ;;  %v3218_v40 = vrot.slane %v1821_v9, 2  ;;  %v805_v22 = vpop.permute.xlu0 %804  ;;  %v2817_v25 = vrot.slane %v7013_v58, 7 }
 0x432   : > { %v7047_v42 = vsel %vm1840_vm3, %v1839_v56, %v1838_v37  ;;  %v2815_v39 = vsel %vm1837_vm2, %v2814_v27, %v2813_v23  ;;  %v3220_v45 = vrot.slane %v1822_v31, 1  ;;  %v880_v48 = vcombine.low %v6713_v50, %v6998_v34 }
 0x433   : > { %v2816_v35 = vsel %vm1840_vm3, %v1822_v31, %v2815_v39  ;;  %v3219_v47 = vsel %vm1837_vm2, %v3218_v40, %v3217_v36  ;;  %v881_v56 = vcombine.high %v6713_v50, %v6998_v34  ;;  %v964_v37 = vcombine.low %v6831_v49, %v805_v22 }
 0x434   : > { %v3221_v9 = vsel %vm1840_vm3, %v3220_v45, %v3219_v47  ;;  %v965_v27 = vcombine.high %v6831_v49, %v805_v22  ;;  %v896_v40 = vcombine.low %v6964_v28, %v7015_v60  ;;  %v897_v50 = vcombine.high %v6964_v28, %v7015_v60  ;;  %v7080_v22 = vpop.permute.xlu1 %806 }
 0x435   : > { %v7064_v31 = vsel %vm1843_vm4, %v7013_v58, %v3221_v9  ;;  %v972_v39 = vrot.slane %v964_v37, %v6759_v14  ;;  %v7075_v34 = vsel %vm1843_vm4, %v2817_v25, %v2816_v35  ;;  %v888_v36 = vrot.slane %v880_v48, %v6759_v14 }
 0x436   : > { %8958 = vst [vmem:[#allocation82_spill] sm:$0xff] %v7064_v31  ;;  %8959 = vst [vmem:[#allocation83_spill] sm:$0xff] %v7075_v34  ;;  %v979_v9 = vrot.slane %v965_v27, %v6759_v14  ;;  %v904_v49 = vrot.slane %v896_v40, %v6759_v14  ;;  %v7084_v45 = vrot.slane %v881_v56, %v6759_v14 }
 0x437   : > { %v980_v37 = vcombine.low %v956_v53, %v972_v39  ;;  %v981_v23 = vcombine.high %v956_v53, %v972_v39  ;;  %v1016_v28 = vcombine.low %v6707_v46, %v7044_v29  ;;  %v911_v40 = vrot.slane %v897_v50, %v6759_v14 }
 0x438   : > { %v996_v12 = vcombine.low %v963_v24, %v979_v9  ;;  %v997_v60 = vcombine.high %v963_v24, %v979_v9  ;;  %v912_v24 = vcombine.low %v888_v36, %v904_v49  ;;  %v913_v39 = vcombine.high %v888_v36, %v904_v49 }
 0x439   : > { %v988_v25 = vrot.slane %v980_v37, %v6763_v19  ;;  %v995_v27 = vrot.slane %v981_v23, %v6763_v19 }
 0x43a   : > { %v1004_v56 = vrot.slane %v996_v12, %v6763_v19  ;;  %v1011_v53 = vrot.slane %v997_v60, %v6763_v19 }
 0x43b   : > { %v1012_v9 = vcombine.high %v988_v25, %v8950_v26  ;;  %v1013_v47 = vcombine.high %v995_v27, %v8950_v26  ;;  %v1100_v63 = vpack.c.bf16 %v988_v25, %v988_v25  ;;  %v1102_v35 = vpack.c.bf16 %v995_v27, %v995_v27 }
 0x43c   : > { %v1014_v37 = vcombine.high %v1004_v56, %v8950_v26  ;;  %v1015_v23 = vcombine.high %v1011_v53, %v8950_v26  ;;  %v1104_v50 = vpack.c.bf16 %v1004_v56, %v1004_v56  ;;  %v1106_v31 = vpack.c.bf16 %v1011_v53, %v1011_v53 }
 0x43d   : > { %v1101_v44 = vpack.c.bf16 %v1012_v9, %v1012_v9  ;;  %v1103_v48 = vpack.c.bf16 %v1013_v47, %v1013_v47  ;;  %v1997_v34 = vunpack.c.l.b16 %v1100_v63  ;;  %v1999_v12 = vunpack.c.l.b16 %v1102_v35 }
 0x43e   : > { %v1105_v21 = vpack.c.bf16 %v1014_v37, %v1014_v37  ;;  %v1107_v60 = vpack.c.bf16 %v1015_v23, %v1015_v23  ;;  %v7101_v16 = vunpack.c.l.b16 %v1104_v50  ;;  %v7103_v36 = vunpack.c.l.b16 %v1106_v31 }
 0x43f   : > { %v1998_v49 = vunpack.c.l.b16 %v1101_v44  ;;  %v7105_v20 = vunpack.c.l.b16 %v1103_v48  ;;  %v2514_v25 = vrot.slane %v1997_v34, 1  ;;  %v7108_v27 = vrot.slane %v1016_v28, %v6759_v14 }
 0x440   : > { %8960 = vst [vmem:[#allocation84_spill] sm:$0xff] %v7101_v16  ;;  %8961 = vst [vmem:[#allocation85_spill] sm:$0xff] %v7103_v36  ;;  %v7110_v15 = vunpack.c.l.b16 %v1105_v21  ;;  %v920_v56 = vrot.slane %v912_v24, %v6763_v19  ;;  %v928_v63 = vcombine.low %v7084_v45, %v911_v40  ;;  %v929_v47 = vcombine.high %v7084_v45, %v911_v40 }
 0x441   : > { %8962 = vst [vmem:[#allocation86_spill] sm:$0xff] %v7105_v20  ;;  %v2013_v35 = vrot.slane %v1998_v49, 7  ;;  %v2515_v53 = vsel %vm1837_vm2, %v1998_v49, %v2514_v25  ;;  %v2516_v31 = vrot.slane %v1999_v12, 7  ;;  %v927_v44 = vrot.slane %v913_v39, %v6763_v19 }
 0x442   : > { %8963 = vst [vmem:[#allocation87_spill] sm:$0xff] %v7110_v15  ;;  %v7117_v48 = vunpack.c.l.b16 %v1107_v60  ;;  %v2015_v9 = vrot.slane %v1999_v12, 6  ;;  %v2918_v50 = vrot.slane %v1997_v34, 2  ;;  %v2919_v60 = vrot.slane %v1998_v49, 1 }
 0x443   : > { %v2014_v37 = vsel %vm1837_vm2, %v2013_v35, %v1997_v34  ;;  %v7125_v45 = vsel %vm1840_vm3, %v2516_v31, %v2515_v53  ;;  %v3322_v21 = vrot.slane %v1997_v34, 3  ;;  %v2922_v53 = vrot.slane %v7105_v20, 7 }
 0x444   : > { %8964 = vst [vmem:[#allocation88_spill] sm:$0xff] %v7117_v48  ;;  %8965 = vst [vmem:[#allocation89_spill] sm:$0xff] %v7125_v45  ;;  %v3323_v48 = vrot.slane %v1998_v49, 2  ;;  %v7132_v35 = vsel %vm1840_vm3, %v2015_v9, %v2014_v37  ;;  %v2920_v23 = vsel %vm1837_vm2, %v2919_v60, %v2918_v50  ;;  %v3325_v31 = vrot.slane %v1999_v12, 1 }
 0x445   : > { %8966 = vst [vmem:[#allocation90_spill] sm:$0xff] %v7132_v35  ;;  %v2921_v40 = vsel %vm1840_vm3, %v1999_v12, %v2920_v23  ;;  %v936_v25 = vrot.slane %v928_v63, %v6763_v19  ;;  %v943_v49 = vrot.slane %v929_v47, %v6763_v19  ;;  %v944_v9 = vcombine.high %v920_v56, %v8950_v26 }
 0x446   : > { %v3324_v24 = vsel %vm1837_vm2, %v3323_v48, %v3322_v21  ;;  %v7141_v28 = vsel %vm1843_vm4, %v2922_v53, %v2921_v40  ;;  %v945_v12 = vcombine.high %v927_v44, %v8950_v26  ;;  %v1092_v48 = vpack.c.bf16 %v920_v56, %v920_v56 }
 0x447   : > { %8967 = vst [vmem:[#allocation91_spill] sm:$0xff] %v7141_v28  ;;  %v3326_v34 = vsel %vm1840_vm3, %v3325_v31, %v3324_v24  ;;  %v946_v23 = vcombine.high %v936_v25, %v8950_v26  ;;  %v947_v63 = vcombine.high %v943_v49, %v8950_v26  ;;  %v1093_v21 = vpack.c.bf16 %v944_v9, %v944_v9 }
 0x448   : > { %v7148_v37 = vsel %vm1843_vm4, %v7105_v20, %v3326_v34  ;;  %v1094_v40 = vpack.c.bf16 %v927_v44, %v927_v44  ;;  %v1096_v50 = vpack.c.bf16 %v936_v25, %v936_v25  ;;  %v1095_v60 = vpack.c.bf16 %v945_v12, %v945_v12 }
 0x449   : > { %8968 = vst [vmem:[#allocation92_spill] sm:$0xff] %v7148_v37  ;;  %v1097_v24 = vpack.c.bf16 %v946_v23, %v946_v23  ;;  %v1098_v53 = vpack.c.bf16 %v943_v49, %v943_v49  ;;  %v1828_v47 = vunpack.c.l.b16 %v1092_v48  ;;  %v1099_v31 = vpack.c.bf16 %v947_v63, %v947_v63 }
 0x44a   : > { %v1829_v39 = vunpack.c.l.b16 %v1093_v21  ;;  %v1830_v28 = vunpack.c.l.b16 %v1094_v40  ;;  %v7153_v45 = vunpack.c.l.b16 %v1096_v50  ;;  %v7155_v34 = vunpack.c.l.b16 %v1095_v60 }
 0x44b   : > { %v7157_v37 = vunpack.c.l.b16 %v1097_v24  ;;  %v7159_v20 = vunpack.c.l.b16 %v1098_v53  ;;  %v2423_v56 = vrot.slane %v1828_v47, 1  ;;  %v7166_v48 = vunpack.c.l.b16 %v1099_v31 }
 0x44c   : > { %8969 = vst [vmem:[#allocation93_spill] sm:$0xff] %v7153_v45  ;;  %8970 = vst [vmem:[#allocation94_spill] sm:$0xff] %v7155_v34  ;;  %v1857_v49 = vrot.slane %v1829_v39, 7  ;;  %v1859_v40 = vrot.slane %v1830_v28, 6  ;;  %v2425_v60 = vrot.slane %v1830_v28, 7  ;;  %v2827_v23 = vrot.slane %v1828_v47, 2 }
 0x44d   : > { %8971 = vst [vmem:[#allocation95_spill] sm:$0xff] %v7157_v37  ;;  %8972 = vst [vmem:[#allocation96_spill] sm:$0xff] %v7159_v20  ;;  %v2424_v63 = vsel %vm1837_vm2, %v1829_v39, %v2423_v56  ;;  %v3231_v50 = vrot.slane %v1828_v47, 3  ;;  %v3232_v24 = vrot.slane %v1829_v39, 2  ;;  %v2831_v12 = vrot.slane %v7155_v34, 7 }
 0x44e   : > { %8973 = vst [vmem:[#allocation97_spill] sm:$0xff] %v7166_v48  ;;  %v1858_v21 = vsel %vm1837_vm2, %v1857_v49, %v1828_v47  ;;  %v7176_v31 = vsel %vm1840_vm3, %v2425_v60, %v2424_v63  ;;  %v2828_v49 = vrot.slane %v1829_v39, 1  ;;  %v3234_v36 = vrot.slane %v1830_v28, 1  ;;  %v7242_v60 = vpop.permute.xlu1 %1476 }
 0x44f   : > { %8974 = vst [vmem:[#allocation98_spill] sm:$0xff] %v7176_v31  ;;  %v7180_v44 = vsel %vm1840_vm3, %v1859_v40, %v1858_v21  ;;  %v3233_v21 = vsel %vm1837_vm2, %v3232_v24, %v3231_v50  ;;  %v1033_v47 = vcombine.high %v6940_v7, %v7080_v22  ;;  %v8977_v50 = vcombine.high %v6707_v46, %v7044_v29 }
 0x450   : > { %v2829_v25 = vsel %vm1837_vm2, %v2828_v49, %v2827_v23  ;;  %v3235_v39 = vsel %vm1840_vm3, %v3234_v36, %v3233_v21  ;;  %v8975_v23 = vcombine.low %v6940_v7, %v7080_v22  ;;  %v8978_v36 = vrot.slane %v6903_v32, 6 }
 0x451   : > { %v2830_v40 = vsel %vm1840_vm3, %v1830_v28, %v2829_v25  ;;  %v7200_v53 = vsel %vm1843_vm4, %v7155_v34, %v3235_v39  ;;  %v1031_v24 = vrot.slane %v8977_v50, %v6759_v14  ;;  %v1910_v25 = vrot.slane %v6913_v38, 4 }
 0x452   : > { %v1040_v49 = vrot.slane %v8975_v23, %v6759_v14  ;;  %8976 = vst [vmem:[#allocation99_spill] sm:$0xff] %v7200_v53  ;;  %v1907_v28 = vsel %vm1840_vm3, %v8978_v36, %v6946_v2  ;;  %v1047_v21 = vrot.slane %v1033_v47, %v6759_v14  ;;  %v8979_v39 = vrot.slane %v6909_v1, 5 }
 0x453   : > { %v8980_v2 = vrot.slane %v6968_v51, 6  ;;  %v1912_v29 = vrot.slane %v6919_v11, 3  ;;  %v1924_v16 = vrot.slane %v6976_v18, 4 }
 0x454   : > { %v1048_v7 = vcombine.low %v7108_v27, %v1040_v49  ;;  %v1049_v22 = vcombine.high %v7108_v27, %v1040_v49  ;;  %v1909_v23 = vsel %vm1843_vm4, %v8979_v39, %v1907_v28  ;;  %v1064_v27 = vcombine.low %v1031_v24, %v1047_v21 }
 0x455   : > { %v1911_v50 = vsel %vm1846_vm5, %v1910_v25, %v1909_v23  ;;  %v1921_v36 = vsel %vm1840_vm3, %v8980_v2, %v7019_v8  ;;  %v1065_v49 = vcombine.high %v1031_v24, %v1047_v21  ;;  %v7227_v28 = vsel %vm1843_vm4, %v2831_v12, %v2830_v40 }
 0x456   : > { %v1056_v47 = vrot.slane %v1048_v7, %v6763_v19  ;;  %v1063_v9 = vrot.slane %v1049_v22, %v6763_v19  ;;  %8981 = vst [vmem:[#allocation100_spill] sm:$0xff] %v7227_v28  ;;  %v1914_v25 = vrot.slane %v6915_v62, 2  ;;  %v1072_v23 = vrot.slane %v1064_v27, %v6763_v19 }
 0x457   : > { %v1079_v8 = vrot.slane %v1065_v49, %v6763_v19  ;;  %v1913_v21 = vsel %vm1849_vm6, %v1912_v29, %v1911_v50  ;;  %v8982_v12 = vrot.slane %v6974_v59, 5 }
 0x458   : > { %v1080_v7 = vcombine.high %v1056_v47, %v8950_v26  ;;  %v1081_v22 = vcombine.high %v1063_v9, %v8950_v26  ;;  %v1108_v2 = vpack.c.bf16 %v1056_v47, %v1056_v47  ;;  %v1110_v24 = vpack.c.bf16 %v1063_v9, %v1063_v9 }
 0x459   : > { %v1923_v40 = vsel %vm1843_vm4, %v8982_v12, %v1921_v36  ;;  %v1082_v39 = vcombine.high %v1072_v23, %v8950_v26  ;;  %v1083_v46 = vcombine.high %v1079_v8, %v8950_v26  ;;  %v1112_v49 = vpack.c.bf16 %v1072_v23, %v1072_v23 }
 0x45a   : > { %v1109_v56 = vpack.c.bf16 %v1080_v7, %v1080_v7  ;;  %v1111_v27 = vpack.c.bf16 %v1081_v22, %v1081_v22  ;;  %v1114_v63 = vpack.c.bf16 %v1079_v8, %v1079_v8  ;;  %v2005_v53 = vunpack.c.l.b16 %v1108_v2  ;;  %v7251_v7 = vpop.permute.xlu0 %1468 }
 0x45b   : > { %v2007_v31 = vunpack.c.l.b16 %v1110_v24  ;;  %v1113_v47 = vpack.c.bf16 %v1082_v39, %v1082_v39  ;;  %v1115_v9 = vpack.c.bf16 %v1083_v46, %v1083_v46  ;;  %v7246_v50 = vunpack.c.l.b16 %v1112_v49  ;;  %8985 = vst [vmem:[#allocation103_spill] sm:$0xff] %v7251_v7  ;;  %v7264_v7 = vpop.permute.xlu1 %1470 }
 0x45c   : > { %v2006_v15 = vunpack.c.l.b16 %v1109_v56  ;;  %v7244_v29 = vunpack.c.l.b16 %v1111_v27  ;;  %v7248_v36 = vunpack.c.l.b16 %v1114_v63  ;;  %v2528_v12 = vrot.slane %v2005_v53, 1  ;;  %8988 = vst [vmem:[#allocation106_spill] sm:$0xff] %v7264_v7 }
 0x45d   : > { %8983 = vst [vmem:[#allocation101_spill] sm:$0xff] %v7246_v50  ;;  %v7253_v22 = vunpack.c.l.b16 %v1113_v47  ;;  %v1916_v8 = vrot.slane %v6921_v13, 1  ;;  %v1926_v46 = vrot.slane %v6981_v17, 3  ;;  %v2530_v39 = vrot.slane %v2007_v31, 7 }
 0x45e   : > { %8984 = vst [vmem:[#allocation102_spill] sm:$0xff] %v7248_v36  ;;  %v2027_v23 = vrot.slane %v2006_v15, 7  ;;  %v2529_v56 = vsel %vm1837_vm2, %v2006_v15, %v2528_v12  ;;  %v1915_v2 = vsel %vm1852_vm7, %v1914_v25, %v1913_v21  ;;  %v1925_v63 = vsel %vm1846_vm5, %v1924_v16, %v1923_v40  ;;  %v1465_v28 = vpop.permute.xlu0 %1464 }
 0x45f   : > { %8986 = vst [vmem:[#allocation104_spill] sm:$0xff] %v7253_v22  ;;  %v7260_v24 = vunpack.c.l.b16 %v1115_v9  ;;  %v2029_v49 = vrot.slane %v2007_v31, 6  ;;  %v7270_v20 = vsel %vm1840_vm3, %v2530_v39, %v2529_v56  ;;  %v2932_v21 = vrot.slane %v2005_v53, 2 }
 0x460   : > { %v2028_v27 = vsel %vm1837_vm2, %v2027_v23, %v2005_v53  ;;  %8989 = vst [vmem:[#allocation107_spill] sm:$0xff] %v7270_v20  ;;  %v2933_v40 = vrot.slane %v2006_v15, 1  ;;  %v3336_v47 = vrot.slane %v2005_v53, 3  ;;  %v3337_v35 = vrot.slane %v2006_v15, 2  ;;  %v9013_v20 = vld [vmem:[#allocation60_spill] sm:$0xff] }
 0x461   : > { %8987 = vst [vmem:[#allocation105_spill] sm:$0xff] %v7260_v24  ;;  %v7275_v9 = vsel %vm1840_vm3, %v2029_v49, %v2028_v27  ;;  %v2936_v39 = vrot.slane %v7244_v29, 7  ;;  %v3339_v16 = vrot.slane %v2007_v31, 1  ;;  %v1927_v12 = vsel %vm1849_vm6, %v1926_v46, %v1925_v63 }
 0x462   : > { %v2934_v56 = vsel %vm1837_vm2, %v2933_v40, %v2932_v21  ;;  %v3338_v49 = vsel %vm1837_vm2, %v3337_v35, %v3336_v47  ;;  %v1928_v21 = vrot.slane %v6978_v52, 2  ;;  %v7291_v40 = vpop.permute.xlu1 %1466  ;;  %v1930_v27 = vrot.slane %v6983_v6, 1 }
 0x463   : > { %v2935_v25 = vsel %vm1840_vm3, %v2007_v31, %v2934_v56  ;;  %v3340_v15 = vsel %vm1840_vm3, %v3339_v16, %v3338_v49  ;;  %v1917_v56 = vsel %vm1855_vm8, %v1916_v8, %v1915_v2  ;;  %v8992_v35 = vrot.slane %v6901_v43, 2  ;;  %v9010_v43 = vld [vmem:[#allocation58_spill] sm:$0xff] }
 0x464   : > { %v7286_v53 = vsel %vm1843_vm4, %v2936_v39, %v2935_v25  ;;  %v7295_v31 = vsel %vm1843_vm4, %v7244_v29, %v3340_v15  ;;  %v8993_v47 = vrot.slane %v6907_v41, 1  ;;  %v1929_v46 = vsel %vm1852_vm7, %v1928_v21, %v1927_v12 }
 0x465   : > { %8990 = vst [vmem:[#allocation108_spill] sm:$0xff] %v7286_v53  ;;  %8991 = vst [vmem:[#allocation109_spill] sm:$0xff] %v7295_v31  ;;  %v2848_v25 = vrot.slane %v6913_v38, 6  ;;  %v2850_v39 = vrot.slane %v6919_v11, 5  ;;  %v1931_v49 = vsel %vm1855_vm8, %v1930_v27, %v1929_v46  ;;  %v8994_v8 = vrot.slane %v6909_v1, 7  ;;  %v1489_v46 = vpop.permute.xlu0 %1488 }
 0x466   : > { %v2844_v16 = vsel %vm1837_vm2, %v8993_v47, %v8992_v35  ;;  %v2852_v15 = vrot.slane %v6915_v62, 4  ;;  %v8995_v7 = vrot.slane %v6966_v5, 2  ;;  %v8996_v35 = vrot.slane %v6972_v3, 1 }
 0x467   : > { %v2845_v63 = vsel %vm1840_vm3, %v6903_v32, %v2844_v16  ;;  %v1932_v21 = vpack.c.b16 %v1931_v49, %v1917_v56  ;;  %v2862_v27 = vrot.slane %v6976_v18, 6  ;;  %v2864_v3 = vrot.slane %v6981_v17, 5 }
 0x468   : > { %v2847_v2 = vsel %vm1843_vm4, %v8994_v8, %v2845_v63  ;;  %v2858_v12 = vsel %vm1837_vm2, %v8996_v35, %v8995_v7  ;;  %v2854_v63 = vrot.slane %v6921_v13, 3  ;;  %v8997_v8 = vrot.slane %v6974_v59, 7 }
 0x469   : > { %v2849_v47 = vsel %vm1846_vm5, %v2848_v25, %v2847_v2  ;;  %v2859_v16 = vsel %vm1840_vm3, %v6968_v51, %v2858_v12  ;;  %v1938_v7 = vsel %vm1933_vm9, %v1932_v21, 0  ;;  %v2866_v49 = vrot.slane %v6978_v52, 4  ;;  %v1479_v2 = vpop.permute.xlu1 %1478 }
 0x46a   : > { %v2851_v23 = vsel %vm1849_vm6, %v2850_v39, %v2849_v47  ;;  %v2861_v31 = vsel %vm1843_vm4, %v8997_v8, %v2859_v16  ;;  %5191 = vmatpush3.bf16.xpose.msra.mxu1 %v1938_v7  ;;  %v2868_v35 = vrot.slane %v6983_v6, 3  ;;  %v1516_v12 = vcombine.low %v1465_v28, %v1489_v46 }
 0x46b   : > { %v2853_v56 = vsel %vm1852_vm7, %v2852_v15, %v2851_v23  ;;  %v2863_v25 = vsel %vm1846_vm5, %v2862_v27, %v2861_v31  ;;  %v1517_v47 = vcombine.high %v1465_v28, %v1489_v46  ;;  %v1500_v21 = vcombine.low %v6734_v55, %v7242_v60  ;;  %5196 = vmatprep.subr.bf16.mxu1 %v8950_v26 }
 0x46c   : > { %v2865_v39 = vsel %vm1849_vm6, %v2864_v3, %v2863_v25  ;;  %v2855_v16 = vsel %vm1855_vm8, %v2854_v63, %v2853_v56  ;;  %v1501_v23 = vcombine.high %v6734_v55, %v7242_v60  ;;  %v1524_v3 = vrot.slane %v1516_v12, %v6759_v14 }
 0x46d   : > { %v2867_v8 = vsel %vm1852_vm7, %v2866_v49, %v2865_v39  ;;  %v1531_v15 = vrot.slane %v1517_v47, %v6759_v14  ;;  %v1568_v28 = vcombine.low %v6748_v57, %v1479_v2  ;;  %v1508_v46 = vrot.slane %v1500_v21, %v6759_v14 }
 0x46e   : > { %v2869_v31 = vsel %vm1855_vm8, %v2868_v35, %v2867_v8  ;;  %v1515_v63 = vrot.slane %v1501_v23, %v6759_v14  ;;  %v1569_v7 = vcombine.high %v6748_v57, %v1479_v2  ;;  %v8998_v60 = vrot.slane %v7013_v58, 5  ;;  %v9022_v58 = vld [vmem:[#allocation69_spill] sm:$0xff] }
 0x46f   : > { %v2870_v27 = vpack.c.b16 %v2869_v31, %v2855_v16  ;;  %v1532_v39 = vcombine.low %v1508_v46, %v1524_v3  ;;  %v1533_v35 = vcombine.high %v1508_v46, %v1524_v3  ;;  %v7362_v47 = vrot.slane %v1568_v28, %v6759_v14 }
 0x470   : > { %v1844_v25 = vsel %vm1843_vm4, %v8998_v60, %v7047_v42  ;;  %v1548_v12 = vcombine.low %v1515_v63, %v1531_v15  ;;  %v1549_v2 = vcombine.high %v1515_v63, %v1531_v15  ;;  %v8999_v42 = vrot.slane %v7008_v61, 4 }
 0x471   : > { %v2875_v49 = vsel %vm1933_vm9, %v2870_v27, 0  ;;  %v1540_v8 = vrot.slane %v1532_v39, %v6763_v19  ;;  %v1547_v21 = vrot.slane %v1533_v35, %v6763_v19  ;;  %v7371_v31 = vrot.slane %v1569_v7, %v6759_v14 }
 0x472   : > { %5239 = vmatpush3.bf16.xpose.msra.mxu0 %v2875_v49  ;;  %v1847_v16 = vsel %vm1846_vm5, %v8999_v42, %v1844_v25  ;;  %v1556_v23 = vrot.slane %v1548_v12, %v6763_v19  ;;  %v1563_v3 = vrot.slane %v1549_v2, %v6763_v19  ;;  %v9000_v15 = vrot.slane %v7022_v54, 3 }
 0x473   : > { %5250 = vmatprep.subr.bf16.mxu0 %v8950_v26  ;;  %v1854_v27 = vrot.slane %v7030_v30, 1  ;;  %v9001_v46 = vrot.slane %v7155_v34, 5  ;;  %v1564_v60 = vcombine.high %v1540_v8, %v8950_v26  ;;  %v1565_v7 = vcombine.high %v1547_v21, %v8950_v26 }
 0x474   : > { %v1850_v28 = vsel %vm1849_vm6, %v9000_v15, %v1847_v16  ;;  %v1566_v25 = vcombine.high %v1556_v23, %v8950_v26  ;;  %v1772_v49 = vpack.c.bf16 %v1540_v8, %v1540_v8  ;;  %v1567_v39 = vcombine.high %v1563_v3, %v8950_v26 }
 0x475   : > { %v1862_v63 = vsel %vm1843_vm4, %v9001_v46, %v7180_v44  ;;  %v1774_v35 = vpack.c.bf16 %v1547_v21, %v1547_v21  ;;  %v1776_v12 = vpack.c.bf16 %v1556_v23, %v1556_v23  ;;  %v1778_v2 = vpack.c.bf16 %v1563_v3, %v1563_v3 }
 0x476   : > { %v1773_v42 = vpack.c.bf16 %v1564_v60, %v1564_v60  ;;  %v1775_v16 = vpack.c.bf16 %v1565_v7, %v1565_v7  ;;  %v1777_v15 = vpack.c.bf16 %v1566_v25, %v1566_v25  ;;  %v7387_v57 = vunpack.c.l.b16 %v1772_v49 }
 0x477   : > { %v1779_v55 = vpack.c.bf16 %v1567_v39, %v1567_v39  ;;  %v7389_v56 = vunpack.c.l.b16 %v1774_v35  ;;  %v7391_v44 = vunpack.c.l.b16 %v1776_v12  ;;  %v1869_v46 = vrot.slane %v7166_v48, 1 }
 0x478   : > { %9002 = vst [vmem:[#allocation110_spill] sm:$0xff] %v7387_v57  ;;  %v7394_v5 = vunpack.c.l.b16 %v1773_v42  ;;  %v7396_v8 = vunpack.c.l.b16 %v1775_v16  ;;  %v2665_v21 = vrot.slane %v7387_v57, 1  ;;  %v9004_v23 = vrot.slane %v7010_v10, 2 }
 0x479   : > { %v7402_v60 = vunpack.c.l.b16 %v1777_v15  ;;  %v7404_v7 = vunpack.c.l.b16 %v1778_v2  ;;  %v9005_v25 = vrot.slane %v7153_v45, 4  ;;  %v9006_v39 = vrot.slane %v6790_v0, 6 }
 0x47a   : > { %9003 = vst [vmem:[#allocation111_spill] sm:$0xff] %v7394_v5  ;;  %v1853_v3 = vsel %vm1852_vm7, %v9004_v23, %v1850_v28  ;;  %v7413_v12 = vunpack.c.l.b16 %v1779_v55  ;;  %v2229_v42 = vrot.slane %v7394_v5, 7  ;;  %v7419_v28 = vsel %vm1837_vm2, %v7394_v5, %v2665_v21 }
 0x47b   : > { %v1864_v49 = vsel %vm1846_vm5, %v9005_v25, %v1862_v63  ;;  %v2077_v35 = vsel %vm1840_vm3, %v9006_v39, %v6826_v33  ;;  %9007 = vst [vmem:[#allocation112_spill] sm:$0xff] %v7419_v28  ;;  %v3069_v55 = vrot.slane %v7387_v57, 2  ;;  %v3070_v25 = vrot.slane %v7394_v5, 1  ;;  %v9015_v5 = vld [vmem:[#allocation61_spill] sm:$0xff] }
 0x47c   : > { %v7431_v21 = vsel %vm1837_vm2, %v2229_v42, %v7387_v57  ;;  %v1856_v23 = vsel %vm1855_vm8, %v1854_v27, %v1853_v3  ;;  %v9008_v33 = vrot.slane %v7157_v37, 3  ;;  %v9009_v41 = vrot.slane %v6795_v4, 5  ;;  %v9011_v42 = vld [vmem:[#allocation96_spill] sm:$0xff]  ;;  %v9014_v57 = vld [vmem:[#allocation59_spill] sm:$0xff] }
 0x47d   : > { %v2080_v53 = vrot.slane %v9010_v43, 4  ;;  %v9012_v28 = vrot.slane %v9011_v42, 2  ;;  %v2082_v15 = vrot.slane %v9013_v20, 3  ;;  %v2084_v63 = vrot.slane %v9014_v57, 2  ;;  %v9017_v4 = vld [vmem:[#allocation64_spill] sm:$0xff] }
 0x47e   : > { %v1866_v16 = vsel %vm1849_vm6, %v9008_v33, %v1864_v49  ;;  %v2079_v39 = vsel %vm1843_vm4, %v9009_v41, %v2077_v35  ;;  %v2086_v27 = vrot.slane %v9015_v5, 1  ;;  %v9016_v33 = vld [vmem:[#allocation72_spill] sm:$0xff]  ;;  %v9018_v0 = vrot.slane %v9017_v4, 6  ;;  %v9019_v35 = vld [vmem:[#allocation67_spill] sm:$0xff] }
 0x47f   : > { %v1868_v2 = vsel %vm1852_vm7, %v9012_v28, %v1866_v16  ;;  %v2081_v49 = vsel %vm1846_vm5, %v2080_v53, %v2079_v39  ;;  %v2094_v43 = vrot.slane %v9019_v35, 4  ;;  %v9020_v28 = vld [vmem:[#allocation66_spill] sm:$0xff]  ;;  %v2096_v5 = vrot.slane %v9022_v58, 3  ;;  %v9024_v4 = vld [vmem:[#allocation71_spill] sm:$0xff] }
 0x480   : > { %v1870_v3 = vsel %vm1855_vm8, %v1869_v46, %v1868_v2  ;;  %v2091_v41 = vsel %vm1840_vm3, %v9018_v0, %v9016_v33  ;;  %v2083_v16 = vsel %vm1849_vm6, %v2082_v15, %v2081_v49  ;;  %v9021_v20 = vrot.slane %v9020_v28, 5  ;;  %v9023_v2 = vld [vmem:[#allocation68_spill] sm:$0xff]  ;;  %v1491_v0 = vpop.permute.xlu1 %1490 }
 0x481   : > { %v1871_v34 = vpack.c.b16 %v1870_v3, %v1856_v23  ;;  %v2085_v46 = vsel %vm1852_vm7, %v2084_v63, %v2083_v16  ;;  %v2098_v39 = vrot.slane %v9023_v2, 2  ;;  %v2100_v6 = vrot.slane %v9024_v4, 1  ;;  %v9025_v3 = vld [vmem:[#allocation83_spill] sm:$0xff]  ;;  %v9034_v4 = vld [vmem:[#allocation86_spill] sm:$0xff] }
 0x482   : > { %v2093_v57 = vsel %vm1843_vm4, %v9021_v20, %v2091_v41  ;;  %v2087_v23 = vsel %vm1855_vm8, %v2086_v27, %v2085_v46  ;;  %v9026_v20 = vrot.slane %v7008_v61, 6  ;;  %v2825_v63 = vrot.slane %v7030_v30, 3  ;;  %v9028_v41 = vld [vmem:[#allocation100_spill] sm:$0xff] }
 0x483   : > { %v2095_v53 = vsel %vm1846_vm5, %v2094_v43, %v2093_v57  ;;  %5193 = vmatmul.mubr.msk.bf16.vlgmr.msra.gmra.mrb[4].mxu1 %vm1933_vm9, %v1871_v34  ;;  %v9027_v57 = vrot.slane %v7022_v54, 5  ;;  %v9029_v34 = vrot.slane %v7153_v45, 6  ;;  %v9030_v46 = vrot.slane %v7010_v10, 4 }
 0x484   : > { %v2097_v15 = vsel %vm1849_vm6, %v2096_v5, %v2095_v53  ;;  %v2820_v49 = vsel %vm1846_vm5, %v9026_v20, %v9025_v3  ;;  %v2839_v5 = vrot.slane %v7166_v48, 3  ;;  %5198 = vmatprep.mubr.msk.bf16.mxu1 %vm6185_vm10, %v8950_v26  ;;  %v1584_v3 = vcombine.low %v7291_v40, %v1491_v0 }
 0x485   : > { %v2099_v43 = vsel %vm1852_vm7, %v2098_v39, %v2097_v15  ;;  %v2822_v33 = vsel %vm1849_vm6, %v9027_v57, %v2820_v49  ;;  %v2834_v27 = vsel %vm1846_vm5, %v9029_v34, %v9028_v41  ;;  %v9031_v39 = vrot.slane %v7157_v37, 5 }
 0x486   : > { %v2101_v16 = vsel %vm1855_vm8, %v2100_v6, %v2099_v43  ;;  %v2824_v53 = vsel %vm1852_vm7, %v9030_v46, %v2822_v33  ;;  %v3071_v20 = vsel %vm1837_vm2, %v3070_v25, %v3069_v55  ;;  %v9032_v57 = vrot.slane %v9011_v42, 4  ;;  %v9033_v46 = vld [vmem:[#allocation90_spill] sm:$0xff] }
 0x487   : > { %v2836_v15 = vsel %vm1849_vm6, %v9031_v39, %v2834_v27  ;;  %v2102_v49 = vpack.c.b16 %v2101_v16, %v2087_v23  ;;  %v1585_v34 = vcombine.high %v7291_v40, %v1491_v0  ;;  %v2826_v6 = vsel %vm1855_vm8, %v2825_v63, %v2824_v53  ;;  %v9036_v16 = vld [vmem:[#allocation84_spill] sm:$0xff] }
 0x488   : > { %v2838_v41 = vsel %vm1852_vm7, %v9032_v57, %v2836_v15  ;;  %v1592_v33 = vrot.slane %v1584_v3, %v6759_v14  ;;  %v9035_v27 = vrot.slane %v9034_v4, 5  ;;  %v9037_v15 = vrot.slane %v9036_v16, 4 }
 0x489   : > { %v2840_v43 = vsel %vm1855_vm8, %v2839_v5, %v2838_v41  ;;  %v2107_v55 = vsel %vm1933_vm9, %v2102_v49, 0  ;;  %v1599_v23 = vrot.slane %v1585_v34, %v6759_v14  ;;  %v9038_v5 = vld [vmem:[#allocation87_spill] sm:$0xff]  ;;  %v9040_v57 = vrot.slane %v7244_v29, 5 }
 0x48a   : > { %v2018_v39 = vsel %vm1843_vm4, %v9035_v27, %v9033_v46  ;;  %v2841_v25 = vpack.c.b16 %v2840_v43, %v2826_v6  ;;  %5197 = vmatpush3.bf16.xpose.msra.mxu1 %v2107_v55  ;;  %v1600_v0 = vcombine.low %v7362_v47, %v1592_v33  ;;  %v1601_v63 = vcombine.high %v7362_v47, %v1592_v33 }
 0x48b   : > { %v2020_v40 = vsel %vm1846_vm5, %v9037_v15, %v2018_v39  ;;  %v9039_v53 = vrot.slane %v9038_v5, 3  ;;  %v2032_v49 = vsel %vm1843_vm4, %v9040_v57, %v7275_v9  ;;  %v1616_v34 = vcombine.low %v7371_v31, %v1599_v23  ;;  %v9042_v39 = vld [vmem:[#allocation88_spill] sm:$0xff]  ;;  %5202 = vmatprep.subr.bf16.mxu1 %v8950_v26  ;;  %v9043_v15 = vld [vmem:[#allocation85_spill] sm:$0xff] }
 0x48c   : > { %5241 = vmatmul.mubr.msk.bf16.vlgmr.msra.gmra.mrb[8].mxu0 %vm1933_vm9, %v2841_v25  ;;  %v1617_v6 = vcombine.high %v7371_v31, %v1599_v23  ;;  %v9041_v43 = vrot.slane %v7246_v50, 4  ;;  %v1608_v46 = vrot.slane %v1600_v0, %v6763_v19  ;;  %v1615_v27 = vrot.slane %v1601_v63, %v6763_v19 }
 0x48d   : > { %v2022_v3 = vsel %vm1849_vm6, %v9039_v53, %v2020_v40  ;;  %v2025_v9 = vrot.slane %v9042_v39, 1  ;;  %v1624_v55 = vrot.slane %v1616_v34, %v6763_v19  ;;  %v9044_v31 = vrot.slane %v9043_v15, 2  ;;  %5252 = vmatprep.mubr.msk.bf16.mxu0 %vm6185_vm10, %v8950_v26 }
 0x48e   : > { %v2034_v47 = vsel %vm1846_vm5, %v9041_v43, %v2032_v49  ;;  %v1631_v25 = vrot.slane %v1617_v6, %v6763_v19  ;;  %v9045_v40 = vrot.slane %v7253_v22, 3  ;;  %v1632_v0 = vcombine.high %v1608_v46, %v8950_v26 }
 0x48f   : > { %v2024_v23 = vsel %vm1852_vm7, %v9044_v31, %v2022_v3  ;;  %v1633_v63 = vcombine.high %v1615_v27, %v8950_v26  ;;  %v1780_v57 = vpack.c.bf16 %v1608_v46, %v1608_v46  ;;  %v1782_v49 = vpack.c.bf16 %v1615_v27, %v1615_v27 }
 0x490   : > { %v2036_v53 = vsel %vm1849_vm6, %v9045_v40, %v2034_v47  ;;  %v1634_v34 = vcombine.high %v1624_v55, %v8950_v26  ;;  %v1635_v6 = vcombine.high %v1631_v25, %v8950_v26  ;;  %v1784_v43 = vpack.c.bf16 %v1624_v55, %v1624_v55 }
 0x491   : > { %v1786_v33 = vpack.c.bf16 %v1631_v25, %v1631_v25  ;;  %v1781_v3 = vpack.c.bf16 %v1632_v0, %v1632_v0  ;;  %v1783_v31 = vpack.c.bf16 %v1633_v63, %v1633_v63  ;;  %v7545_v41 = vunpack.c.l.b16 %v1780_v57 }
 0x492   : > { %v7547_v47 = vunpack.c.l.b16 %v1782_v49  ;;  %v3072_v40 = vsel %vm1840_vm3, %v7389_v56, %v3071_v20  ;;  %v1785_v19 = vpack.c.bf16 %v1634_v34, %v1634_v34  ;;  %v1787_v14 = vpack.c.bf16 %v1635_v6, %v1635_v6 }
 0x493   : > { %9046 = vst [vmem:[#allocation72_spill] sm:$0xff] %v7545_v41  ;;  %v7551_v22 = vunpack.c.l.b16 %v1784_v43  ;;  %v7553_v46 = vunpack.c.l.b16 %v1781_v3  ;;  %v7555_v27 = vunpack.c.l.b16 %v1783_v31  ;;  %v2679_v55 = vrot.slane %v7545_v41, 1 }
 0x494   : > { %v2026_v25 = vsel %vm1855_vm8, %v2025_v9, %v2024_v23  ;;  %v7559_v0 = vunpack.c.l.b16 %v1786_v33  ;;  %v2245_v63 = vrot.slane %v7547_v47, 6  ;;  %v9050_v57 = vrot.slane %v7248_v36, 2 }
 0x495   : > { %9047 = vst [vmem:[#allocation66_spill] sm:$0xff] %v7551_v22  ;;  %9048 = vst [vmem:[#allocation69_spill] sm:$0xff] %v7553_v46  ;;  %v2039_v49 = vrot.slane %v7260_v24, 1  ;;  %v7566_v34 = vunpack.c.l.b16 %v1785_v19  ;;  %v7568_v6 = vunpack.c.l.b16 %v1787_v14  ;;  %v2243_v43 = vrot.slane %v7553_v46, 7 }
 0x496   : > { %9049 = vst [vmem:[#allocation68_spill] sm:$0xff] %v7559_v0  ;;  %v2038_v20 = vsel %vm1852_vm7, %v9050_v57, %v2036_v53  ;;  %v7573_v3 = vsel %vm1837_vm2, %v7553_v46, %v2679_v55  ;;  %v2249_v33 = vrot.slane %v7551_v22, 4  ;;  %v3083_v23 = vrot.slane %v7545_v41, 2 }
 0x497   : > { %9051 = vst [vmem:[#allocation83_spill] sm:$0xff] %v7573_v3  ;;  %v3084_v53 = vrot.slane %v7553_v46, 1  ;;  %v2244_v19 = vsel %vm1837_vm2, %v2243_v43, %v7545_v41  ;;  %v2247_v14 = vrot.slane %v7555_v27, 5  ;;  %v3087_v3 = vrot.slane %v7555_v27, 7  ;;  %v9093_v46 = vld [vmem:[#allocation89_spill] sm:$0xff] }
 0x498   : > { %v3089_v36 = vrot.slane %v7551_v22, 6  ;;  %v2040_v9 = vsel %vm1855_vm8, %v2039_v49, %v2038_v20  ;;  %v9052_v43 = vrot.slane %v7389_v56, 6  ;;  %v2237_v31 = vrot.slane %v7402_v60, 3 }
 0x499   : > { %v3085_v55 = vsel %vm1837_vm2, %v3084_v53, %v3083_v23  ;;  %v2041_v50 = vpack.c.b16 %v2040_v9, %v2026_v25  ;;  %v9053_v57 = vrot.slane %v7396_v8, 5  ;;  %v2239_v53 = vrot.slane %v7404_v7, 2 }
 0x49a   : > { %v3086_v24 = vsel %vm1840_vm3, %v7547_v47, %v3085_v55  ;;  %v2232_v15 = vsel %vm1840_vm3, %v9052_v43, %v7431_v21  ;;  %v2241_v22 = vrot.slane %v7413_v12, 1  ;;  %v2246_v20 = vsel %vm1840_vm3, %v2245_v63, %v2244_v19 }
 0x49b   : > { %v2234_v23 = vsel %vm1843_vm4, %v9053_v57, %v2232_v15  ;;  %5199 = vmatmul.mubr.msk.bf16.vlgmr.msra.gmra.mrb[8].mxu1 %vm1933_vm9, %v2041_v50  ;;  %v9054_v25 = vrot.slane %v7391_v44, 4  ;;  %v2248_v21 = vsel %vm1843_vm4, %v2247_v14, %v2246_v20  ;;  %v2251_v9 = vrot.slane %v7566_v34, 3 }
 0x49c   : > { %v2253_v55 = vrot.slane %v7559_v0, 2  ;;  %v2250_v57 = vsel %vm1846_vm5, %v2249_v33, %v2248_v21  ;;  %v2255_v43 = vrot.slane %v7568_v6, 1  ;;  %v9055_v63 = vrot.slane %v7396_v8, 7  ;;  %5204 = vmatprep.mubr.msk.bf16.mxu1 %vm6185_vm10, %v8950_v26 }
 0x49d   : > { %v2236_v49 = vsel %vm1846_vm5, %v9054_v25, %v2234_v23  ;;  %v2252_v14 = vsel %vm1849_vm6, %v2251_v9, %v2250_v57  ;;  %v9056_v23 = vrot.slane %v7391_v44, 6  ;;  %v3088_v9 = vsel %vm1843_vm4, %v3087_v3, %v3086_v24 }
 0x49e   : > { %v2238_v15 = vsel %vm1849_vm6, %v2237_v31, %v2236_v49  ;;  %v3074_v50 = vsel %vm1843_vm4, %v9055_v63, %v3072_v40  ;;  %v3077_v31 = vrot.slane %v7402_v60, 5  ;;  %v2254_v25 = vsel %vm1852_vm7, %v2253_v55, %v2252_v14 }
 0x49f   : > { %v2240_v19 = vsel %vm1852_vm7, %v2239_v53, %v2238_v15  ;;  %v3076_v20 = vsel %vm1846_vm5, %v9056_v23, %v3074_v50  ;;  %v3079_v49 = vrot.slane %v7404_v7, 4  ;;  %v3081_v40 = vrot.slane %v7413_v12, 3 }
 0x4a0   : > { %v2242_v33 = vsel %vm1855_vm8, %v2241_v22, %v2240_v19  ;;  %v2256_v21 = vsel %vm1855_vm8, %v2255_v43, %v2254_v25  ;;  %v3078_v53 = vsel %vm1849_vm6, %v3077_v31, %v3076_v20  ;;  %v3091_v15 = vrot.slane %v7566_v34, 5  ;;  %v9057_v43 = vld [vmem:[#allocation75_spill] sm:$0xff] }
 0x4a1   : > { %v2257_v57 = vpack.c.b16 %v2256_v21, %v2242_v33  ;;  %v3080_v63 = vsel %vm1852_vm7, %v3079_v49, %v3078_v53  ;;  %v3090_v50 = vsel %vm1846_vm5, %v3089_v36, %v3088_v9  ;;  %v3093_v22 = vrot.slane %v7559_v0, 4  ;;  %v9060_v21 = vld [vmem:[#allocation79_spill] sm:$0xff] }
 0x4a2   : > { %v3082_v55 = vsel %vm1855_vm8, %v3081_v40, %v3080_v63  ;;  %v3092_v19 = vsel %vm1849_vm6, %v3091_v15, %v3090_v50  ;;  %v3095_v14 = vrot.slane %v7568_v6, 3  ;;  %v9058_v23 = vrot.slane %v6903_v32, 7 }
 0x4a3   : > { %5203 = vmatpush3.bf16.msra.mxu1 %v2257_v57  ;;  %v3094_v3 = vsel %vm1852_vm7, %v3093_v22, %v3092_v19  ;;  %v9059_v20 = vrot.slane %v6909_v1, 6  ;;  %v2444_v31 = vrot.slane %v6913_v38, 5  ;;  %v2446_v33 = vrot.slane %v6919_v11, 4 }
 0x4a4   : > { %v2441_v24 = vsel %vm1840_vm3, %v9058_v23, %v9057_v43  ;;  %v3096_v25 = vsel %vm1855_vm8, %v3095_v14, %v3094_v3  ;;  %5208 = vmatprep.subr.bf16.mxu1 %v8950_v26  ;;  %v2448_v49 = vrot.slane %v6915_v62, 3  ;;  %v2450_v40 = vrot.slane %v6921_v13, 2  ;;  %v9063_v23 = vld [vmem:[#allocation78_spill] sm:$0xff] }
 0x4a5   : > { %v2443_v36 = vsel %vm1843_vm4, %v9059_v20, %v2441_v24  ;;  %v9061_v53 = vrot.slane %v6968_v51, 7  ;;  %v3097_v15 = vpack.c.b16 %v3096_v25, %v3082_v55  ;;  %v9062_v63 = vrot.slane %v6974_v59, 6  ;;  %v9064_v20 = vld [vmem:[#allocation81_spill] sm:$0xff] }
 0x4a6   : > { %v2445_v57 = vsel %vm1846_vm5, %v2444_v31, %v2443_v36  ;;  %v2458_v22 = vrot.slane %v6976_v18, 5  ;;  %v2460_v14 = vrot.slane %v6981_v17, 4  ;;  %v2462_v43 = vrot.slane %v6978_v52, 3  ;;  %v9065_v36 = vld [vmem:[#allocation80_spill] sm:$0xff] }
 0x4a7   : > { %v2455_v9 = vsel %vm1840_vm3, %v9061_v53, %v9060_v21  ;;  %v2447_v19 = vsel %vm1849_vm6, %v2446_v33, %v2445_v57  ;;  %v2464_v24 = vrot.slane %v9063_v23, 2  ;;  %5251 = vmatpush3.bf16.msra.mxu0 %v3097_v15  ;;  %v9066_v31 = vrot.slane %v9065_v36, 6  ;;  %v9069_v57 = vld [vmem:[#allocation98_spill] sm:$0xff] }
 0x4a8   : > { %v2457_v50 = vsel %vm1843_vm4, %v9062_v63, %v2455_v9  ;;  %v2449_v3 = vsel %vm1852_vm7, %v2448_v49, %v2447_v19  ;;  %v2421_v21 = vrot.slane %v7030_v30, 2  ;;  %v9068_v9 = vrot.slane %v7008_v61, 5  ;;  %v9070_v49 = vld [vmem:[#allocation94_spill] sm:$0xff]  ;;  %5262 = vmatprep.subr.bf16.mxu0 %v8950_v26 }
 0x4a9   : > { %v2459_v55 = vsel %vm1846_vm5, %v2458_v22, %v2457_v50  ;;  %v2414_v25 = vsel %vm1843_vm4, %v9066_v31, %v9064_v20  ;;  %v7671_v33 = vsel %vm1855_vm8, %v2450_v40, %v2449_v3  ;;  %v9071_v63 = vrot.slane %v9070_v49, 6 }
 0x4aa   : > { %9067 = vst [vmem:[#allocation100_spill] sm:$0xff] %v7671_v33  ;;  %v2461_v53 = vsel %vm1849_vm6, %v2460_v14, %v2459_v55  ;;  %v2416_v15 = vsel %vm1846_vm5, %v9068_v9, %v2414_v25  ;;  %v9072_v19 = vrot.slane %v7022_v54, 4  ;;  %v9073_v3 = vrot.slane %v7153_v45, 5  ;;  %v9078_v9 = vld [vmem:[#allocation55_spill] sm:$0xff]  ;;  %v9088_v33 = vld [vmem:[#allocation70_spill] sm:$0xff] }
 0x4ab   : > { %v2428_v50 = vsel %vm1843_vm4, %v9071_v63, %v9069_v57  ;;  %v2463_v22 = vsel %vm1852_vm7, %v2462_v43, %v2461_v53  ;;  %v2435_v55 = vrot.slane %v7166_v48, 2  ;;  %v9075_v36 = vrot.slane %v7010_v10, 3  ;;  %v9077_v53 = vld [vmem:[#allocation62_spill] sm:$0xff]  ;;  %v9086_v63 = vld [vmem:[#allocation60_spill] sm:$0xff] }
 0x4ac   : > { %v2418_v40 = vsel %vm1849_vm6, %v9072_v19, %v2416_v15  ;;  %v2430_v14 = vsel %vm1846_vm5, %v9073_v3, %v2428_v50  ;;  %v7691_v20 = vsel %vm1855_vm8, %v2464_v24, %v2463_v22  ;;  %v9076_v25 = vrot.slane %v7157_v37, 4  ;;  %v9081_v22 = vld [vmem:[#allocation57_spill] sm:$0xff]  ;;  %v9098_v37 = vld [vmem:[#allocation107_spill] sm:$0xff] }
 0x4ad   : > { %9074 = vst [vmem:[#allocation90_spill] sm:$0xff] %v7691_v20  ;;  %v2420_v31 = vsel %vm1852_vm7, %v9075_v36, %v2418_v40  ;;  %v9079_v15 = vrot.slane %v9078_v9, 7  ;;  %v9080_v24 = vrot.slane %v9011_v42, 3  ;;  %v9082_v19 = vrot.slane %v9081_v22, 6  ;;  %v9089_v20 = vld [vmem:[#allocation64_spill] sm:$0xff] }
 0x4ae   : > { %v2432_v43 = vsel %vm1849_vm6, %v9076_v25, %v2430_v14  ;;  %v7714_v14 = vsel %vm1855_vm8, %v2421_v21, %v2420_v31  ;;  %v9085_v25 = vld [vmem:[#allocation58_spill] sm:$0xff]  ;;  %v2551_v49 = vrot.slane %v9086_v63, 4  ;;  %v9091_v31 = vld [vmem:[#allocation61_spill] sm:$0xff]  ;;  %v2563_v26 = vrot.slane %v9019_v35, 5 }
 0x4af   : > { %v2546_v57 = vsel %vm1840_vm3, %v9079_v15, %v9077_v53  ;;  %v2434_v50 = vsel %vm1852_vm7, %v9080_v24, %v2432_v43  ;;  %9083 = vst [vmem:[#allocation86_spill] sm:$0xff] %v7714_v14  ;;  %v2549_v53 = vrot.slane %v9085_v25, 5  ;;  %v9087_v43 = vld [vmem:[#allocation59_spill] sm:$0xff]  ;;  %v2555_v3 = vrot.slane %v9091_v31, 2 }
 0x4b0   : > { %v2548_v40 = vsel %vm1843_vm4, %v9082_v19, %v2546_v57  ;;  %v7717_v36 = vsel %vm1855_vm8, %v2435_v55, %v2434_v50  ;;  %v2553_v24 = vrot.slane %v9087_v43, 3  ;;  %v9090_v57 = vrot.slane %v9089_v20, 7 }
 0x4b1   : > { %9084 = vst [vmem:[#allocation84_spill] sm:$0xff] %v7717_v36  ;;  %v2550_v21 = vsel %vm1846_vm5, %v2549_v53, %v2548_v40  ;;  %v9092_v55 = vrot.slane %v9020_v28, 6  ;;  %v2565_v14 = vrot.slane %v9022_v58, 4  ;;  %v2567_v36 = vrot.slane %v9023_v2, 3 }
 0x4b2   : > { %v2560_v19 = vsel %vm1840_vm3, %v9090_v57, %v9088_v33  ;;  %v2552_v15 = vsel %vm1849_vm6, %v2551_v49, %v2550_v21  ;;  %v9094_v41 = vrot.slane %v9034_v4, 6  ;;  %v9095_v57 = vld [vmem:[#allocation71_spill] sm:$0xff]  ;;  %v9097_v21 = vrot.slane %v9038_v5, 4 }
 0x4b3   : > { %v2562_v50 = vsel %vm1843_vm4, %v9092_v55, %v2560_v19  ;;  %v2554_v40 = vsel %vm1852_vm7, %v2553_v24, %v2552_v15  ;;  %v2569_v42 = vrot.slane %v9095_v57, 2  ;;  %v9096_v19 = vrot.slane %v9036_v16, 5  ;;  %v9101_v24 = vld [vmem:[#allocation85_spill] sm:$0xff] }
 0x4b4   : > { %v2519_v33 = vsel %vm1843_vm4, %v9094_v41, %v9093_v46  ;;  %v2564_v53 = vsel %vm1846_vm5, %v2563_v26, %v2562_v50  ;;  %v2526_v4 = vrot.slane %v9042_v39, 2  ;;  %v9099_v41 = vrot.slane %v7244_v29, 6 }
 0x4b5   : > { %v2521_v55 = vsel %vm1846_vm5, %v9096_v19, %v2519_v33  ;;  %v2566_v49 = vsel %vm1849_vm6, %v2565_v14, %v2564_v53  ;;  %v7757_v26 = vsel %vm1855_vm8, %v2555_v3, %v2554_v40  ;;  %v9102_v50 = vrot.slane %v9101_v24, 3  ;;  %v9103_v33 = vld [vmem:[#allocation101_spill] sm:$0xff]  ;;  %v9109_v40 = vld [vmem:[#allocation112_spill] sm:$0xff] }
 0x4b6   : > { %v2523_v48 = vsel %vm1849_vm6, %v9097_v21, %v2521_v55  ;;  %v2533_v46 = vsel %vm1843_vm4, %v9099_v41, %v9098_v37  ;;  %9100 = vst [vmem:[#allocation87_spill] sm:$0xff] %v7757_v26  ;;  %v2568_v15 = vsel %vm1852_vm7, %v2567_v36, %v2566_v49  ;;  %v9104_v53 = vrot.slane %v9103_v33, 5  ;;  %v9106_v21 = vld [vmem:[#allocation104_spill] sm:$0xff]  ;;  %v9108_v41 = vld [vmem:[#allocation105_spill] sm:$0xff] }
 0x4b7   : > { %v2525_v14 = vsel %vm1852_vm7, %v9102_v50, %v2523_v48  ;;  %v7767_v55 = vsel %vm1855_vm8, %v2569_v42, %v2568_v15  ;;  %v9107_v29 = vrot.slane %v9106_v21, 4  ;;  %v2540_v3 = vrot.slane %v9108_v41, 2  ;;  %v9111_v50 = vld [vmem:[#allocation102_spill] sm:$0xff] }
 0x4b8   : > { %v2535_v19 = vsel %vm1846_vm5, %v9104_v53, %v2533_v46  ;;  %9105 = vst [vmem:[#allocation75_spill] sm:$0xff] %v7767_v55  ;;  %v9110_v36 = vrot.slane %v7389_v56, 7  ;;  %v9112_v45 = vrot.slane %v9111_v50, 3  ;;  %v9113_v42 = vrot.slane %v7396_v8, 6 }
 0x4b9   : > { %v2537_v37 = vsel %vm1849_vm6, %v9107_v29, %v2535_v19  ;;  %v2673_v53 = vrot.slane %v7402_v60, 4  ;;  %v7787_v19 = vsel %vm1855_vm8, %v2526_v4, %v2525_v14  ;;  %v2675_v48 = vrot.slane %v7404_v7, 3 }
 0x4ba   : > { %v2668_v49 = vsel %vm1840_vm3, %v9110_v36, %v9109_v40  ;;  %v2539_v46 = vsel %vm1852_vm7, %v9112_v45, %v2537_v37  ;;  %9114 = vst [vmem:[#allocation79_spill] sm:$0xff] %v7787_v19  ;;  %v9116_v40 = vrot.slane %v7391_v44, 5  ;;  %v9118_v4 = vrot.slane %v7547_v47, 7 }
 0x4bb   : > { %v2670_v15 = vsel %vm1843_vm4, %v9113_v42, %v2668_v49  ;;  %v7790_v29 = vsel %vm1855_vm8, %v2540_v3, %v2539_v46  ;;  %v2677_v49 = vrot.slane %v7413_v12, 2  ;;  %v9117_v42 = vld [vmem:[#allocation83_spill] sm:$0xff]  ;;  %v9119_v46 = vrot.slane %v7555_v27, 6 }
 0x4bc   : > { %9115 = vst [vmem:[#allocation78_spill] sm:$0xff] %v7790_v29  ;;  %v2672_v36 = vsel %vm1846_vm5, %v9116_v40, %v2670_v15  ;;  %v2682_v14 = vsel %vm1840_vm3, %v9118_v4, %v9117_v42  ;;  %v2687_v40 = vrot.slane %v7566_v34, 4  ;;  %v2689_v26 = vrot.slane %v7559_v0, 3  ;;  %v9123_v42 = vld [vmem:[#allocation54_spill] sm:$0xff] }
 0x4bd   : > { %v2674_v37 = vsel %vm1849_vm6, %v2673_v53, %v2672_v36  ;;  %v2684_v15 = vsel %vm1843_vm4, %v9119_v46, %v2682_v14  ;;  %v9121_v53 = vld [vmem:[#allocation66_spill] sm:$0xff]  ;;  %v2691_v29 = vrot.slane %v7568_v6, 2  ;;  %v9124_v4 = vrot.slane %v9123_v42, 2 }
 0x4be   : > { %v2676_v3 = vsel %vm1852_vm7, %v2675_v48, %v2674_v37  ;;  %v9122_v36 = vrot.slane %v9121_v53, 5  ;;  %v9125_v48 = vld [vmem:[#allocation56_spill] sm:$0xff]  ;;  %v2957_v42 = vrot.slane %v9087_v43, 4 }
 0x4bf   : > { %v7811_v45 = vsel %vm1855_vm8, %v2677_v49, %v2676_v3  ;;  %v9126_v37 = vrot.slane %v9125_v48, 1  ;;  %v2953_v49 = vrot.slane %v9085_v25, 6  ;;  %v2955_v3 = vrot.slane %v9086_v63, 5 }
 0x4c0   : > { %9120 = vst [vmem:[#allocation81_spill] sm:$0xff] %v7811_v45  ;;  %v2686_v19 = vsel %vm1846_vm5, %v9122_v36, %v2684_v15  ;;  %v9127_v15 = vrot.slane %v9081_v22, 7  ;;  %v2959_v48 = vrot.slane %v9091_v31, 3  ;;  %v9137_v45 = vld [vmem:[#allocation108_spill] sm:$0xff] }
 0x4c1   : > { %v2949_v55 = vsel %vm1837_vm2, %v9126_v37, %v9124_v4  ;;  %v2688_v14 = vsel %vm1849_vm6, %v2687_v40, %v2686_v19  ;;  %v9131_v37 = vld [vmem:[#allocation65_spill] sm:$0xff] }
 0x4c2   : > { %v2950_v46 = vsel %vm1840_vm3, %v9078_v9, %v2949_v55  ;;  %v2690_v0 = vsel %vm1852_vm7, %v2689_v26, %v2688_v14  ;;  %v9129_v55 = vld [vmem:[#allocation63_spill] sm:$0xff]  ;;  %v9132_v9 = vrot.slane %v9131_v37, 1  ;;  %v2967_v26 = vrot.slane %v9019_v35, 6 }
 0x4c3   : > { %v2952_v36 = vsel %vm1843_vm4, %v9127_v15, %v2950_v46  ;;  %v7834_v4 = vsel %vm1855_vm8, %v2691_v29, %v2690_v0  ;;  %v9130_v40 = vrot.slane %v9129_v55, 2  ;;  %v2969_v0 = vrot.slane %v9022_v58, 5 }
 0x4c4   : > { %9128 = vst [vmem:[#allocation80_spill] sm:$0xff] %v7834_v4  ;;  %v2954_v19 = vsel %vm1846_vm5, %v2953_v49, %v2952_v36  ;;  %v9133_v49 = vrot.slane %v9020_v28, 7  ;;  %v9138_v4 = vrot.slane %v9103_v33, 6 }
 0x4c5   : > { %v2963_v63 = vsel %vm1837_vm2, %v9132_v9, %v9130_v40  ;;  %v2956_v46 = vsel %vm1849_vm6, %v2955_v3, %v2954_v19  ;;  %v2971_v9 = vrot.slane %v9023_v2, 4  ;;  %v2973_v40 = vrot.slane %v9095_v57, 3  ;;  %v9134_v19 = vld [vmem:[#allocation91_spill] sm:$0xff] }
 0x4c6   : > { %v2964_v15 = vsel %vm1840_vm3, %v9089_v20, %v2963_v63  ;;  %v2958_v29 = vsel %vm1852_vm7, %v2957_v42, %v2956_v46  ;;  %v9135_v63 = vrot.slane %v9036_v16, 6  ;;  %v2930_v42 = vrot.slane %v9042_v39, 3 }
 0x4c7   : > { %v2966_v36 = vsel %vm1843_vm4, %v9133_v49, %v2964_v15  ;;  %v7856_v35 = vsel %vm1855_vm8, %v2959_v48, %v2958_v29  ;;  %v9136_v15 = vrot.slane %v9038_v5, 5  ;;  %v2939_v48 = vsel %vm1846_vm5, %v9138_v4, %v9137_v45 }
 0x4c8   : > { %v2968_v3 = vsel %vm1846_vm5, %v2967_v26, %v2966_v36  ;;  %v2925_v14 = vsel %vm1846_vm5, %v9135_v63, %v9134_v19  ;;  %v2944_v26 = vrot.slane %v9108_v41, 3  ;;  %v9139_v36 = vrot.slane %v9101_v24, 4 }
 0x4c9   : > { %v2970_v46 = vsel %vm1849_vm6, %v2969_v0, %v2968_v3  ;;  %v2927_v49 = vsel %vm1849_vm6, %v9136_v15, %v2925_v14  ;;  %v9140_v63 = vrot.slane %v9106_v21, 5  ;;  %v9141_v3 = vld [vmem:[#allocation73_spill] sm:$0xff]  ;;  %v9143_v14 = vld [vmem:[#allocation74_spill] sm:$0xff] }
 0x4ca   : > { %v2972_v29 = vsel %vm1852_vm7, %v2971_v9, %v2970_v46  ;;  %v2929_v19 = vsel %vm1852_vm7, %v9139_v36, %v2927_v49  ;;  %v9142_v39 = vrot.slane %v9141_v3, 3  ;;  %v9144_v15 = vrot.slane %v9143_v14, 2  ;;  %v9147_v3 = vld [vmem:[#allocation76_spill] sm:$0xff] }
 0x4cb   : > { %v2941_v0 = vsel %vm1849_vm6, %v9140_v63, %v2939_v48  ;;  %v7886_v45 = vsel %vm1855_vm8, %v2973_v40, %v2972_v29  ;;  %v7889_v4 = vsel %vm1855_vm8, %v2930_v42, %v2929_v19  ;;  %v9145_v9 = vrot.slane %v9111_v50, 4 }
 0x4cc   : > { %v3248_v33 = vsel %vm1837_vm2, %v9144_v15, %v9142_v39  ;;  %v9146_v49 = vrot.slane %v6903_v32, 1  ;;  %v3252_v40 = vrot.slane %v6913_v38, 7  ;;  %v3490_v42 = vrot.slane %v7547_v47, 1 }
 0x4cd   : > { %v2943_v46 = vsel %vm1852_vm7, %v9145_v9, %v2941_v0  ;;  %v3493_v29 = vrot.slane %v9121_v53, 7  ;;  %v3256_v0 = vrot.slane %v6915_v62, 5  ;;  %v9148_v14 = vrot.slane %v9147_v3, 3  ;;  %v9156_v3 = vld [vmem:[#allocation99_spill] sm:$0xff] }
 0x4ce   : > { %v3250_v48 = vsel %vm1840_vm3, %v9146_v49, %v3248_v33  ;;  %v7900_v63 = vsel %vm1855_vm8, %v2944_v26, %v2943_v46  ;;  %v3254_v33 = vrot.slane %v6919_v11, 6  ;;  %v3258_v26 = vrot.slane %v6921_v13, 4 }
 0x4cf   : > { %v3251_v39 = vsel %vm1843_vm4, %v6909_v1, %v3250_v48  ;;  %v9149_v1 = vld [vmem:[#allocation77_spill] sm:$0xff]  ;;  %v9151_v53 = vrot.slane %v6968_v51, 1  ;;  %v3266_v11 = vrot.slane %v6976_v18, 7  ;;  %v3268_v46 = vrot.slane %v6981_v17, 6  ;;  %v9152_v48 = vld [vmem:[#allocation82_spill] sm:$0xff] }
 0x4d0   : > { %v3253_v19 = vsel %vm1846_vm5, %v3252_v40, %v3251_v39  ;;  %v9150_v15 = vrot.slane %v9149_v1, 2  ;;  %v3270_v49 = vrot.slane %v6978_v52, 5  ;;  %v9153_v39 = vrot.slane %v7008_v61, 7 }
 0x4d1   : > { %v3255_v47 = vsel %vm1849_vm6, %v3254_v33, %v3253_v19  ;;  %v3272_v18 = vrot.slane %v9063_v23, 4  ;;  %v9154_v17 = vrot.slane %v7022_v54, 6  ;;  %v9155_v52 = vrot.slane %v7010_v10, 5  ;;  %v9159_v23 = vld [vmem:[#allocation95_spill] sm:$0xff] }
 0x4d2   : > { %v3262_v38 = vsel %vm1837_vm2, %v9150_v15, %v9148_v14  ;;  %v3257_v62 = vsel %vm1852_vm7, %v3256_v0, %v3255_v47  ;;  %v3224_v40 = vsel %vm1846_vm5, %v9153_v39, %v9152_v48  ;;  %v3229_v61 = vrot.slane %v7030_v30, 4  ;;  %v9157_v14 = vld [vmem:[#allocation93_spill] sm:$0xff]  ;;  %v9164_v10 = vld [vmem:[#allocation111_spill] sm:$0xff]  ;;  %v9166_v48 = vld [vmem:[#allocation96_spill] sm:$0xff] }
 0x4d3   : > { %v3264_v9 = vsel %vm1840_vm3, %v9151_v53, %v3262_v38  ;;  %v7933_v51 = vsel %vm1855_vm8, %v3258_v26, %v3257_v62  ;;  %v3226_v19 = vsel %vm1849_vm6, %v9154_v17, %v3224_v40  ;;  %v9158_v26 = vrot.slane %v9157_v14, 7  ;;  %v9161_v47 = vld [vmem:[#allocation97_spill] sm:$0xff] }
 0x4d4   : > { %v3265_v13 = vsel %vm1843_vm4, %v6974_v59, %v3264_v9  ;;  %v3228_v0 = vsel %vm1852_vm7, %v9155_v52, %v3226_v19  ;;  %v9160_v38 = vrot.slane %v9159_v23, 6  ;;  %v3243_v53 = vrot.slane %v9161_v47, 4  ;;  %v9162_v9 = vld [vmem:[#allocation110_spill] sm:$0xff] }
 0x4d5   : > { %v3267_v33 = vsel %vm1846_vm5, %v3266_v11, %v3265_v13  ;;  %v3238_v1 = vsel %vm1846_vm5, %v9158_v26, %v9156_v3  ;;  %v9163_v11 = vrot.slane %v9162_v9, 3  ;;  %v7963_v13 = vsel %vm1855_vm8, %v3229_v61, %v3228_v0  ;;  %v9170_v3 = vld [vmem:[#allocation72_spill] sm:$0xff]  ;;  %v9172_v26 = vld [vmem:[#allocation69_spill] sm:$0xff] }
 0x4d6   : > { %v3269_v59 = vsel %vm1849_vm6, %v3268_v46, %v3267_v33  ;;  %v3240_v54 = vsel %vm1849_vm6, %v9160_v38, %v3238_v1  ;;  %v9165_v46 = vrot.slane %v9164_v10, 2  ;;  %v9168_v40 = vrot.slane %v7389_v56, 1  ;;  %v9175_v10 = vld [vmem:[#allocation54_spill] sm:$0xff] }
 0x4d7   : > { %v3271_v15 = vsel %vm1852_vm7, %v3270_v49, %v3269_v59  ;;  %v9167_v49 = vrot.slane %v9166_v48, 5  ;;  %v3481_v59 = vrot.slane %v7402_v60, 6  ;;  %v9169_v0 = vrot.slane %v7391_v44, 7 }
 0x4d8   : > { %v3475_v62 = vsel %vm1837_vm2, %v9165_v46, %v9163_v11  ;;  %v7960_v30 = vsel %vm1855_vm8, %v3272_v18, %v3271_v15  ;;  %v3483_v61 = vrot.slane %v7404_v7, 5  ;;  %v9171_v14 = vrot.slane %v9170_v3, 3  ;;  %v9174_v7 = vld [vmem:[#allocation68_spill] sm:$0xff] }
 0x4d9   : > { %v3242_v39 = vsel %vm1852_vm7, %v9167_v49, %v3240_v54  ;;  %v3477_v33 = vsel %vm1840_vm3, %v9168_v40, %v3475_v62  ;;  %v9173_v1 = vrot.slane %v9172_v26, 2  ;;  %v3495_v38 = vrot.slane %v7566_v34, 6  ;;  %v9177_v46 = vld [vmem:[#allocation56_spill] sm:$0xff]  ;;  %v9185_v26 = vld [vmem:[#allocation67_spill] sm:$0xff] }
 0x4da   : > { %v7974_v19 = vsel %vm1855_vm8, %v3243_v53, %v3242_v39  ;;  %v3478_v18 = vsel %vm1843_vm4, %v7396_v8, %v3477_v33  ;;  %v3485_v8 = vrot.slane %v7413_v12, 4  ;;  %v3497_v47 = vrot.slane %v9174_v7, 5 }
 0x4db   : > { %v3480_v56 = vsel %vm1846_vm5, %v9169_v0, %v3478_v18  ;;  %v3489_v15 = vsel %vm1837_vm2, %v9173_v1, %v9171_v14  ;;  %v3499_v53 = vrot.slane %v7568_v6, 4  ;;  %v9176_v12 = vrot.slane %v9175_v10, 3  ;;  %v9181_v6 = vld [vmem:[#allocation60_spill] sm:$0xff]  ;;  %v9191_v10 = vld [vmem:[#allocation101_spill] sm:$0xff] }
 0x4dc   : > { %v3482_v23 = vsel %vm1849_vm6, %v3481_v59, %v3480_v56  ;;  %v3491_v60 = vsel %vm1840_vm3, %v3490_v42, %v3489_v15  ;;  %v9178_v42 = vrot.slane %v9177_v46, 2  ;;  %v3357_v62 = vrot.slane %v9085_v25, 7 }
 0x4dd   : > { %v3484_v44 = vsel %vm1852_vm7, %v3483_v61, %v3482_v23  ;;  %v3492_v54 = vsel %vm1843_vm4, %v7555_v27, %v3491_v60  ;;  %v9179_v27 = vld [vmem:[#allocation55_spill] sm:$0xff]  ;;  %v3359_v40 = vrot.slane %v9181_v6, 6  ;;  %v3361_v33 = vrot.slane %v9087_v43, 5 }
 0x4de   : > { %v8000_v9 = vsel %vm1855_vm8, %v3485_v8, %v3484_v44  ;;  %v3494_v11 = vsel %vm1846_vm5, %v3493_v29, %v3492_v54  ;;  %v3353_v34 = vsel %vm1837_vm2, %v9178_v42, %v9176_v12  ;;  %v9180_v49 = vrot.slane %v9179_v27, 1  ;;  %v9186_v54 = vld [vmem:[#allocation92_spill] sm:$0xff] }
 0x4df   : > { %v3496_v48 = vsel %vm1849_vm6, %v3495_v38, %v3494_v11  ;;  %v3363_v59 = vrot.slane %v9091_v31, 4  ;;  %v9182_v0 = vrot.slane %v9129_v55, 3  ;;  %v9183_v25 = vrot.slane %v9131_v37, 2  ;;  %v9190_v11 = vld [vmem:[#allocation109_spill] sm:$0xff] }
 0x4e0   : > { %v3355_v39 = vsel %vm1840_vm3, %v9180_v49, %v3353_v34  ;;  %v3498_v29 = vsel %vm1852_vm7, %v3497_v47, %v3496_v48  ;;  %v9184_v43 = vrot.slane %v9089_v20, 1  ;;  %v3371_v1 = vrot.slane %v9185_v26, 7 }
 0x4e1   : > { %v3356_v18 = vsel %vm1843_vm4, %v9081_v22, %v3355_v39  ;;  %v3367_v56 = vsel %vm1837_vm2, %v9183_v25, %v9182_v0  ;;  %v8025_v61 = vsel %vm1855_vm8, %v3499_v53, %v3498_v29  ;;  %v3373_v37 = vrot.slane %v9022_v58, 6  ;;  %v9189_v53 = vld [vmem:[#allocation88_spill] sm:$0xff]  ;;  %v9196_v29 = vld [vmem:[#allocation45_spill] sm:$0xff] }
 0x4e2   : > { %v3358_v3 = vsel %vm1846_vm5, %v3357_v62, %v3356_v18  ;;  %v3369_v14 = vsel %vm1840_vm3, %v9184_v43, %v3367_v56  ;;  %v3346_v15 = vrot.slane %v9111_v50, 5  ;;  %v3375_v8 = vrot.slane %v9023_v2, 5 }
 0x4e3   : > { %v3360_v31 = vsel %vm1849_vm6, %v3359_v40, %v3358_v3  ;;  %v3370_v55 = vsel %vm1843_vm4, %v9020_v28, %v3369_v14  ;;  %v3377_v44 = vrot.slane %v9095_v57, 4  ;;  %v9187_v28 = vrot.slane %v9036_v16, 7 }
 0x4e4   : > { %v3362_v23 = vsel %vm1852_vm7, %v3361_v33, %v3360_v31  ;;  %v3372_v20 = vsel %vm1846_vm5, %v3371_v1, %v3370_v55  ;;  %v9188_v7 = vrot.slane %v9038_v5, 6  ;;  %v3334_v2 = vrot.slane %v9189_v53, 4  ;;  %v9197_v55 = vld [vmem:[#allocation51_spill] sm:$0xff] }
 0x4e5   : > { %v8043_v60 = vsel %vm1855_vm8, %v3363_v59, %v3362_v23  ;;  %v3374_v38 = vsel %vm1849_vm6, %v3373_v37, %v3372_v20  ;;  %v3329_v58 = vsel %vm1846_vm5, %v9187_v28, %v9186_v54  ;;  %v9192_v12 = vrot.slane %v9191_v10, 7 }
 0x4e6   : > { %v3376_v50 = vsel %vm1852_vm7, %v3375_v8, %v3374_v38  ;;  %v3331_v47 = vsel %vm1849_vm6, %v9188_v7, %v3329_v58  ;;  %v9193_v16 = vrot.slane %v9101_v24, 5  ;;  %v9194_v34 = vrot.slane %v9106_v21, 6  ;;  %v9195_v21 = vld [vmem:[#allocation44_spill] sm:$0xff]  ;;  %v9198_v38 = vld [vmem:[#allocation50_spill] sm:$0xff] }
 0x4e7   : > { %v3343_v46 = vsel %vm1846_vm5, %v9192_v12, %v9190_v11  ;;  %v8061_v57 = vsel %vm1855_vm8, %v3377_v44, %v3376_v50  ;;  %v3348_v62 = vrot.slane %v9108_v41, 4 }
 0x4e8   : > { %v3333_v42 = vsel %vm1852_vm7, %v9193_v16, %v3331_v47  ;;  %v3345_v5 = vsel %vm1849_vm6, %v9194_v34, %v3343_v46 }
 0x4e9   : > { %v3347_v27 = vsel %vm1852_vm7, %v3346_v15, %v3345_v5  ;;  %v8074_v49 = vsel %vm1855_vm8, %v3334_v2, %v3333_v42 }
 0x4ea   : > { %v8077_v39 = vsel %vm1855_vm8, %v3348_v62, %v3347_v27 }
 0x556   : > { %v1974_v6 = vpop.f32.mrb[4].mxu1 }
 0x557   : > { %v1975_v40 = vadd.f32 %v1974_v6, %v9195_v21  ;;  %v5194_v33 = vpop.f32.mrb[5].mxu1 }
 0x558   : > { %v1977_v41 = vpop.f32.mrb[6].mxu1 }
 0x559   : > { %v1978_v18 = vadd.f32 %v1977_v41, %v9196_v29  ;;  %v5195_v59 = vpop.f32.mrb[7].mxu1  ;;  %v2151_v0 = vsel %vm2150_vm11, %v1975_v40, -inf }
 0x55a   : > { %2152 = vmax.xlane.f32.xlu0 %v2151_v0 }
 0x55b   : > { %v2154_v25 = vsel %vm2150_vm11, %v1978_v18, -inf }
 0x55c   : > { %2155 = vmax.xlane.f32.xlu1 %v2154_v25 }
 0x55f   : > { %v8085_v56 = vpop.f32.mrb[8].mxu0 }
 0x560   : > { %v5242_v3 = vpop.f32.mrb[9].mxu0 }
 0x561   : > { %v8087_v43 = vpop.f32.mrb[10].mxu0  ;;  %v9199_v3 = vld [vmem:[#allocation103_spill] sm:$0xff] }
 0x562   : > { %v5243_v14 = vpop.f32.mrb[11].mxu0 }
 0x56d   : > { %1482 = vrot.lane.b32.xlu1 %v9197_v55, %s6181_s7 }
 0x56e   : > { %v2143_v26 = vpop.f32.mrb[8].mxu1 }
 0x56f   : > { %v2144_v1 = vadd.f32 %v2143_v26, %v9195_v21  ;;  %v5200_v31 = vpop.f32.mrb[9].mxu1 }
 0x570   : > { %v2146_v37 = vpop.f32.mrb[10].mxu1  ;;  %v9200_v31 = vld [vmem:[#allocation52_spill] sm:$0xff] }
 0x571   : > { %v2147_v15 = vadd.f32 %v2146_v37, %v9196_v29  ;;  %v5201_v23 = vpop.f32.mrb[11].mxu1  ;;  %v2157_v20 = vsel %vm2150_vm11, %v2144_v1, -inf }
 0x572   : > { %2158 = vmax.xlane.f32.xlu0 %v2157_v20 }
 0x573   : > { %v2160_v8 = vsel %vm2150_vm11, %v2147_v15, -inf }
 0x576   : > { %2161 = vmax.xlane.f32.xlu0 %v2160_v8 }
 0x58c   : > { %1480 = vrot.lane.b32.xlu0 %v9198_v38, %s6181_s7 }
 0x5e7   : > { %v2153_v44 = vpop.xlane.xlu0 %2152 }
 0x5e8   : > { %v2163_v54 = vsub.f32 %v1975_v40, %v2153_v44  ;;  %v9201_v44 = vld [vmem:[#allocation106_spill] sm:$0xff] }
 0x5e9   : > { %v2156_v28 = vpop.xlane.xlu1 %2155 }
 0x5ea   : > { %v2167_v58 = vmul.f32 1.442695, %v2163_v54  ;;  %v2164_v50 = vsub.f32 %v1978_v18, %v2156_v28 }
 0x5ec   : > { %5531 = vpow2.f32 %v2167_v58  ;;  %v2169_v7 = vmul.f32 1.442695, %v2164_v50 }
 0x5ed   : > { %v1483_v33 = vpop.permute.xlu1 %1482 }
 0x5ee   : > { %5533 = vpow2.f32 %v2169_v7 }
 0x5f6   : > { %v5532_v47 = vpop.eup %5531 }
 0x5f7   : > { %v2175_v53 = vsel %vm2150_vm11, %v5532_v47, 0.0 }
 0x5f8   : > { %v8098_v2 = vpop.eup %5533  ;;  %2176 = vadd.xlane.f32.xlu0 %v2175_v53 }
 0x5f9   : > { %v2178_v11 = vsel %vm2150_vm11, %v8098_v2, 0.0 }
 0x5fa   : > { %2179 = vadd.xlane.f32.xlu1 %v2178_v11 }
 0x5ff   : > { %v2159_v10 = vpop.xlane.xlu0 %2158 }
 0x600   : > { %v2165_v46 = vsub.f32 %v2144_v1, %v2159_v10  ;;  %v1704_v1 = vcombine.low %v9197_v55, %v1483_v33 }
 0x602   : > { %v2171_v42 = vmul.f32 1.442695, %v2165_v46  ;;  %v1712_v11 = vrot.slane %v1704_v1, %v9200_v31  ;;  %v9202_v46 = vld [vmem:[#allocation53_spill] sm:$0xff] }
 0x603   : > { %v2162_v12 = vpop.xlane.xlu0 %2161 }
 0x604   : > { %v2166_v16 = vsub.f32 %v2147_v15, %v2162_v12  ;;  %5535 = vpow2.f32 %v2171_v42 }
 0x606   : > { %v2173_v34 = vmul.f32 1.442695, %v2166_v16 }
 0x607   : > { %v1481_v40 = vpop.permute.xlu0 %1480 }
 0x608   : > { %5537 = vpow2.f32 %v2173_v34  ;;  %v1636_v18 = vcombine.low %v9198_v38, %v1481_v40  ;;  %v1637_v0 = vcombine.high %v9198_v38, %v1481_v40 }
 0x60a   : > { %v1644_v37 = vrot.slane %v1636_v18, %v9200_v31  ;;  %v1651_v23 = vrot.slane %v1637_v0, %v9200_v31 }
 0x60b   : > { %1494 = vrot.lane.b32.xlu1 %v9197_v55, %s6182_s11 }
 0x60e   : > { %1492 = vrot.lane.b32.xlu0 %v9198_v38, %s6182_s11  ;;  %v8106_v5 = vpop.eup %5535  ;;  %v1705_v38 = vcombine.high %v9197_v55, %v1483_v33 }
 0x60f   : > { %v2181_v27 = vsel %vm2150_vm11, %v8106_v5, 0.0 }
 0x610   : > { %v1719_v55 = vrot.slane %v1705_v38, %v9200_v31 }
 0x612   : > { %v8108_v62 = vpop.eup %5537 }
 0x613   : > { %v2184_v6 = vsel %vm2150_vm11, %v8108_v62, 0.0 }
 0x62d   : > { %2182 = vadd.xlane.f32.xlu0 %v2181_v27 }
 0x62f   : > { %2185 = vadd.xlane.f32.xlu1 %v2184_v6 }
 0x685   : > { %v2177_v41 = vpop.xlane.xlu0 %2176 }
 0x686   : > { %5539 = vrcp.f32 %v2177_v41  ;;  %v9203_v41 = vmov 0.0  }
 0x687   : > { %v2180_v59 = vpop.xlane.xlu1 %2179 }
 0x688   : > { %5541 = vrcp.f32 %v2180_v59 }
 0x689   : > { %v1493_v25 = vpop.permute.xlu0 %1492 }
 0x68a   : > { %v1652_v14 = vcombine.low %v9199_v3, %v1493_v25  ;;  %v1653_v26 = vcombine.high %v9199_v3, %v1493_v25 }
 0x68b   : > { %v1495_v15 = vpop.permute.xlu1 %1494 }
 0x68c   : > { %v1660_v20 = vrot.slane %v1652_v14, %v9200_v31  ;;  %v1667_v8 = vrot.slane %v1653_v26, %v9200_v31  ;;  %v1720_v54 = vcombine.low %v9201_v44, %v1495_v15  ;;  %v1721_v28 = vcombine.high %v9201_v44, %v1495_v15 }
 0x68e   : > { %v1668_v58 = vcombine.low %v1644_v37, %v1660_v20  ;;  %v1669_v50 = vcombine.high %v1644_v37, %v1660_v20  ;;  %v1684_v7 = vcombine.low %v1651_v23, %v1667_v8  ;;  %v1685_v53 = vcombine.high %v1651_v23, %v1667_v8 }
 0x68f   : > { %v1728_v10 = vrot.slane %v1720_v54, %v9200_v31  ;;  %v1735_v40 = vrot.slane %v1721_v28, %v9200_v31 }
 0x690   : > { %v5540_v12 = vpop.eup %5539  ;;  %v1676_v16 = vrot.slane %v1668_v58, %v9202_v46  ;;  %v1683_v42 = vrot.slane %v1669_v50, %v9202_v46  ;;  %v1692_v34 = vrot.slane %v1684_v7, %v9202_v46  ;;  %v1699_v27 = vrot.slane %v1685_v53, %v9202_v46 }
 0x691   : > { %v2188_v6 = vmul.f32 %v5540_v12, %v5532_v47  ;;  %v1736_v33 = vcombine.low %v1712_v11, %v1728_v10  ;;  %v1737_v37 = vcombine.high %v1712_v11, %v1728_v10  ;;  %v1752_v50 = vcombine.low %v1719_v55, %v1735_v40 }
 0x692   : > { %v1700_v18 = vcombine.high %v1676_v16, %v9203_v41  ;;  %v1701_v59 = vcombine.high %v1683_v42, %v9203_v41  ;;  %v1702_v0 = vcombine.high %v1692_v34, %v9203_v41  ;;  %v1703_v25 = vcombine.high %v1699_v27, %v9203_v41  ;;  %v5542_v3 = vpop.eup %5541 }
 0x693   : > { %v1788_v14 = vpack.c.bf16 %v1676_v16, %v1676_v16  ;;  %v1790_v26 = vpack.c.bf16 %v1683_v42, %v1683_v42  ;;  %v1792_v1 = vpack.c.bf16 %v1692_v34, %v1692_v34  ;;  %v1794_v47 = vpack.c.bf16 %v1699_v27, %v1699_v27 }
 0x694   : > { %v1789_v15 = vpack.c.bf16 %v1700_v18, %v1700_v18  ;;  %v1791_v23 = vpack.c.bf16 %v1701_v59, %v1701_v59  ;;  %v1793_v20 = vpack.c.bf16 %v1702_v0, %v1702_v0  ;;  %v1795_v8 = vpack.c.bf16 %v1703_v25, %v1703_v25 }
 0x695   : > { %v8138_v31 = vunpack.c.l.b16 %v1788_v14  ;;  %v8140_v44 = vunpack.c.l.b16 %v1790_v26  ;;  %v8142_v54 = vunpack.c.l.b16 %v1792_v1  ;;  %v2190_v38 = vmul.f32 %v5542_v3, %v8098_v2 }
 0x696   : > { %v8145_v28 = vunpack.c.l.b16 %v1789_v15  ;;  %v8147_v58 = vunpack.c.l.b16 %v1791_v23  ;;  %v8149_v7 = vunpack.c.l.b16 %v1793_v20  ;;  %v8151_v53 = vunpack.c.l.b16 %v1794_v47 }
 0x697   : > { %v8153_v11 = vunpack.c.l.b16 %v1795_v8  ;;  %v2739_v10 = vrot.slane %v8138_v31, 1  ;;  %v2337_v16 = vrot.slane %v8140_v44, 6  ;;  %v2341_v2 = vrot.slane %v8142_v54, 4 }
 0x698   : > { %v2335_v12 = vrot.slane %v8145_v28, 7  ;;  %v2339_v42 = vrot.slane %v8147_v58, 5  ;;  %v3143_v18 = vrot.slane %v8138_v31, 2  ;;  %v3144_v59 = vrot.slane %v8145_v28, 1 }
 0x699   : > { %v8162_v34 = vsel %vm1837_vm2, %v8145_v28, %v2739_v10  ;;  %v1744_v47 = vrot.slane %v1736_v33, %v9202_v46  ;;  %v1751_v8 = vrot.slane %v1737_v37, %v9202_v46  ;;  %v1753_v10 = vcombine.high %v1719_v55, %v1735_v40 }
 0x69a   : > { %v2336_v0 = vsel %vm1837_vm2, %v2335_v12, %v8138_v31  ;;  %v3145_v26 = vsel %vm1837_vm2, %v3144_v59, %v3143_v18  ;;  %v1760_v18 = vrot.slane %v1752_v50, %v9202_v46  ;;  %v2195_v59 = vpack.c.bf16 %v2190_v38, %v2188_v6 }
 0x69b   : > { %v8178_v20 = vsel %vm1840_vm3, %v8140_v44, %v3145_v26  ;;  %v1767_v48 = vrot.slane %v1753_v10, %v9202_v46  ;;  %v1768_v22 = vcombine.high %v1744_v47, %v9203_v41  ;;  %v1769_v52 = vcombine.high %v1751_v8, %v9203_v41 }
 0x69c   : > { %v1796_v26 = vpack.c.bf16 %v1744_v47, %v1744_v47  ;;  %v1770_v17 = vcombine.high %v1760_v18, %v9203_v41  ;;  %v1798_v33 = vpack.c.bf16 %v1751_v8, %v1751_v8  ;;  %v1800_v32 = vpack.c.bf16 %v1760_v18, %v1760_v18  ;;  %5205 = vmatmul.mubr.msk.bf16.vlgmr.msra.gmra.mrb[12].mxu1 %vm2150_vm11, %v2195_v59 }
 0x69d   : > { %v2338_v55 = vsel %vm1840_vm3, %v2337_v16, %v2336_v0  ;;  %v1771_v40 = vcombine.high %v1767_v48, %v9203_v41  ;;  %v1797_v37 = vpack.c.bf16 %v1768_v22, %v1768_v22  ;;  %v1799_v50 = vpack.c.bf16 %v1769_v52, %v1769_v52  ;;  %5210 = vmatprep.mubr.msk.bf16.mxu1 %vm6185_vm10, %v9203_v41 }
 0x69e   : > { %v1802_v6 = vpack.c.bf16 %v1767_v48, %v1767_v48  ;;  %v1801_v46 = vpack.c.bf16 %v1770_v17, %v1770_v17  ;;  %v8194_v38 = vunpack.c.l.b16 %v1796_v26  ;;  %v8196_v47 = vunpack.c.l.b16 %v1798_v33 }
 0x69f   : > { %v8198_v10 = vunpack.c.l.b16 %v1800_v32  ;;  %v1803_v8 = vpack.c.bf16 %v1771_v40, %v1771_v40  ;;  %v8200_v18 = vunpack.c.l.b16 %v1797_v37  ;;  %v8202_v59 = vunpack.c.l.b16 %v1799_v50 }
 0x6a0   : > { %v2343_v16 = vrot.slane %v8149_v7, 3  ;;  %v8205_v22 = vunpack.c.l.b16 %v1801_v46  ;;  %v8207_v52 = vunpack.c.l.b16 %v1802_v6  ;;  %v2753_v48 = vrot.slane %v8194_v38, 1 }
 0x6a1   : > { %v2340_v17 = vsel %vm1843_vm4, %v2339_v42, %v2338_v55  ;;  %v8211_v0 = vunpack.c.l.b16 %v1803_v8  ;;  %v2349_v32 = vrot.slane %v8200_v18, 7  ;;  %v2351_v26 = vrot.slane %v8196_v47, 6 }
 0x6a2   : > { %v2355_v33 = vrot.slane %v8198_v10, 4  ;;  %v2353_v40 = vrot.slane %v8202_v59, 5  ;;  %v2754_v37 = vsel %vm1837_vm2, %v8200_v18, %v2753_v48  ;;  %v2755_v50 = vrot.slane %v8196_v47, 7 }
 0x6a3   : > { %v2757_v6 = vrot.slane %v8202_v59, 6  ;;  %v2350_v42 = vsel %vm1837_vm2, %v2349_v32, %v8194_v38  ;;  %v2759_v55 = vrot.slane %v8198_v10, 5  ;;  %v3157_v46 = vrot.slane %v8194_v38, 2 }
 0x6a4   : > { %v3158_v8 = vrot.slane %v8200_v18, 1  ;;  %v3161_v36 = vrot.slane %v8202_v59, 7  ;;  %v3163_v24 = vrot.slane %v8198_v10, 6  ;;  %v2342_v32 = vsel %vm1846_vm5, %v2341_v2, %v2340_v17 }
 0x6a5   : > { %v2345_v15 = vrot.slane %v8151_v53, 2  ;;  %v2347_v1 = vrot.slane %v8153_v11, 1  ;;  %v2344_v3 = vsel %vm1849_vm6, %v2343_v16, %v2342_v32  ;;  %v2352_v25 = vsel %vm1840_vm3, %v2351_v26, %v2350_v42 }
 0x6a6   : > { %v3159_v23 = vsel %vm1837_vm2, %v3158_v8, %v3157_v46  ;;  %v2357_v12 = vrot.slane %v8205_v22, 3  ;;  %v2354_v46 = vsel %vm1843_vm4, %v2353_v40, %v2352_v25  ;;  %v2359_v8 = vrot.slane %v8207_v52, 2 }
 0x6a7   : > { %v3160_v14 = vsel %vm1840_vm3, %v8196_v47, %v3159_v23  ;;  %v2346_v48 = vsel %vm1852_vm7, %v2345_v15, %v2344_v3  ;;  %v2361_v2 = vrot.slane %v8211_v0, 1  ;;  %v2356_v27 = vsel %vm1846_vm5, %v2355_v33, %v2354_v46 }
 0x6a8   : > { %v2348_v17 = vsel %vm1855_vm8, %v2347_v1, %v2346_v48  ;;  %v9204_v23 = vrot.slane %v8140_v44, 7  ;;  %v2747_v26 = vrot.slane %v8149_v7, 4  ;;  %v2358_v42 = vsel %vm1849_vm6, %v2357_v12, %v2356_v27 }
 0x6a9   : > { %v9205_v3 = vrot.slane %v8147_v58, 6  ;;  %v2749_v15 = vrot.slane %v8151_v53, 3  ;;  %v2751_v40 = vrot.slane %v8153_v11, 2  ;;  %v2360_v1 = vsel %vm1852_vm7, %v2359_v8, %v2358_v42 }
 0x6aa   : > { %v2742_v16 = vsel %vm1840_vm3, %v9204_v23, %v8162_v34  ;;  %v9206_v33 = vrot.slane %v8142_v54, 5  ;;  %v2756_v34 = vsel %vm1840_vm3, %v2755_v50, %v2754_v37  ;;  %v2761_v32 = vrot.slane %v8205_v22, 4 }
 0x6ab   : > { %v2744_v25 = vsel %vm1843_vm4, %v9205_v3, %v2742_v16  ;;  %v2362_v27 = vsel %vm1855_vm8, %v2361_v2, %v2360_v1  ;;  %v2758_v46 = vsel %vm1843_vm4, %v2757_v6, %v2756_v34  ;;  %v2763_v23 = vrot.slane %v8207_v52, 3 }
 0x6ac   : > { %v2746_v48 = vsel %vm1846_vm5, %v9206_v33, %v2744_v25  ;;  %v2363_v16 = vpack.c.b16 %v2362_v27, %v2348_v17  ;;  %v2760_v8 = vsel %vm1846_vm5, %v2759_v55, %v2758_v46  ;;  %v2765_v42 = vrot.slane %v8211_v0, 2 }
 0x6ad   : > { %v2748_v12 = vsel %vm1849_vm6, %v2747_v26, %v2746_v48  ;;  %v2762_v37 = vsel %vm1849_vm6, %v2761_v32, %v2760_v8  ;;  %v9207_v50 = vrot.slane %v8147_v58, 7  ;;  %v3151_v6 = vrot.slane %v8149_v7, 5 }
 0x6ae   : > { %v2750_v3 = vsel %vm1852_vm7, %v2749_v15, %v2748_v12  ;;  %5209 = vmatpush3.bf16.msra.mxu1 %v2363_v16  ;;  %v2764_v17 = vsel %vm1852_vm7, %v2763_v23, %v2762_v37  ;;  %v9208_v26 = vrot.slane %v8142_v54, 6  ;;  %v3153_v15 = vrot.slane %v8151_v53, 4 }
 0x6af   : > { %v8272_v25 = vsel %vm1855_vm8, %v2751_v40, %v2750_v3  ;;  %v3148_v2 = vsel %vm1843_vm4, %v9207_v50, %v8178_v20  ;;  %v3155_v40 = vrot.slane %v8153_v11, 3  ;;  %5214 = vmatprep.subr.bf16.mxu1 %v9203_v41  ;;  %v8288_v1 = vsel %vm1855_vm8, %v2765_v42, %v2764_v17 }
 0x6b0   : > { %v3150_v55 = vsel %vm1846_vm5, %v9208_v26, %v3148_v2  ;;  %v3162_v33 = vsel %vm1843_vm4, %v3161_v36, %v3160_v14  ;;  %v3165_v48 = vrot.slane %v8205_v22, 5  ;;  %v2767_v34 = vpack.c.b16 %v8288_v1, %v8272_v25 }
 0x6b1   : > { %v3152_v20 = vsel %vm1849_vm6, %v3151_v6, %v3150_v55  ;;  %v3164_v27 = vsel %vm1846_vm5, %v3163_v24, %v3162_v33  ;;  %v3167_v12 = vrot.slane %v8207_v52, 4  ;;  %v3169_v16 = vrot.slane %v8211_v0, 3 }
 0x6b2   : > { %v3154_v32 = vsel %vm1852_vm7, %v3153_v15, %v3152_v20  ;;  %v3166_v23 = vsel %vm1849_vm6, %v3165_v48, %v3164_v27  ;;  %v9209_v36 = vrot.slane %v8138_v31, 3  ;;  %v9210_v14 = vrot.slane %v8145_v28, 2 }
 0x6b3   : > { %v8299_v46 = vsel %vm1855_vm8, %v3155_v40, %v3154_v32  ;;  %v3564_v8 = vrot.slane %v8196_v47, 1  ;;  %v3567_v42 = vrot.slane %v8198_v10, 7  ;;  %v3168_v24 = vsel %vm1852_vm7, %v3167_v12, %v3166_v23 }
 0x6b4   : > { %v3549_v3 = vsel %vm1837_vm2, %v9210_v14, %v9209_v36  ;;  %v9211_v37 = vrot.slane %v8140_v44, 1  ;;  %v8315_v2 = vsel %vm1855_vm8, %v3169_v16, %v3168_v24  ;;  %v3555_v28 = vrot.slane %v8149_v7, 6  ;;  %v9216_v14 = vld [vmem:[#allocation100_spill] sm:$0xff]  ;;  %v9219_v24 = vld [vmem:[#allocation86_spill] sm:$0xff] }
 0x6b5   : > { %v9212_v6 = vrot.slane %v8194_v38, 3  ;;  %v9213_v47 = vrot.slane %v8200_v18, 2  ;;  %v3171_v17 = vpack.c.b16 %v8315_v2, %v8299_v46  ;;  %v9214_v44 = vrot.slane %v8142_v54, 7 }
 0x6b6   : > { %v3551_v50 = vsel %vm1840_vm3, %v9211_v37, %v3549_v3  ;;  %v3557_v55 = vrot.slane %v8151_v53, 5  ;;  %v3559_v7 = vrot.slane %v8153_v11, 4  ;;  %v3569_v18 = vrot.slane %v8205_v22, 6 }
 0x6b7   : > { %v3552_v31 = vsel %vm1843_vm4, %v8147_v58, %v3551_v50  ;;  %v3563_v10 = vsel %vm1837_vm2, %v9213_v47, %v9212_v6  ;;  %v3571_v54 = vrot.slane %v8207_v52, 5  ;;  %v3573_v32 = vrot.slane %v8211_v0, 4  ;;  %v9215_v0 = vld [vmem:[#allocation90_spill] sm:$0xff]  ;;  %v9225_v6 = vld [vmem:[#allocation79_spill] sm:$0xff] }
 0x6b8   : > { %v3554_v26 = vsel %vm1846_vm5, %v9214_v44, %v3552_v31  ;;  %v3565_v15 = vsel %vm1840_vm3, %v3564_v8, %v3563_v10  ;;  %v9217_v3 = vpack.c.b16 %v9215_v0, %v9216_v14  ;;  %v9227_v10 = vld [vmem:[#allocation80_spill] sm:$0xff]  ;;  %v9228_v44 = vld [vmem:[#allocation81_spill] sm:$0xff]  ;;  %v9231_v25 = vpack.c.b16 %v7900_v63, %v7889_v4 }
 0x6b9   : > { %v3556_v58 = vsel %vm1849_vm6, %v3555_v28, %v3554_v26  ;;  %v3566_v38 = vsel %vm1843_vm4, %v8202_v59, %v3565_v15  ;;  %v9224_v28 = vld [vmem:[#allocation78_spill] sm:$0xff]  ;;  %v9229_v26 = vpack.c.b16 %v9227_v10, %v9228_v44 }
 0x6ba   : > { %v3558_v40 = vsel %vm1852_vm7, %v3557_v55, %v3556_v58  ;;  %v3568_v20 = vsel %vm1846_vm5, %v3567_v42, %v3566_v38  ;;  %v2183_v33 = vpop.xlane.xlu0 %2182  ;;  %v2471_v8 = vsel %vm1933_vm9, %v9217_v3, 0  ;;  %v9218_v42 = vld [vmem:[#allocation84_spill] sm:$0xff]  ;;  %v9226_v47 = vpack.c.b16 %v9224_v28, %v9225_v6 }
 0x6bb   : > { %v8341_v53 = vsel %vm1855_vm8, %v3559_v7, %v3558_v40  ;;  %v3570_v48 = vsel %vm1849_vm6, %v3569_v18, %v3568_v20  ;;  %5543 = vrcp.f32 %v2183_v33  ;;  %v9220_v37 = vpack.c.b16 %v9218_v42, %v9219_v24 }
 0x6bc   : > { %v3572_v11 = vsel %vm1852_vm7, %v3571_v54, %v3570_v48  ;;  %v2186_v59 = vpop.xlane.xlu1 %2185 }
 0x6bd   : > { %v8347_v22 = vsel %vm1855_vm8, %v3573_v32, %v3572_v11  ;;  %5545 = vrcp.f32 %v2186_v59 }
 0x6be   : > { %v3575_v27 = vpack.c.b16 %v8347_v22, %v8341_v53 }
 0x6c5   : > { %v5544_v52 = vpop.eup %5543 }
 0x6c6   : > { %v2192_v23 = vmul.f32 %v5544_v52, %v8106_v5  ;;  %v9221_v5 = vld [vmem:[#allocation75_spill] sm:$0xff] }
 0x6c7   : > { %v5546_v12 = vpop.eup %5545 }
 0x6c8   : > { %v2194_v16 = vmul.f32 %v5546_v12, %v8108_v62  ;;  %v9222_v62 = vld [vmem:[#allocation87_spill] sm:$0xff] }
 0x6c9   : > { %v9223_v50 = vpack.c.b16 %v9221_v5, %v9222_v62 }
 0x6ca   : > { %v2196_v36 = vpack.c.bf16 %v2194_v16, %v2192_v23 }
 0x6cb   : > { %v2576_v31 = vsel %vm1933_vm9, %v9223_v50, 0 }
 0x6cc   : > { %5211 = vmatmul.mubr.msk.bf16.vlgmr.msra.gmra.mrb[16].mxu1 %vm2150_vm11, %v2196_v36 }
 0x6cd   : > { %5215 = vmatpush3.bf16.xpose.msra.mxu1 %v2471_v8  ;;  %5216 = vmatprep.mubr.msk.bf16.mxu1 %vm6185_vm10, %v9203_v41 }
 0x6ce   : > { %5220 = vmatprep.subr.bf16.mxu1 %v9203_v41 }
 0x6d4   : > { %5217 = vmatmul.mubr.msk.bf16.vlgmr.msra.gmra.mrb[20].mxu1 %vm1933_vm9, %v9220_v37 }
 0x6d5   : > { %5221 = vmatpush3.bf16.xpose.msra.mxu1 %v2576_v31  ;;  %5222 = vmatprep.mubr.msk.bf16.mxu1 %vm6185_vm10, %v9203_v41 }
 0x6d6   : > { %5226 = vmatprep.subr.bf16.mxu1 %v9203_v41 }
 0x6dc   : > { %5223 = vmatmul.mubr.msk.bf16.vlgmr.msra.gmra.mrb[24].mxu1 %vm1933_vm9, %v9226_v47 }
 0x6dd   : > { %5227 = vmatpush3.bf16.msra.mxu1 %v9229_v26  ;;  %5228 = vmatprep.mubr.msk.bf16.mxu1 %vm6185_vm10, %v9203_v41 }
 0x6de   : > { %5232 = vmatprep.subr.bf16.mxu1 %v9203_v41 }
 0x76f   : > { %v8382_v55 = vpop.f32.mrb[12].mxu1 }
 0x770   : > { %v5206_v15 = vpop.f32.mrb[13].mxu1 }
 0x771   : > { %v8384_v58 = vpop.f32.mrb[14].mxu1 }
 0x772   : > { %v5207_v7 = vpop.f32.mrb[15].mxu1 }
 0x79f   : > { %v8386_v38 = vpop.f32.mrb[16].mxu1 }
 0x7a0   : > { %v5212_v18 = vpop.f32.mrb[17].mxu1 }
 0x7a1   : > { %v8388_v40 = vpop.f32.mrb[18].mxu1 }
 0x7a2   : > { %v5213_v20 = vpop.f32.mrb[19].mxu1 }
 0x7a7   : > { %v2507_v54 = vpop.f32.mrb[20].mxu1 }
 0x7a8   : > { %v2508_v33 = vadd.f32 %v2507_v54, %v9195_v21  ;;  %v5218_v48 = vpop.f32.mrb[21].mxu1 }
 0x7a9   : > { %v2510_v32 = vpop.f32.mrb[22].mxu1 }
 0x7aa   : > { %v2511_v11 = vadd.f32 %v2510_v32, %v9196_v29  ;;  %v5219_v59 = vpop.f32.mrb[23].mxu1  ;;  %v2619_v52 = vsel %vm2150_vm11, %v2508_v33, -inf }
 0x7ab   : > { %2620 = vmax.xlane.f32.xlu0 %v2619_v52 }
 0x7ac   : > { %v2622_v12 = vsel %vm2150_vm11, %v2511_v11, -inf }
 0x7af   : > { %2623 = vmax.xlane.f32.xlu0 %v2622_v12  ;;  %v2612_v23 = vpop.f32.mrb[24].mxu1 }
 0x7b0   : > { %v2613_v16 = vadd.f32 %v2612_v23, %v9195_v21  ;;  %v5224_v36 = vpop.f32.mrb[25].mxu1 }
 0x7b1   : > { %v2615_v0 = vpop.f32.mrb[26].mxu1 }
 0x7b2   : > { %v2616_v14 = vadd.f32 %v2615_v0, %v9196_v29  ;;  %v5225_v3 = vpop.f32.mrb[27].mxu1  ;;  %v2625_v8 = vsel %vm2150_vm11, %v2613_v16, -inf }
 0x7b3   : > { %2626 = vmax.xlane.f32.xlu0 %v2625_v8 }
 0x7b4   : > { %v2628_v42 = vsel %vm2150_vm11, %v2616_v14, -inf }
 0x7b5   : > { %2629 = vmax.xlane.f32.xlu1 %v2628_v42 }
 0x838   : > { %v2621_v24 = vpop.xlane.xlu0 %2620 }
 0x839   : > { %v2631_v37 = vsub.f32 %v2508_v33, %v2621_v24  ;;  %v2912_v33 = vadd.f32 %v8085_v56, %v9195_v21 }
 0x83b   : > { %v2635_v5 = vmul.f32 1.442695, %v2631_v37  ;;  %v3023_v52 = vsel %vm2150_vm11, %v2912_v33, -inf }
 0x83c   : > { %v2624_v62 = vpop.xlane.xlu0 %2623 }
 0x83d   : > { %5547 = vpow2.f32 %v2635_v5  ;;  %v2632_v50 = vsub.f32 %v2511_v11, %v2624_v62  ;;  %v2915_v11 = vadd.f32 %v8087_v43, %v9196_v29 }
 0x83f   : > { %v2637_v31 = vmul.f32 1.442695, %v2632_v50  ;;  %v3026_v12 = vsel %vm2150_vm11, %v2915_v11, -inf  ;;  %v9230_v50 = vpack.c.b16 %v7886_v45, %v7856_v35 }
 0x840   : > { %v2627_v28 = vpop.xlane.xlu0 %2626 }
 0x841   : > { %5549 = vpow2.f32 %v2637_v31  ;;  %v2633_v6 = vsub.f32 %v2613_v16, %v2627_v28  ;;  %v2980_v31 = vsel %vm1933_vm9, %v9230_v50, 0 }
 0x842   : > { %v2630_v47 = vpop.xlane.xlu1 %2629 }
 0x843   : > { %v2639_v10 = vmul.f32 1.442695, %v2633_v6  ;;  %v2634_v44 = vsub.f32 %v2616_v14, %v2630_v47 }
 0x845   : > { %5551 = vpow2.f32 %v2639_v10  ;;  %v2641_v26 = vmul.f32 1.442695, %v2634_v44 }
 0x847   : > { %v5548_v15 = vpop.eup %5547  ;;  %5553 = vpow2.f32 %v2641_v26 }
 0x848   : > { %v2643_v7 = vsel %vm2150_vm11, %v5548_v15, 0.0 }
 0x849   : > { %2644 = vadd.xlane.f32.xlu0 %v2643_v7 }
 0x84b   : > { %v5550_v18 = vpop.eup %5549 }
 0x84c   : > { %v2646_v20 = vsel %vm2150_vm11, %v5550_v18, 0.0 }
 0x84d   : > { %2647 = vadd.xlane.f32.xlu1 %v2646_v20 }
 0x84f   : > { %v5552_v54 = vpop.eup %5551 }
 0x850   : > { %v2649_v48 = vsel %vm2150_vm11, %v5552_v54, 0.0 }
 0x851   : > { %v5554_v32 = vpop.eup %5553  ;;  %2650 = vadd.xlane.f32.xlu0 %v2649_v48 }
 0x852   : > { %v2652_v59 = vsel %vm2150_vm11, %v5554_v32, 0.0 }
 0x853   : > { %2653 = vadd.xlane.f32.xlu1 %v2652_v59 }
 0x855   : > { %3024 = vmax.xlane.f32.xlu0 %v3023_v52 }
 0x857   : > { %3027 = vmax.xlane.f32.xlu1 %v3026_v12 }
 0x8d6   : > { %v2645_v23 = vpop.xlane.xlu0 %2644 }
 0x8d7   : > { %5555 = vrcp.f32 %v2645_v23 }
 0x8da   : > { %v2648_v16 = vpop.xlane.xlu1 %2647 }
 0x8db   : > { %5557 = vrcp.f32 %v2648_v16 }
 0x8de   : > { %v2651_v56 = vpop.xlane.xlu0 %2650 }
 0x8df   : > { %5559 = vrcp.f32 %v2651_v56 }
 0x8e0   : > { %v2654_v36 = vpop.xlane.xlu1 %2653 }
 0x8e1   : > { %5561 = vrcp.f32 %v2654_v36  ;;  %v5556_v0 = vpop.eup %5555 }
 0x8e2   : > { %v2656_v43 = vmul.f32 %v5556_v0, %v5548_v15  ;;  %v3025_v35 = vpop.xlane.xlu0 %3024 }
 0x8e3   : > { %v3035_v6 = vsub.f32 %v2912_v33, %v3025_v35 }
 0x8e5   : > { %v5558_v14 = vpop.eup %5557  ;;  %v3039_v46 = vmul.f32 1.442695, %v3035_v6  ;;  %v9233_v6 = vpack.c.b16 %v7974_v19, %v7963_v13  ;;  %v9235_v13 = vpack.c.b16 %v8061_v57, %v8043_v60 }
 0x8e6   : > { %v2658_v3 = vmul.f32 %v5558_v14, %v5550_v18 }
 0x8e7   : > { %5563 = vpow2.f32 %v3039_v46  ;;  %v3384_v19 = vsel %vm1933_vm9, %v9235_v13, 0 }
 0x8e8   : > { %v2663_v8 = vpack.c.bf16 %v2658_v3, %v2656_v43 }
 0x8e9   : > { %v5560_v42 = vpop.eup %5559 }
 0x8ea   : > { %5229 = vmatmul.mubr.msk.bf16.vlgmr.msra.gmra.mrb[28].mxu1 %vm2150_vm11, %v2663_v8  ;;  %v2660_v5 = vmul.f32 %v5560_v42, %v5552_v54 }
 0x8eb   : > { %v5562_v24 = vpop.eup %5561  ;;  %5233 = vmatpush3.bf16.msra.mxu1 %v2767_v34  ;;  %5234 = vmatprep.mubr.msk.bf16.mxu1 %vm6185_vm10, %v9203_v41  ;;  %v3028_v34 = vpop.xlane.xlu1 %3027 }
 0x8ec   : > { %v2662_v37 = vmul.f32 %v5562_v24, %v5554_v32  ;;  %5244 = vmatprep.subr.bf16.mxu1 %v9203_v41  ;;  %v3036_v47 = vsub.f32 %v2915_v11, %v3028_v34 }
 0x8ee   : > { %v2664_v62 = vpack.c.bf16 %v2662_v37, %v2660_v5 }
 0x8f1   : > { %v5564_v11 = vpop.eup %5563 }
 0x8f2   : > { %5235 = vmatmul.mubr.msk.bf16.vlgmr.msra.gmra.mrb[32].mxu1 %vm2150_vm11, %v2664_v62  ;;  %v3047_v12 = vsel %vm2150_vm11, %v5564_v11, 0.0 }
 0x8f3   : > { %5246 = vmatprep.mubr.msk.bf16.mxu1 %vm6185_vm10, %v9203_v41 }
 0x8f4   : > { %5245 = vmatpush3.bf16.xpose.msra.mxu1 %v2980_v31 }
 0x8f5   : > { %5256 = vmatprep.subr.bf16.mxu1 %v9203_v41 }
 0x8fb   : > { %5247 = vmatmul.mubr.msk.bf16.vlgmr.msra.gmra.mrb[36].mxu1 %vm1933_vm9, %v9231_v25 }
 0x8fc   : > { %5257 = vmatpush3.bf16.msra.mxu1 %v3171_v17  ;;  %5258 = vmatprep.mubr.msk.bf16.mxu1 %vm6185_vm10, %v9203_v41  ;;  %v3041_v17 = vmul.f32 1.442695, %v3036_v47 }
 0x8fd   : > { %5268 = vmatprep.subr.bf16.mxu1 %v9203_v41 }
 0x8fe   : > { %5565 = vpow2.f32 %v3041_v17 }
 0x908   : > { %v5566_v52 = vpop.eup %5565 }
 0x909   : > { %v3050_v23 = vsel %vm2150_vm11, %v5566_v52, 0.0 }
 0x9bd   : > { %v8433_v45 = vpop.f32.mrb[28].mxu1 }
 0x9be   : > { %v5230_v1 = vpop.f32.mrb[29].mxu1 }
 0x9bf   : > { %v8435_v28 = vpop.f32.mrb[30].mxu1  ;;  %v9232_v1 = vpack.c.b16 %v7960_v30, %v7933_v51 }
 0x9c0   : > { %v5381_v4 = vpack.i.bf16 %v8435_v28, %v8433_v45  ;;  %v5231_v63 = vpop.f32.mrb[31].mxu1 }
 0x9c1   : > { %v3279_v34 = vsel %vm1933_vm9, %v9232_v1, 0  ;;  %v9234_v63 = vpack.c.b16 %v8025_v61, %v8000_v9  ;;  %v9236_v9 = vpack.c.b16 %v8077_v39, %v8074_v49 }
 0x9c5   : > { %v8439_v2 = vpop.f32.mrb[32].mxu1 }
 0x9c6   : > { %v5236_v10 = vpop.f32.mrb[33].mxu1 }
 0x9c7   : > { %v8441_v44 = vpop.f32.mrb[34].mxu1 }
 0x9c8   : > { %v5386_v26 = vpack.i.bf16 %v8441_v44, %v8439_v2  ;;  %v5237_v15 = vpop.f32.mrb[35].mxu1 }
 0x9ce   : > { %v3016_v7 = vpop.f32.mrb[36].mxu1 }
 0x9cf   : > { %v3017_v18 = vadd.f32 %v3016_v7, %v9195_v21  ;;  %v5248_v20 = vpop.f32.mrb[37].mxu1 }
 0x9d0   : > { %v3019_v54 = vpop.f32.mrb[38].mxu1 }
 0x9d1   : > { %v3020_v33 = vadd.f32 %v3019_v54, %v9196_v29  ;;  %v5249_v48 = vpop.f32.mrb[39].mxu1  ;;  %v3029_v32 = vsel %vm2150_vm11, %v3017_v18, -inf }
 0x9d2   : > { %3030 = vmax.xlane.f32.xlu0 %v3029_v32 }
 0x9d3   : > { %v3032_v59 = vsel %vm2150_vm11, %v3020_v33, -inf }
 0x9d4   : > { %3033 = vmax.xlane.f32.xlu1 %v3032_v59 }
 0x9d6   : > { %3048 = vadd.xlane.f32.xlu0 %v3047_v12 }
 0x9d8   : > { %3051 = vadd.xlane.f32.xlu1 %v3050_v23 }
 0xa5f   : > { %v3031_v16 = vpop.xlane.xlu0 %3030 }
 0xa60   : > { %v3037_v56 = vsub.f32 %v3017_v18, %v3031_v16 }
 0xa61   : > { %v3034_v36 = vpop.xlane.xlu1 %3033 }
 0xa62   : > { %v3043_v0 = vmul.f32 1.442695, %v3037_v56  ;;  %v3038_v14 = vsub.f32 %v3020_v33, %v3034_v36 }
 0xa63   : > { %v3049_v43 = vpop.xlane.xlu0 %3048 }
 0xa64   : > { %5567 = vpow2.f32 %v3043_v0  ;;  %v3045_v3 = vmul.f32 1.442695, %v3038_v14 }
 0xa65   : > { %5569 = vrcp.f32 %v3049_v43  ;;  %v3052_v8 = vpop.xlane.xlu1 %3051 }
 0xa66   : > { %5571 = vpow2.f32 %v3045_v3 }
 0xa67   : > { %5573 = vrcp.f32 %v3052_v8 }
 0xa6e   : > { %v5568_v42 = vpop.eup %5567 }
 0xa6f   : > { %v5570_v24 = vpop.eup %5569  ;;  %v3053_v37 = vsel %vm2150_vm11, %v5568_v42, 0.0 }
 0xa70   : > { %v5572_v5 = vpop.eup %5571  ;;  %3054 = vadd.xlane.f32.xlu0 %v3053_v37  ;;  %v3060_v31 = vmul.f32 %v5570_v24, %v5564_v11 }
 0xa71   : > { %v5574_v62 = vpop.eup %5573  ;;  %v3056_v50 = vsel %vm2150_vm11, %v5572_v5, 0.0 }
 0xa72   : > { %v3062_v25 = vmul.f32 %v5574_v62, %v5566_v52  ;;  %3057 = vadd.xlane.f32.xlu1 %v3056_v50 }
 0xa74   : > { %v3067_v35 = vpack.c.bf16 %v3062_v25, %v3060_v31 }
 0xa76   : > { %5253 = vmatmul.mubr.msk.bf16.vlgmr.msra.gmra.mrb[12].mxu0 %vm2150_vm11, %v3067_v35 }
 0xa77   : > { %5263 = vmatpush3.bf16.xpose.msra.mxu0 %v3279_v34  ;;  %5264 = vmatprep.mubr.msk.bf16.mxu0 %vm6185_vm10, %v9203_v41 }
 0xa78   : > { %5274 = vmatprep.subr.bf16.mxu0 %v9203_v41 }
 0xa7e   : > { %5265 = vmatmul.mubr.msk.bf16.vlgmr.msra.gmra.mrb[16].mxu0 %vm1933_vm9, %v9233_v6 }
 0xa7f   : > { %5275 = vmatpush3.bf16.msra.mxu0 %v9234_v63  ;;  %5276 = vmatprep.mubr.msk.bf16.mxu0 %vm6185_vm10, %v9203_v41 }
 0xafd   : > { %v3055_v51 = vpop.xlane.xlu0 %3054 }
 0xafe   : > { %5575 = vrcp.f32 %v3055_v51 }
 0xaff   : > { %v3058_v30 = vpop.xlane.xlu1 %3057 }
 0xb00   : > { %5577 = vrcp.f32 %v3058_v30 }
 0xb08   : > { %v5576_v47 = vpop.eup %5575 }
 0xb09   : > { %v3064_v17 = vmul.f32 %v5576_v47, %v5568_v42 }
 0xb0a   : > { %v5578_v46 = vpop.eup %5577 }
 0xb0b   : > { %v3066_v10 = vmul.f32 %v5578_v46, %v5572_v5 }
 0xb0d   : > { %v3068_v15 = vpack.c.bf16 %v3066_v10, %v3064_v17 }
 0xb0f   : > { %5259 = vmatmul.mubr.msk.bf16.vlgmr.msra.gmra.mrb[40].mxu1 %vm2150_vm11, %v3068_v15 }
 0xb10   : > { %5269 = vmatpush3.bf16.xpose.msra.mxu1 %v3384_v19  ;;  %5270 = vmatprep.mubr.msk.bf16.mxu1 %vm6185_vm10, %v9203_v41 }
 0xb11   : > { %5280 = vmatprep.subr.bf16.mxu1 %v9203_v41 }
 0xb17   : > { %5271 = vmatmul.mubr.msk.bf16.vlgmr.msra.gmra.mrb[44].mxu1 %vm1933_vm9, %v9236_v9 }
 0xb18   : > { %5281 = vmatpush3.bf16.msra.mxu1 %v3575_v27  ;;  %5282 = vmatprep.mubr.msk.bf16.mxu1 %vm6185_vm10, %v9203_v41 }
 0xb49   : > { %v8487_v61 = vpop.f32.mrb[12].mxu0 }
 0xb4a   : > { %v5254_v60 = vpop.f32.mrb[13].mxu0 }
 0xb4b   : > { %v8489_v57 = vpop.f32.mrb[14].mxu0 }
 0xb4c   : > { %v5391_v7 = vpack.i.bf16 %v8489_v57, %v8487_v61  ;;  %v5255_v18 = vpop.f32.mrb[15].mxu0 }
 0xb51   : > { %v3315_v20 = vpop.f32.mrb[16].mxu0 }
 0xb52   : > { %v3316_v49 = vadd.f32 %v3315_v20, %v9195_v21  ;;  %v5266_v39 = vpop.f32.mrb[17].mxu0 }
 0xb53   : > { %v3318_v54 = vpop.f32.mrb[18].mxu0 }
 0xb54   : > { %v3319_v53 = vadd.f32 %v3318_v54, %v9196_v29  ;;  %v5267_v22 = vpop.f32.mrb[19].mxu0  ;;  %v3427_v27 = vsel %vm2150_vm11, %v3316_v49, -inf }
 0xb55   : > { %3428 = vmax.xlane.f32.xlu0 %v3427_v27 }
 0xb56   : > { %v3430_v41 = vsel %vm2150_vm11, %v3319_v53, -inf }
 0xb57   : > { %3431 = vmax.xlane.f32.xlu1 %v3430_v41 }
 0xbe2   : > { %v3429_v33 = vpop.xlane.xlu0 %3428  ;;  %v3210_v48 = vpop.f32.mrb[40].mxu1 }
 0xbe3   : > { %v3439_v32 = vsub.f32 %v3316_v49, %v3429_v33  ;;  %v5260_v11 = vpop.f32.mrb[41].mxu1 }
 0xbe4   : > { %v3432_v59 = vpop.xlane.xlu1 %3431  ;;  %v3213_v52 = vpop.f32.mrb[42].mxu1  ;;  %v5435_v11 = vld [vmem:[%s8528_s4] sm:$0xff]  }
 0xbe5   : > { %v3443_v12 = vmul.f32 1.442695, %v3439_v32  ;;  %v3440_v23 = vsub.f32 %v3319_v53, %v3432_v59  ;;  %v5396_v16 = vpack.i.bf16 %v3213_v52, %v3210_v48  ;;  %v5261_v56 = vpop.f32.mrb[43].mxu1  ;;  %v5436_v59 = vld [vmem:[%s8528_s4 + $0x8] sm:$0xff]   ;;  %5286 = vmatprep.subr.bf16.mxu0 %v5435_v11  ;;  %v5437_v52 = vld [vmem:[%s8528_s4 + $0x10] sm:$0xff]  }
 0xbe6   : > { %v5441_v56 = vld [vmem:[%s8528_s4 + $0x30] sm:$0xff]  }
 0xbe7   : > { %5579 = vpow2.f32 %v3443_v12  ;;  %v3445_v36 = vmul.f32 1.442695, %v3440_v23  ;;  %v5438_v12 = vld [vmem:[%s8528_s4 + $0x18] sm:$0xff]   ;;  %v5439_v23 = vld [vmem:[%s8528_s4 + $0x20] sm:$0xff]  }
 0xbe9   : > { %5581 = vpow2.f32 %v3445_v36 }
 0xbea   : > { %v3420_v0 = vpop.f32.mrb[44].mxu1 }
 0xbeb   : > { %v3421_v14 = vadd.f32 %v3420_v0, %v9195_v21  ;;  %v5272_v43 = vpop.f32.mrb[45].mxu1 }
 0xbec   : > { %v3423_v3 = vpop.f32.mrb[46].mxu1 }
 0xbed   : > { %v3424_v8 = vadd.f32 %v3423_v3, %v9196_v29  ;;  %v5273_v42 = vpop.f32.mrb[47].mxu1  ;;  %v3433_v24 = vsel %vm2150_vm11, %v3421_v14, -inf }
 0xbee   : > { %3434 = vmax.xlane.f32.xlu0 %v3433_v24 }
 0xbef   : > { %v3436_v37 = vsel %vm2150_vm11, %v3424_v8, -inf }
 0xbf0   : > { %3437 = vmax.xlane.f32.xlu1 %v3436_v37 }
 0xbf1   : > { %v5580_v5 = vpop.eup %5579 }
 0xbf2   : > { %v3451_v62 = vsel %vm2150_vm11, %v5580_v5, 0.0 }
 0xbf3   : > { %v5582_v50 = vpop.eup %5581  ;;  %3452 = vadd.xlane.f32.xlu0 %v3451_v62 }
 0xbf4   : > { %v3454_v31 = vsel %vm2150_vm11, %v5582_v50, 0.0 }
 0xbf5   : > { %3455 = vadd.xlane.f32.xlu1 %v3454_v31 }
 0xc7b   : > { %v3435_v25 = vpop.xlane.xlu0 %3434 }
 0xc7c   : > { %v3441_v35 = vsub.f32 %v3421_v14, %v3435_v25 }
 0xc7d   : > { %v3438_v1 = vpop.xlane.xlu1 %3437 }
 0xc7e   : > { %v3447_v34 = vmul.f32 1.442695, %v3441_v35  ;;  %v3442_v6 = vsub.f32 %v3424_v8, %v3438_v1  ;;  %v5442_v1 = vld [vmem:[%s8528_s4 + $0x38] sm:$0xff]  }
 0xc80   : > { %5583 = vpow2.f32 %v3447_v34  ;;  %v3449_v63 = vmul.f32 1.442695, %v3442_v6  ;;  %v3453_v51 = vpop.xlane.xlu0 %3452 }
 0xc81   : > { %5585 = vrcp.f32 %v3453_v51 }
 0xc82   : > { %5587 = vpow2.f32 %v3449_v63  ;;  %v3456_v30 = vpop.xlane.xlu1 %3455 }
 0xc83   : > { %5589 = vrcp.f32 %v3456_v30 }
 0xc8a   : > { %v5584_v47 = vpop.eup %5583 }
 0xc8b   : > { %v5586_v46 = vpop.eup %5585  ;;  %v3457_v17 = vsel %vm2150_vm11, %v5584_v47, 0.0 }
 0xc8c   : > { %v5588_v10 = vpop.eup %5587  ;;  %3458 = vadd.xlane.f32.xlu0 %v3457_v17  ;;  %v3464_v19 = vmul.f32 %v5586_v46, %v5580_v5 }
 0xc8d   : > { %v5590_v15 = vpop.eup %5589  ;;  %v3460_v13 = vsel %vm2150_vm11, %v5588_v10, 0.0 }
 0xc8e   : > { %v3466_v9 = vmul.f32 %v5590_v15, %v5582_v50  ;;  %3461 = vadd.xlane.f32.xlu1 %v3460_v13  ;;  %v4898_v15 = vld [vmem:[%s3703_s12] ss:$0 sm:$0xff] }
 0xc90   : > { %v3471_v60 = vpack.c.bf16 %v3466_v9, %v3464_v19 }
 0xc92   : > { %5277 = vmatmul.mubr.msk.bf16.vlgmr.msra.gmra.mrb[20].mxu0 %vm2150_vm11, %v3471_v60 }
 0xc93   : > { %5287 = vmatpush3.bf16.msra.mxu0 %v5435_v11 }
 0xc94   : > { %5288 = vmatprep.subr.bf16.mxu0 %v5436_v59 }
 0xc97   : > { %5289 = vmatpush3.bf16.msra.mxu0 %v5436_v59 }
 0xc98   : > { %5290 = vmatprep.subr.bf16.mxu0 %v5437_v52 }
 0xc9b   : > { %5291 = vmatpush3.bf16.msra.mxu0 %v5437_v52 }
 0xc9c   : > { %5292 = vmatprep.subr.bf16.mxu0 %v5438_v12 }
 0xc9f   : > { %5387 = vrot.lane.b32.xlu1 %v5386_v26, %s6182_s11  ;;  %5293 = vmatpush3.bf16.msra.mxu0 %v5438_v12 }
 0xca0   : > { %5294 = vmatprep.subr.bf16.mxu0 %v5439_v23 }
 0xca2   : > { %5382 = vrot.lane.b32.xlu0 %v5381_v4, %s6182_s11 }
 0xca3   : > { %5392 = vrot.lane.b32.xlu1 %v5391_v7, %s6181_s7  ;;  %5295 = vmatpush3.bf16.msra.mxu0 %v5439_v23 }
 0xca7   : > { %5397 = vrot.lane.b32.xlu1 %v5396_v16, %s6181_s7  ;;  %v5440_v16 = vld [vmem:[%s8528_s4 + $0x28] sm:$0xff]  }
 0xca8   : > { %5296 = vmatprep.subr.bf16.mxu0 %v5440_v16 }
 0xca9   : > { %5297 = vmatpush3.bf16.msra.mxu0 %v5440_v16 }
 0xcaa   : > { %5298 = vmatprep.subr.bf16.mxu0 %v5441_v56 }
 0xcad   : > { %5299 = vmatpush3.bf16.msra.mxu0 %v5441_v56 }
 0xcae   : > { %5300 = vmatprep.subr.bf16.mxu0 %v5442_v1 }
 0xcb1   : > { %5301 = vmatpush3.bf16.msra.mxu0 %v5442_v1  ;;  %v5472_v1 = vld [vmem:[%s8567_s0 + $0x8c] ss:$16 sps:$4 sm:$0xff]  }
 0xd19   : > { %v3459_v18 = vpop.xlane.xlu0 %3458 }
 0xd1a   : > { %5591 = vrcp.f32 %v3459_v18 }
 0xd1b   : > { %v3462_v20 = vpop.xlane.xlu1 %3461 }
 0xd1c   : > { %5593 = vrcp.f32 %v3462_v20 }
 0xd1d   : > { %v5383_v36 = vpop.permute.xlu0 %5382 }
 0xd1e   : > { %v5385_v0 = vunpack.i.h.bf16 %v5383_v36  ;;  %v5384_v14 = vunpack.i.l.bf16 %v5383_v36 }
 0xd1f   : > { %v5388_v49 = vpop.permute.xlu1 %5387 }
 0xd20   : > { %v5390_v39 = vunpack.i.h.bf16 %v5388_v49  ;;  %v5389_v2 = vunpack.i.l.bf16 %v5388_v49  ;;  %v3670_v42 = vsel %vm1933_vm9, %v8384_v58, %v5385_v0  ;;  %v3669_v24 = vsel %vm1933_vm9, %v8382_v55, %v5384_v14  ;;  %v9237_v49 = vld [vmem:[#allocation49_spill] sm:$0xff] }
 0xd22   : > { %v3672_v44 = vsel %vm1933_vm9, %v8388_v40, %v5390_v39  ;;  %v3671_v45 = vsel %vm1933_vm9, %v8386_v38, %v5389_v2 }
 0xd23   : > { %v5393_v28 = vpop.permute.xlu1 %5392 }
 0xd24   : > { %v5592_v4 = vpop.eup %5591  ;;  %v5395_v43 = vunpack.i.h.bf16 %v5393_v28  ;;  %v5394_v3 = vunpack.i.l.bf16 %v5393_v28  ;;  %v9239_v28 = vld [vmem:[#allocation47_spill] sm:$0xff] }
 0xd25   : > { %v3468_v61 = vmul.f32 %v5592_v4, %v5584_v47 }
 0xd26   : > { %v5594_v26 = vpop.eup %5593  ;;  %v3675_v62 = vsel %vm3673_vm12, %v3670_v42, %v5395_v43  ;;  %v3674_v50 = vsel %vm3673_vm12, %v3669_v24, %v5394_v3  ;;  %v5455_v42 = vld [vmem:[%s8567_s0 + $0x40] ss:$16 sps:$4 sm:$0xff]   ;;  %v5457_v24 = vld [vmem:[%s8567_s0 + $0x44] ss:$16 sps:$4 sm:$0xff]  }
 0xd27   : > { %v3470_v57 = vmul.f32 %v5594_v26, %v5588_v10  ;;  %v5398_v7 = vpop.permute.xlu1 %5397 }
 0xd28   : > { %v5400_v54 = vunpack.i.h.bf16 %v5398_v7  ;;  %v5399_v53 = vunpack.i.l.bf16 %v5398_v7  ;;  %v5443_v7 = vld [vmem:[%s8567_s0] ss:$16 sps:$4 sm:$0xff]  }
 0xd29   : > { %v3472_v22 = vpack.c.bf16 %v3470_v57, %v3468_v61  ;;  %v9240_v61 = vld [vmem:[#allocation46_spill] sm:$0xff] }
 0xd2a   : > { %v3676_v27 = vsel %vm3673_vm12, %v3671_v45, %v5399_v53  ;;  %v3677_v41 = vsel %vm3673_vm12, %v3672_v44, %v5400_v54  ;;  %v9238_v44 = vld [vmem:[#allocation48_spill] sm:$0xff]  ;;  %v5445_v54 = vld [vmem:[%s8567_s0 + $0x4] ss:$16 sps:$4 sm:$0xff]  }
 0xd2b   : > { %5283 = vmatmul.mubr.msk.bf16.vlgmr.msra.gmra.mrb[48].mxu1 %vm2150_vm11, %v3472_v22  ;;  %v5446_v53 = vld [vmem:[%s8567_s0 + $0x8] ss:$16 sps:$4 sm:$0xff]   ;;  %v5448_v22 = vld [vmem:[%s8567_s0 + $0xc] ss:$16 sps:$4 sm:$0xff]   ;;  %4101 = vmatprep.subr.bf16.mxu1 %v5445_v54 }
 0xd2c   : > { %4154 = vmatprep.subr.bf16.mxu0 %v5448_v22  ;;  %4102 = vmatpush1.bf16.msra.mxu1 %v5443_v7 }
 0xd65   : > { %v3540_v40 = vpop.f32.mrb[20].mxu0 }
 0xd66   : > { %v5278_v33 = vpop.f32.mrb[21].mxu0 }
 0xd67   : > { %v3543_v38 = vpop.f32.mrb[22].mxu0  ;;  %v5454_v33 = vld [vmem:[%s8567_s0 + $0x2c] ss:$16 sps:$4 sm:$0xff]  }
 0xd68   : > { %v5401_v48 = vpack.i.bf16 %v3543_v38, %v3540_v40  ;;  %v5279_v32 = vpop.f32.mrb[23].mxu0  ;;  %v5452_v40 = vld [vmem:[%s8567_s0 + $0x28] ss:$16 sps:$4 sm:$0xff]  }
 0xd6a   : > { %5402 = vrot.lane.b32.xlu0 %v5401_v48, %s6180_s28 }
 0xddc   : > { %v5403_v8 = vpop.permute.xlu0 %5402 }
 0xddd   : > { %v5405_v37 = vunpack.i.h.bf16 %v5403_v8  ;;  %v5404_v5 = vunpack.i.l.bf16 %v5403_v8 }
 0xddf   : > { %v3679_v31 = vsel %vm3678_vm13, %v3674_v50, %v5404_v5  ;;  %v3680_v25 = vsel %vm3678_vm13, %v3675_v62, %v5405_v37  ;;  %v5458_v37 = vld [vmem:[%s8567_s0 + $0x48] ss:$16 sps:$4 sm:$0xff]   ;;  %v5460_v5 = vld [vmem:[%s8567_s0 + $0x4c] ss:$16 sps:$4 sm:$0xff]   ;;  %v5463_v62 = vld [vmem:[%s8567_s0 + $0x64] ss:$16 sps:$4 sm:$0xff]  }
 0xde0   : > { %v3683_v35 = vpack.c.bf16 %v3680_v25, %v3679_v31  ;;  %v5461_v50 = vld [vmem:[%s8567_s0 + $0x60] ss:$16 sps:$4 sm:$0xff]   ;;  %v5466_v31 = vld [vmem:[%s8567_s0 + $0x6c] ss:$16 sps:$4 sm:$0xff]   ;;  %v5464_v25 = vld [vmem:[%s8567_s0 + $0x68] ss:$16 sps:$4 sm:$0xff]  }
 0xde2   : > { %5302 = vmatprep.mubr.bf16.mxu0 %v3683_v35  ;;  %v5469_v35 = vld [vmem:[%s8567_s0 + $0x84] ss:$16 sps:$4 sm:$0xff]  }
 0xdfe   : > { %v3614_v58 = vpop.f32.mrb[48].mxu1 }
 0xdff   : > { %v5284_v34 = vpop.f32.mrb[49].mxu1 }
 0xe00   : > { %v3617_v6 = vpop.f32.mrb[50].mxu1  ;;  %v5470_v34 = vld [vmem:[%s8567_s0 + $0x88] ss:$16 sps:$4 sm:$0xff]  }
 0xe01   : > { %v5406_v55 = vpack.i.bf16 %v3617_v6, %v3614_v58  ;;  %v5285_v63 = vpop.f32.mrb[51].mxu1  ;;  %v5467_v58 = vld [vmem:[%s8567_s0 + $0x80] ss:$16 sps:$4 sm:$0xff]   ;;  %v5475_v6 = vld [vmem:[%s8567_s0 + $0xa4] ss:$16 sps:$4 sm:$0xff]  }
 0xe02   : > { %v6186_v63 = vmov 0  }
 0xe03   : > { %5407 = vrot.lane.b32.xlu1 %v5406_v55, %s6180_s28  ;;  %v5478_v55 = vld [vmem:[%s8567_s0 + $0xac] ss:$16 sps:$4 sm:$0xff]   ;;  %4133 = vmatprep.mubr.bf16.mxu1 %v6186_v63 }
 0xe75   : > { %v5408_v51 = vpop.permute.xlu1 %5407 }
 0xe76   : > { %v5410_v30 = vunpack.i.h.bf16 %v5408_v51  ;;  %v5409_v47 = vunpack.i.l.bf16 %v5408_v51  ;;  %v5473_v51 = vld [vmem:[%s8567_s0 + $0xa0] ss:$16 sps:$4 sm:$0xff]  }
 0xe78   : > { %v3682_v46 = vsel %vm3678_vm13, %v3677_v41, %v5410_v30  ;;  %v3681_v17 = vsel %vm3678_vm13, %v3676_v27, %v5409_v47  ;;  %v5449_v27 = vld [vmem:[%s8567_s0 + $0x20] ss:$16 sps:$4 sm:$0xff]   ;;  %v5451_v41 = vld [vmem:[%s8567_s0 + $0x24] ss:$16 sps:$4 sm:$0xff]   ;;  %v5476_v30 = vld [vmem:[%s8567_s0 + $0xa8] ss:$16 sps:$4 sm:$0xff]  }
 0xe79   : > { %v3684_v10 = vpack.c.bf16 %v3682_v46, %v3681_v17  ;;  %4103 = vmatprep.subr.bf16.mxu1 %v5451_v41  ;;  %v5481_v47 = vld [vmem:[%s8567_s0 + $0xc4] ss:$16 sps:$4 sm:$0xff]   ;;  %v5484_v46 = vld [vmem:[%s8567_s0 + $0xcc] ss:$16 sps:$4 sm:$0xff]   ;;  %v5479_v17 = vld [vmem:[%s8567_s0 + $0xc0] ss:$16 sps:$4 sm:$0xff]  }
 0xe7a   : > { %4104 = vmatpush1.bf16.msra.mxu1 %v5449_v27  ;;  %v4907_v27 = vld [vmem:[%s3812_s10] ss:$0 sm:$0xff] }
 0xe7b   : > { %5303 = vmatmul.mubr.bf16.vlgmr.msra.gmra.mrb[24].mxu0 %v3684_v10  ;;  %4105 = vmatprep.subr.bf16.mxu1 %v5457_v24  ;;  %v5482_v10 = vld [vmem:[%s8567_s0 + $0xc8] ss:$16 sps:$4 sm:$0xff]   ;;  %v5493_v24 = vld [vmem:[%s8577_s21] sm:$0xff]  }
 0xe7c   : > { %4155 = vmatpush1.bf16.msra.mxu0 %v5446_v53  ;;  %4186 = vmatprep.mubr.bf16.mxu0 %v6186_v63 }
 0xe7d   : > { %4156 = vmatprep.subr.bf16.mxu0 %v5454_v33 }
 0xe7e   : > { %4106 = vmatpush1.bf16.msra.mxu1 %v5455_v42  ;;  %v5492_v42 = vld [vmem:[%s8577_s21 + $0xc0] sm:$0xff]  }
 0xe7f   : > { %4107 = vmatprep.subr.bf16.mxu1 %v5463_v62  ;;  %v5496_v62 = vld [vmem:[%s8577_s21 + $0xc8] sm:$0xff]  }
 0xe80   : > { %4157 = vmatpush1.bf16.msra.mxu0 %v5452_v40 }
 0xe81   : > { %4158 = vmatprep.subr.bf16.mxu0 %v5460_v5  ;;  %v5495_v5 = vld [vmem:[%s8577_s21 + $0x48] sm:$0xff]  }
 0xe82   : > { %4108 = vmatpush1.bf16.msra.mxu1 %v5461_v50  ;;  %v5497_v50 = vld [vmem:[%s8577_s21 + $0x8] sm:$0xff]  }
 0xe83   : > { %4109 = vmatprep.subr.bf16.mxu1 %v5469_v35  ;;  %v5500_v35 = vld [vmem:[%s8577_s21 + $0xd0] sm:$0xff]  }
 0xe84   : > { %4159 = vmatpush1.bf16.msra.mxu0 %v5458_v37  ;;  %v5494_v37 = vld [vmem:[%s8577_s21 + $0x80] sm:$0xff]  }
 0xe85   : > { %4160 = vmatprep.subr.bf16.mxu0 %v5466_v31  ;;  %v5498_v31 = vld [vmem:[%s8577_s21 + $0x88] sm:$0xff]  }
 0xe86   : > { %4110 = vmatpush1.bf16.msra.mxu1 %v5467_v58  ;;  %v5502_v58 = vld [vmem:[%s8577_s21 + $0x90] sm:$0xff]  }
 0xe87   : > { %4111 = vmatprep.subr.bf16.mxu1 %v5475_v6  ;;  %v5504_v6 = vld [vmem:[%s8577_s21 + $0xd8] sm:$0xff]  }
 0xe88   : > { %4161 = vmatpush1.bf16.msra.mxu0 %v5464_v25  ;;  %v5499_v25 = vld [vmem:[%s8577_s21 + $0x50] sm:$0xff]  }
 0xe89   : > { %4162 = vmatprep.subr.bf16.mxu0 %v5472_v1  ;;  %v5501_v1 = vld [vmem:[%s8577_s21 + $0x10] sm:$0xff]  }
 0xe8a   : > { %4112 = vmatpush1.bf16.msra.mxu1 %v5473_v51  ;;  %v5507_v51 = vld [vmem:[%s8577_s21 + $0x60] sm:$0xff]  }
 0xe8b   : > { %4113 = vmatprep.subr.bf16.mxu1 %v5481_v47  ;;  %v5509_v47 = vld [vmem:[%s8577_s21 + $0x20] sm:$0xff]  }
 0xe8c   : > { %4163 = vmatpush1.bf16.msra.mxu0 %v5470_v34  ;;  %v5503_v34 = vld [vmem:[%s8577_s21 + $0x58] sm:$0xff]  }
 0xe8d   : > { %4164 = vmatprep.subr.bf16.mxu0 %v5478_v55  ;;  %v5505_v55 = vld [vmem:[%s8577_s21 + $0x18] sm:$0xff]  }
 0xe8e   : > { %4114 = vmatpush1.bf16.msra.mxu1 %v5479_v17  ;;  %v5511_v17 = vld [vmem:[%s8577_s21 + $0x68] sm:$0xff]  }
 0xe90   : > { %4165 = vmatpush1.bf16.msra.mxu0 %v5476_v30  ;;  %v5508_v30 = vld [vmem:[%s8577_s21 + $0xe0] sm:$0xff]  }
 0xe91   : > { %4166 = vmatprep.subr.bf16.mxu0 %v5484_v46  ;;  %v5510_v46 = vld [vmem:[%s8577_s21 + $0xa0] sm:$0xff]  }
 0xe94   : > { %4167 = vmatpush1.bf16.msra.mxu0 %v5482_v10  ;;  %v5512_v10 = vld [vmem:[%s8577_s21 + $0xe8] sm:$0xff]  }
 0xf4e   : > { %v5304_v13 = vpop.f32.mrb[24].mxu0 }
 0xf4f   : > { %v3793_v19 = vpop.f32.mrb[25].mxu0  ;;  %v3802_v20 = vadd.f32 %v5304_v13, %v4898_v15  ;;  %v5490_v13 = vld [vmem:[%s8567_s0 + $0xec] ss:$16 sps:$4 sm:$0xff]  }
 0xf50   : > { %v3794_v9 = vadd.f32 %v4898_v15, %v3793_v19  ;;  %v5305_v60 = vpop.f32.mrb[26].mxu0  ;;  %v5485_v19 = vld [vmem:[%s8567_s0 + $0xe0] ss:$16 sps:$4 sm:$0xff]   ;;  %4168 = vmatprep.subr.bf16.mxu0 %v5490_v13  ;;  %v5514_v13 = vld [vmem:[%s8577_s21 + $0xa8] sm:$0xff]  }
 0xf51   : > { %v3796_v18 = vpop.f32.mrb[27].mxu0  ;;  %v8558_v4 = vadd.f32 %v9239_v28, %v3802_v20  ;;  %v3805_v26 = vadd.f32 %v5305_v60, %v4898_v15 }
 0xf52   : > { %v8551_v39 = vadd.f32 %v9237_v49, %v3794_v9  ;;  %v3797_v2 = vadd.f32 %v4898_v15, %v3796_v18  ;;  %v5487_v15 = vld [vmem:[%s8567_s0 + $0xe4] ss:$16 sps:$4 sm:$0xff]   ;;  %v5488_v9 = vld [vmem:[%s8567_s0 + $0xe8] ss:$16 sps:$4 sm:$0xff]  }
 0xf53   : > { %v8563_v57 = vadd.f32 %v9240_v61, %v3805_v26  ;;  %4115 = vmatprep.subr.bf16.mxu1 %v5487_v15  ;;  %4169 = vmatpush1.bf16.msra.mxu0 %v5488_v9  ;;  %v5513_v15 = vld [vmem:[%s8577_s21 + $0x28] sm:$0xff]   ;;  %v5516_v9 = vld [vmem:[%s8577_s21 + $0xf0] sm:$0xff]  }
 0xf54   : > { %v8554_v45 = vadd.f32 %v9238_v44, %v3797_v2  ;;  %3816 = vadd.xlane.f32.xlu0 %v8551_v39  ;;  %4116 = vmatpush1.bf16.msra.mxu1 %v5485_v19  ;;  %v5515_v19 = vld [vmem:[%s8577_s21 + $0x70] sm:$0xff]  }
 0xf55   : > { %5102 = vmatprep.subr.bf16.mxu0 %v5492_v42 }
 0xf56   : > { %3818 = vadd.xlane.f32.xlu1 %v8554_v45 }
 0xf58   : > { %3820 = vadd.xlane.f32.xlu0 %v8558_v4 }
 0xf5c   : > { %3822 = vadd.xlane.f32.xlu0 %v8563_v57 }
 0xfe1   : > { %v3817_v38 = vpop.xlane.xlu0 %3816 }
 0xfe2   : > { %v3824_v48 = vmul.f32 0.0078125, %v3817_v38 }
 0xfe3   : > { %v3819_v32 = vpop.xlane.xlu1 %3818 }
 0xfe4   : > { %v8580_v11 = vsub.f32 %v8551_v39, %v3824_v48  ;;  %v3825_v59 = vmul.f32 0.0078125, %v3819_v32  ;;  %v4908_v32 = vld [vmem:[%s3814_s17] ss:$0 sm:$0xff] }
 0xfe5   : > { %v3821_v52 = vpop.xlane.xlu0 %3820 }
 0xfe6   : > { %v8583_v12 = vsub.f32 %v8554_v45, %v3825_v59  ;;  %v3826_v23 = vmul.f32 0.0078125, %v3821_v52  ;;  %v3832_v16 = vmul.f32 %v8580_v11, %v8580_v11 }
 0xfe8   : > { %v8588_v56 = vsub.f32 %v8558_v4, %v3826_v23  ;;  %3836 = vadd.xlane.f32.xlu0 %v3832_v16  ;;  %v3833_v36 = vmul.f32 %v8583_v12, %v8583_v12 }
 0xfe9   : > { %v3823_v0 = vpop.xlane.xlu0 %3822 }
 0xfea   : > { %v3827_v14 = vmul.f32 0.0078125, %v3823_v0  ;;  %3838 = vadd.xlane.f32.xlu1 %v3833_v36  ;;  %v3834_v43 = vmul.f32 %v8588_v56, %v8588_v56 }
 0xfec   : > { %v8595_v3 = vsub.f32 %v8563_v57, %v3827_v14  ;;  %3840 = vadd.xlane.f32.xlu0 %v3834_v43 }
 0xfee   : > { %v3835_v8 = vmul.f32 %v8595_v3, %v8595_v3 }
 0xff0   : > { %3842 = vadd.xlane.f32.xlu1 %v3835_v8 }
0x1075   : > { %v3837_v60 = vpop.xlane.xlu0 %3836 }
0x1076   : > { %v3844_v18 = vmul.f32 0.0078125, %v3837_v60  ;;  %v5517_v60 = vld [vmem:[%s8577_s21 + $0x30] sm:$0xff]  }
0x1077   : > { %v3839_v20 = vpop.xlane.xlu1 %3838 }
0x1078   : > { %v3848_v49 = vadd.f32 1e-05, %v3844_v18  ;;  %v3845_v2 = vmul.f32 0.0078125, %v3839_v20  ;;  %v5518_v18 = vld [vmem:[%s8577_s21 + $0xb0] sm:$0xff]   ;;  %v5519_v20 = vld [vmem:[%s8577_s21 + $0x78] sm:$0xff]  }
0x1079   : > { %v3841_v44 = vpop.xlane.xlu0 %3840 }
0x107a   : > { %5595 = vrsqrt.f32 %v3848_v49  ;;  %v3849_v28 = vadd.f32 1e-05, %v3845_v2  ;;  %v3846_v26 = vmul.f32 0.0078125, %v3841_v44  ;;  %v5520_v49 = vld [vmem:[%s8577_s21 + $0xf8] sm:$0xff]  }
0x107b   : > { %v5521_v2 = vld [vmem:[%s8577_s21 + $0x38] sm:$0xff]  }
0x107c   : > { %5597 = vrsqrt.f32 %v3849_v28  ;;  %v3850_v61 = vadd.f32 1e-05, %v3846_v26  ;;  %v5522_v44 = vld [vmem:[%s8577_s21 + $0xb8] sm:$0xff]   ;;  %v9241_v28 = vld [vmem:[#allocation43_spill] sm:$0xff] }
0x107d   : > { %v3843_v7 = vpop.xlane.xlu1 %3842  ;;  %v3923_v26 = vsub.s32 0, %v9241_v28 }
0x107e   : > { %5599 = vrsqrt.f32 %v3850_v61  ;;  %v3847_v54 = vmul.f32 0.0078125, %v3843_v7  ;;  %v3931_v61 = vsub.s32 2, %v9241_v28  ;;  %v3919_v7 = vld [vmem:[%s3918_s5] sm:$0xf] }
0x1080   : > { %v3851_v53 = vadd.f32 1e-05, %v3847_v54  ;;  %v3927_v54 = vsub.s32 1, %v9241_v28 }
0x1082   : > { %5601 = vrsqrt.f32 %v3851_v53  ;;  %v3935_v53 = vsub.s32 3, %v9241_v28 }
0x1084   : > { %v5596_v22 = vpop.eup %5595 }
0x1085   : > { %v3856_v41 = vmul.f32 %v5596_v22, %v8580_v11  ;;  %v3924_v22 = vrot.slane %v3919_v7, %v3923_v26 }
0x1086   : > { %v5598_v40 = vpop.eup %5597 }
0x1087   : > { %v3857_v33 = vmul.f32 %v5598_v40, %v8583_v12  ;;  %v3866_v38 = vmul.f32 %v4907_v27, %v3856_v41  ;;  %v8672_v41 = vrot.slane %v3919_v7, %v3927_v54  ;;  %v8674_v40 = vrot.slane %v3919_v7, %v3935_v53 }
0x1088   : > { %v5600_v48 = vpop.eup %5599 }
0x1089   : > { %v3867_v59 = vmul.f32 %v4907_v27, %v3857_v33  ;;  %v3876_v52 = vadd.f32 %v4908_v32, %v3866_v38  ;;  %v3858_v16 = vmul.f32 %v5600_v48, %v8588_v56 }
0x108b   : > { %v3877_v23 = vadd.f32 %v4908_v32, %v3867_v59  ;;  %v3868_v11 = vmul.f32 %v4907_v27, %v3858_v16 }
0x108c   : > { %v5602_v36 = vpop.eup %5601 }
0x108d   : > { %v3880_v0 = vpack.c.bf16 %v3877_v23, %v3876_v52  ;;  %v3859_v14 = vmul.f32 %v5602_v36, %v8595_v3  ;;  %v3878_v56 = vadd.f32 %v4908_v32, %v3868_v11  ;;  %v5491_v3 = vld [vmem:[%s8577_s21 + $0x40] sm:$0xff]  }
0x108e   : > { %5074 = vmatprep.subr.bf16.mxu1 %v5491_v3 }
0x108f   : > { %4134 = vmatmul.mubr.bf16.vlgmr.msra.gmra.mrb[52].mxu1 %v3880_v0  ;;  %4187 = vmatmul.mubr.bf16.vlgmr.msra.gmra.mrb[28].mxu0 %v3880_v0  ;;  %v3869_v12 = vmul.f32 %v4907_v27, %v3859_v14  ;;  %v8670_v27 = vrot.slane %v3919_v7, %v3931_v61 }
0x1090   : > { %4143 = vmatprep.mubr.bf16.mxu1 %v6186_v63  ;;  %4196 = vmatprep.mubr.bf16.mxu0 %v6186_v63  ;;  %v5506_v63 = vld [vmem:[%s8577_s21 + $0x98] sm:$0xff]  }
0x1091   : > { %v3879_v43 = vadd.f32 %v4908_v32, %v3869_v12  ;;  %5075 = vmatpush3.bf16.msra.mxu1 %v5493_v24  ;;  %5103 = vmatpush3.bf16.msra.mxu0 %v5494_v37 }
0x1092   : > { %5076 = vmatprep.subr.bf16.mxu1 %v5495_v5  ;;  %5104 = vmatprep.subr.bf16.mxu0 %v5496_v62 }
0x1093   : > { %v3881_v8 = vpack.c.bf16 %v3879_v43, %v3878_v56 }
0x1095   : > { %5077 = vmatpush3.bf16.msra.mxu1 %v5497_v50  ;;  %5105 = vmatpush3.bf16.msra.mxu0 %v5498_v31 }
0x1096   : > { %5078 = vmatprep.subr.bf16.mxu1 %v5499_v25  ;;  %5106 = vmatprep.subr.bf16.mxu0 %v5500_v35 }
0x1097   : > { %4144 = vmatmul.mubr.bf16.gmra.mrb[56].mxu1 %v3881_v8  ;;  %4197 = vmatmul.mubr.bf16.gmra.mrb[32].mxu0 %v3881_v8 }
0x1099   : > { %5079 = vmatpush3.bf16.msra.mxu1 %v5501_v1  ;;  %5107 = vmatpush3.bf16.msra.mxu0 %v5502_v58 }
0x109a   : > { %5080 = vmatprep.subr.bf16.mxu1 %v5503_v34  ;;  %5108 = vmatprep.subr.bf16.mxu0 %v5504_v6 }
0x109d   : > { %5081 = vmatpush3.bf16.msra.mxu1 %v5505_v55  ;;  %5109 = vmatpush3.bf16.msra.mxu0 %v5506_v63 }
0x109e   : > { %5082 = vmatprep.subr.bf16.mxu1 %v5507_v51  ;;  %5110 = vmatprep.subr.bf16.mxu0 %v5508_v30 }
0x10a1   : > { %5083 = vmatpush3.bf16.msra.mxu1 %v5509_v47  ;;  %5111 = vmatpush3.bf16.msra.mxu0 %v5510_v46 }
0x10a2   : > { %5084 = vmatprep.subr.bf16.mxu1 %v5511_v17  ;;  %5112 = vmatprep.subr.bf16.mxu0 %v5512_v10 }
0x10a5   : > { %5085 = vmatpush3.bf16.msra.mxu1 %v5513_v15  ;;  %5113 = vmatpush3.bf16.msra.mxu0 %v5514_v13 }
0x10a6   : > { %5086 = vmatprep.subr.bf16.mxu1 %v5515_v19  ;;  %5114 = vmatprep.subr.bf16.mxu0 %v5516_v9 }
0x10a9   : > { %5087 = vmatpush3.bf16.msra.mxu1 %v5517_v60  ;;  %5115 = vmatpush3.bf16.msra.mxu0 %v5518_v18 }
0x10aa   : > { %5088 = vmatprep.subr.bf16.mxu1 %v5519_v20  ;;  %5116 = vmatprep.subr.bf16.mxu0 %v5520_v49 }
0x10ad   : > { %5089 = vmatpush3.bf16.msra.mxu1 %v5521_v2  ;;  %5117 = vmatpush3.bf16.msra.mxu0 %v5522_v44 }
0x1162   : > { %v4135_v33 = vpop.f32.mrb[52].mxu1  ;;  %v4188_v38 = vpop.f32.mrb[28].mxu0 }
0x1163   : > { %v8676_v48 = vadd.f32 %v4135_v33, %v3924_v22  ;;  %v8679_v32 = vadd.f32 %v4188_v38, %v8670_v27  ;;  %v4137_v59 = vpop.f32.mrb[53].mxu1  ;;  %v4190_v52 = vpop.f32.mrb[29].mxu0 }
0x1164   : > { %v8682_v23 = vadd.f32 %v4137_v59, %v8672_v41  ;;  %v8685_v16 = vadd.f32 %v4190_v52, %v8674_v40  ;;  %v4139_v36 = vpop.f32.mrb[54].mxu1  ;;  %v4192_v0 = vpop.f32.mrb[30].mxu0 }
0x1165   : > { %v4944_v14 = vmul.f32 -1.702, %v8676_v48  ;;  %v4946_v11 = vmul.f32 -1.702, %v8679_v32  ;;  %v8689_v12 = vadd.f32 %v4139_v36, %v3924_v22  ;;  %v8692_v43 = vadd.f32 %v4192_v0, %v8670_v27  ;;  %v4141_v56 = vpop.f32.mrb[55].mxu1  ;;  %v4194_v8 = vpop.f32.mrb[31].mxu0 }
0x1166   : > { %v4945_v3 = vmul.f32 -1.702, %v8682_v23  ;;  %v4947_v42 = vmul.f32 -1.702, %v8685_v16  ;;  %v8697_v24 = vadd.f32 %v4141_v56, %v8672_v41  ;;  %v8700_v37 = vadd.f32 %v4194_v8, %v8674_v40 }
0x1167   : > { %v4239_v5 = vmul.f32 1.442695, %v4944_v14  ;;  %v4243_v62 = vmul.f32 1.442695, %v4946_v11  ;;  %v4948_v50 = vmul.f32 -1.702, %v8689_v12 }
0x1168   : > { %v4241_v31 = vmul.f32 1.442695, %v4945_v3  ;;  %v4245_v25 = vmul.f32 1.442695, %v4947_v42  ;;  %v4950_v35 = vmul.f32 -1.702, %v8692_v43 }
0x1169   : > { %5603 = vpow2.f32 %v4239_v5  ;;  %v4247_v1 = vmul.f32 1.442695, %v4948_v50  ;;  %v4949_v58 = vmul.f32 -1.702, %v8697_v24  ;;  %v4951_v34 = vmul.f32 -1.702, %v8700_v37 }
0x116a   : > { %5605 = vpow2.f32 %v4243_v62  ;;  %v4251_v6 = vmul.f32 1.442695, %v4950_v35  ;;  %v4145_v55 = vpop.f32.mrb[56].mxu1  ;;  %v4198_v63 = vpop.f32.mrb[32].mxu0 }
0x116b   : > { %5607 = vpow2.f32 %v4241_v31  ;;  %v4249_v51 = vmul.f32 1.442695, %v4949_v58  ;;  %v8706_v30 = vadd.f32 %v4145_v55, %v3924_v22  ;;  %v4147_v47 = vpop.f32.mrb[57].mxu1  ;;  %v4200_v46 = vpop.f32.mrb[33].mxu0  ;;  %v4253_v17 = vmul.f32 1.442695, %v4951_v34 }
0x116c   : > { %5609 = vpow2.f32 %v4245_v25  ;;  %v8709_v10 = vadd.f32 %v4198_v63, %v8670_v27  ;;  %v8712_v15 = vadd.f32 %v4147_v47, %v8672_v41  ;;  %v4149_v13 = vpop.f32.mrb[58].mxu1  ;;  %v4202_v19 = vpop.f32.mrb[34].mxu0  ;;  %v8721_v54 = vadd.f32 %v4200_v46, %v8674_v40 }
0x116d   : > { %5611 = vpow2.f32 %v4247_v1  ;;  %v4952_v9 = vmul.f32 -1.702, %v8706_v30  ;;  %v8715_v60 = vadd.f32 %v4149_v13, %v3924_v22  ;;  %v4151_v18 = vpop.f32.mrb[59].mxu1  ;;  %v4204_v20 = vpop.f32.mrb[35].mxu0  ;;  %v8725_v56 = vadd.f32 %v4202_v19, %v8670_v27 }
0x116e   : > { %5613 = vpow2.f32 %v4251_v6  ;;  %v4954_v49 = vmul.f32 -1.702, %v8709_v10  ;;  %v4953_v2 = vmul.f32 -1.702, %v8712_v15  ;;  %v4955_v0 = vmul.f32 -1.702, %v8721_v54 }
0x116f   : > { %5615 = vpow2.f32 %v4249_v51  ;;  %v4255_v44 = vmul.f32 1.442695, %v4952_v9  ;;  %v4956_v28 = vmul.f32 -1.702, %v8715_v60  ;;  %v8728_v42 = vadd.f32 %v4151_v18, %v8672_v41 }
0x1170   : > { %5617 = vpow2.f32 %v4253_v17  ;;  %v4259_v26 = vmul.f32 1.442695, %v4954_v49  ;;  %v4257_v61 = vmul.f32 1.442695, %v4953_v2  ;;  %v8731_v50 = vadd.f32 %v4204_v20, %v8674_v40 }
0x1171   : > { %5619 = vpow2.f32 %v4255_v44  ;;  %v4263_v7 = vmul.f32 1.442695, %v4956_v28  ;;  %v4261_v35 = vmul.f32 1.442695, %v4955_v0  ;;  %v4958_v58 = vmul.f32 -1.702, %v8725_v56 }
0x1172   : > { %5621 = vpow2.f32 %v4259_v26  ;;  %v4957_v41 = vmul.f32 -1.702, %v8728_v42  ;;  %v4959_v55 = vmul.f32 -1.702, %v8731_v50 }
0x1173   : > { %v5604_v53 = vpop.eup %5603  ;;  %5623 = vpow2.f32 %v4257_v61  ;;  %v4267_v51 = vmul.f32 1.442695, %v4958_v58 }
0x1174   : > { %v5606_v22 = vpop.eup %5605  ;;  %v4271_v33 = vadd.f32 1.0, %v5604_v53  ;;  %5625 = vpow2.f32 %v4263_v7  ;;  %v4265_v17 = vmul.f32 1.442695, %v4957_v41  ;;  %v4269_v19 = vmul.f32 1.442695, %v4959_v55 }
0x1175   : > { %v5608_v38 = vpop.eup %5607  ;;  %v4273_v59 = vadd.f32 1.0, %v5606_v22 }
0x1176   : > { %v5610_v52 = vpop.eup %5609  ;;  %5627 = vrcp.f32 %v4271_v33  ;;  %v4272_v36 = vadd.f32 1.0, %v5608_v38 }
0x1177   : > { %v5612_v14 = vpop.eup %5611  ;;  %5629 = vrcp.f32 %v4273_v59  ;;  %v4274_v11 = vadd.f32 1.0, %v5610_v52 }
0x1178   : > { %v5614_v8 = vpop.eup %5613  ;;  %5631 = vrcp.f32 %v4272_v36  ;;  %v4275_v3 = vadd.f32 1.0, %v5612_v14 }
0x1179   : > { %v5616_v5 = vpop.eup %5615  ;;  %5633 = vrcp.f32 %v4274_v11  ;;  %v4277_v62 = vadd.f32 1.0, %v5614_v8 }
0x117a   : > { %v5618_v31 = vpop.eup %5617  ;;  %5635 = vrcp.f32 %v4275_v3  ;;  %v4276_v25 = vadd.f32 1.0, %v5616_v5 }
0x117b   : > { %v5620_v1 = vpop.eup %5619  ;;  %5637 = vrcp.f32 %v4277_v62  ;;  %v4278_v27 = vadd.f32 1.0, %v5618_v31 }
0x117c   : > { %5639 = vrcp.f32 %v4276_v25  ;;  %v4279_v34 = vadd.f32 1.0, %v5620_v1  ;;  %v5622_v6 = vpop.eup %5621 }
0x117d   : > { %5641 = vrcp.f32 %v4278_v27  ;;  %v5624_v63 = vpop.eup %5623  ;;  %v4281_v36 = vadd.f32 1.0, %v5622_v6 }
0x117e   : > { %5643 = vpow2.f32 %v4261_v35  ;;  %v5626_v40 = vpop.eup %5625  ;;  %v4280_v14 = vadd.f32 1.0, %v5624_v63 }
0x117f   : > { %5645 = vrcp.f32 %v4279_v34  ;;  %v4283_v46 = vadd.f32 1.0, %v5626_v40 }
0x1180   : > { %v5628_v47 = vpop.eup %5627 }
0x1181   : > { %v5630_v13 = vpop.eup %5629  ;;  %5647 = vrcp.f32 %v4283_v46  ;;  %v4319_v2 = vmul.f32 %v5628_v47, %v8676_v48 }
0x1182   : > { %v5632_v9 = vpop.eup %5631  ;;  %5649 = vpow2.f32 %v4267_v51  ;;  %v4321_v26 = vmul.f32 %v5630_v13, %v8679_v32 }
0x1183   : > { %v5634_v18 = vpop.eup %5633  ;;  %5651 = vpow2.f32 %v4265_v17  ;;  %v4320_v53 = vmul.f32 %v5632_v9, %v8682_v23 }
0x1184   : > { %v5636_v20 = vpop.eup %5635  ;;  %5653 = vpow2.f32 %v4269_v19  ;;  %v4322_v59 = vmul.f32 %v5634_v18, %v8685_v16 }
0x1185   : > { %v5638_v49 = vpop.eup %5637  ;;  %v4323_v44 = vmul.f32 %v5636_v20, %v8689_v12  ;;  %5655 = vrcp.f32 %v4281_v36 }
0x1186   : > { %v5640_v28 = vpop.eup %5639  ;;  %v4325_v61 = vmul.f32 %v5638_v49, %v8692_v43  ;;  %5657 = vrcp.f32 %v4280_v14 }
0x1187   : > { %v5642_v7 = vpop.eup %5641  ;;  %v4335_v22 = vpack.c.bf16 %v4323_v44, %v4319_v2  ;;  %v4324_v33 = vmul.f32 %v5640_v28, %v8697_v24 }
0x1188   : > { %v5644_v38 = vpop.eup %5643  ;;  %v4337_v52 = vpack.c.bf16 %v4325_v61, %v4321_v26  ;;  %v4326_v48 = vmul.f32 %v5642_v7, %v8700_v37 }
0x1189   : > { %v4336_v12 = vpack.c.bf16 %v4324_v33, %v4320_v53  ;;  %v5646_v0 = vpop.eup %5645  ;;  %v4282_v32 = vadd.f32 1.0, %v5644_v38 }
0x118a   : > { %v4338_v11 = vpack.c.bf16 %v4326_v48, %v4322_v59  ;;  %v4327_v8 = vmul.f32 %v5646_v0, %v8706_v30 }
0x118b   : > { %4641 = vmatprep.mubr.bf16.mxu1 %v4336_v12  ;;  %v5648_v43 = vpop.eup %5647  ;;  %5659 = vrcp.f32 %v4282_v32 }
0x118c   : > { %4690 = vmatprep.mubr.bf16.mxu0 %v4338_v11  ;;  %4642 = vmatmul.mubr.bf16.vlgmr.msra.gmra.mrb[60].mxu1 %v4335_v22  ;;  %v5650_v23 = vpop.eup %5649  ;;  %v4331_v24 = vmul.f32 %v5648_v43, %v8715_v60 }
0x118d   : > { %4691 = vmatmul.mubr.bf16.vlgmr.msra.gmra.mrb[36].mxu0 %v4337_v52  ;;  %v5652_v16 = vpop.eup %5651  ;;  %v4285_v37 = vadd.f32 1.0, %v5650_v23 }
0x118e   : > { %v5654_v3 = vpop.eup %5653  ;;  %v4284_v5 = vadd.f32 1.0, %v5652_v16  ;;  %v4339_v62 = vpack.c.bf16 %v4331_v24, %v4327_v8 }
0x118f   : > { %5661 = vrcp.f32 %v4285_v37  ;;  %v4286_v31 = vadd.f32 1.0, %v5654_v3  ;;  %v5656_v25 = vpop.eup %5655 }
0x1190   : > { %5663 = vrcp.f32 %v4284_v5  ;;  %v5658_v35 = vpop.eup %5657  ;;  %v4329_v58 = vmul.f32 %v5656_v25, %v8709_v10 }
0x1191   : > { %5665 = vrcp.f32 %v4286_v31  ;;  %v4328_v41 = vmul.f32 %v5658_v35, %v8712_v15 }
0x1195   : > { %v5660_v1 = vpop.eup %5659 }
0x1196   : > { %v4330_v55 = vmul.f32 %v5660_v1, %v8721_v54 }
0x1199   : > { %v5662_v27 = vpop.eup %5661 }
0x119a   : > { %v5664_v30 = vpop.eup %5663  ;;  %v4333_v60 = vmul.f32 %v5662_v27, %v8725_v56  ;;  %v4961_v56 = vld [vmem:[%s4409_s29] ss:$0 sm:$0xff] }
0x119b   : > { %v5666_v34 = vpop.eup %5665  ;;  %v4332_v6 = vmul.f32 %v5664_v30, %v8728_v42 }
0x119c   : > { %v4334_v63 = vmul.f32 %v5666_v34, %v8731_v50  ;;  %v4341_v40 = vpack.c.bf16 %v4333_v60, %v4329_v58 }
0x119d   : > { %v4340_v51 = vpack.c.bf16 %v4332_v6, %v4328_v41 }
0x119e   : > { %v4342_v47 = vpack.c.bf16 %v4334_v63, %v4330_v55 }
0x119f   : > { %4649 = vmatprep.mubr.bf16.mxu1 %v4340_v51 }
0x11a0   : > { %4698 = vmatprep.mubr.bf16.mxu0 %v4342_v47  ;;  %4650 = vmatmul.mubr.bf16.gmra.mrb[64].mxu1 %v4339_v62 }
0x11a1   : > { %4699 = vmatmul.mubr.bf16.gmra.mrb[40].mxu0 %v4341_v40 }
0x125f   : > { %v5090_v10 = vpop.f32.mrb[60].mxu1 }
0x1260   : > { %v5118_v46 = vpop.f32.mrb[36].mxu0  ;;  %v5091_v17 = vpop.f32.mrb[61].mxu1 }
0x1261   : > { %v5092_v13 = vadd.f32 %v5091_v17, %v5090_v10  ;;  %v5119_v15 = vpop.f32.mrb[37].mxu0  ;;  %v5093_v19 = vpop.f32.mrb[62].mxu1 }
0x1262   : > { %v5120_v42 = vadd.f32 %v5119_v15, %v5118_v46  ;;  %v5121_v9 = vpop.f32.mrb[38].mxu0  ;;  %v5094_v54 = vpop.f32.mrb[63].mxu1 }
0x1263   : > { %v4644_v18 = vadd.f32 %v5092_v13, %v4961_v56  ;;  %v5095_v50 = vadd.f32 %v5094_v54, %v5093_v19  ;;  %v5122_v20 = vpop.f32.mrb[39].mxu0  ;;  %v4995_v13 = vld [vmem:[#allocation29] ss:$0 sm:$0xff] (%p319_p4) }
0x1264   : > { %v5123_v49 = vadd.f32 %v5122_v20, %v5121_v9 }
0x1265   : > { %v4693_v2 = vadd.f32 %v5120_v42, %v4644_v18  ;;  %v4647_v44 = vadd.f32 %v5095_v50, %v4961_v56 }
0x1267   : > { %v4707_v28 = vadd.f32 %v4693_v2, %v8551_v39   ;;  %v4696_v26 = vadd.f32 %v5123_v49, %v4647_v44 }
0x1269   : > { %v4708_v61 = vadd.f32 %v4696_v26, %v8554_v45   ;;  %v9245_v6 = vmov %v4707_v28  ;;  %4713 = vadd.xlane.f32.xlu0 (%p319_p4), %v4707_v28 }
0x126d   :  { %4715 = vadd.xlane.f32.xlu0 (%p319_p4), %v4708_v61 }
0x1273   : > { %v5096_v7 = vpop.f32.mrb[64].mxu1 }
0x1274   : > { %v5124_v53 = vpop.f32.mrb[40].mxu0  ;;  %v5097_v22 = vpop.f32.mrb[65].mxu1 }
0x1275   : > { %v5098_v33 = vadd.f32 %v5097_v22, %v5096_v7  ;;  %v5125_v38 = vpop.f32.mrb[41].mxu0  ;;  %v5099_v59 = vpop.f32.mrb[66].mxu1  ;;  %v9244_v7 = vmov %v4708_v61 }
0x1276   : > { %v5126_v52 = vadd.f32 %v5125_v38, %v5124_v53  ;;  %v5127_v48 = vpop.f32.mrb[42].mxu0  ;;  %v5100_v36 = vpop.f32.mrb[67].mxu1 }
0x1277   : > { %v4652_v12 = vadd.f32 %v5098_v33, %v4961_v56  ;;  %v5101_v0 = vadd.f32 %v5100_v36, %v5099_v59  ;;  %v5128_v14 = vpop.f32.mrb[43].mxu0 }
0x1278   : > { %v5129_v11 = vadd.f32 %v5128_v14, %v5127_v48 }
0x1279   : > { %v4701_v32 = vadd.f32 %v5126_v52, %v4652_v12  ;;  %v4655_v43 = vadd.f32 %v5101_v0, %v4961_v56  ;;  %321 = sbr.rel (!%p319_p4) target bundleno = 359 (0x167), region = 191  ;;  %v4994_v56 = vld [vmem:[#allocation28] ss:$0 sm:$0xff] (%p319_p4) }
0x127b   : > { %v4709_v39 = vadd.f32 %v4701_v32, %v8558_v4   ;;  %v4704_v23 = vadd.f32 %v5129_v11, %v4655_v43 }
0x127d   : > { %v4710_v45 = vadd.f32 %v4704_v23, %v8563_v57   ;;  %v9243_v8 = vmov %v4709_v39  ;;  %4717 = vadd.xlane.f32.xlu1 (%p319_p4), %v4709_v39 }
0x127f   : > { %v9242_v10 = vmov %v4710_v45 }
0x1281   :  { %4719 = vadd.xlane.f32.xlu1 %v4710_v45 }
0x12f6   :  { %v4714_v4 = vpop.xlane.xlu0 %4713 }
0x12f7   :  { %v4722_v24 = vmul.f32 0.0078125, %v4714_v4 }
0x12f9   :  { %v4726_v37 = vsub.f32 %v4707_v28, %v4722_v24 }
0x12fa   :  { %v4716_v5 = vpop.xlane.xlu0 %4715 }
0x12fb   :  { %v4723_v31 = vmul.f32 0.0078125, %v4716_v5  ;;  %v4730_v25 = vmul.f32 %v4726_v37, %v4726_v37 }
0x12fd   :  { %v4727_v1 = vsub.f32 %v4708_v61, %v4723_v31  ;;  %4734 = vadd.xlane.f32.xlu0 %v4730_v25 }
0x12ff   :  { %v4731_v58 = vmul.f32 %v4727_v1, %v4727_v1 }
0x1301   :  { %4736 = vadd.xlane.f32.xlu1 %v4731_v58 }
0x130a   :  { %v4718_v57 = vpop.xlane.xlu1 %4717 }
0x130b   :  { %v4724_v16 = vmul.f32 0.0078125, %v4718_v57 }
0x130d   :  { %v4728_v3 = vsub.f32 %v4709_v39, %v4724_v16 }
0x130e   :  { %v4720_v62 = vpop.xlane.xlu1 %4719 }
0x130f   :  { %v4725_v35 = vmul.f32 0.0078125, %v4720_v62  ;;  %v4732_v30 = vmul.f32 %v4728_v3, %v4728_v3 }
0x1311   :  { %v4729_v27 = vsub.f32 %v4710_v45, %v4725_v35  ;;  %4738 = vadd.xlane.f32.xlu0 %v4732_v30 }
0x1313   :  { %v4733_v21 = vmul.f32 %v4729_v27, %v4729_v27 }
0x1315   :  { %4740 = vadd.xlane.f32.xlu1 %v4733_v21 }
0x138a   :  { %v4735_v29 = vpop.xlane.xlu0 %4734 }
0x138b   :  { %v4742_v8 = vmul.f32 0.0078125, %v4735_v29 }
0x138d   :  { %v4746_v60 = vadd.f32 1e-05, %v4742_v8 }
0x138e   :  { %v4737_v34 = vpop.xlane.xlu1 %4736 }
0x138f   :  { %5667 = vrsqrt.f32 %v4746_v60  ;;  %v4743_v6 = vmul.f32 0.0078125, %v4737_v34 }
0x1391   :  { %v4747_v63 = vadd.f32 1e-05, %v4743_v6 }
0x1393   :  { %5669 = vrsqrt.f32 %v4747_v63 }
0x1399   :  { %v5668_v46 = vpop.eup %5667 }
0x139a   :  { %v4754_v17 = vmul.f32 %v5668_v46, %v4726_v37 }
0x139c   :  { %v4764_v15 = vmul.f32 %v4994_v56, %v4754_v17 }
0x139d   :  { %v5670_v19 = vpop.eup %5669 }
0x139e   :  { %v4739_v41 = vpop.xlane.xlu0 %4738  ;;  %v4755_v9 = vmul.f32 %v5670_v19, %v4727_v1  ;;  %v4774_v54 = vadd.f32 %v4995_v13, %v4764_v15 }
0x139f   :  { %v4744_v55 = vmul.f32 0.0078125, %v4739_v41 }
0x13a0   :  { %v4765_v50 = vmul.f32 %v4994_v56, %v4755_v9  ;;  %4778 = vst [vmem:[#allocation31] sm:$0xff] %v4774_v54 }
0x13a1   :  { %v4748_v40 = vadd.f32 1e-05, %v4744_v55 }
0x13a2   :  { %v4741_v51 = vpop.xlane.xlu1 %4740  ;;  %v4775_v44 = vadd.f32 %v4995_v13, %v4765_v50 }
0x13a3   :  { %v4745_v47 = vmul.f32 0.0078125, %v4741_v51  ;;  %5671 = vrsqrt.f32 %v4748_v40 }
0x13a4   :  { %4779 = vst [vmem:[#allocation31 + $0x8] sm:$0xff] %v4775_v44 }
0x13a5   :  { %v4749_v10 = vadd.f32 1e-05, %v4745_v47 }
0x13a7   :  { %5673 = vrsqrt.f32 %v4749_v10 }
0x13ad   :  { %v5672_v42 = vpop.eup %5671 }
0x13ae   :  { %v4756_v18 = vmul.f32 %v5672_v42, %v4728_v3 }
0x13b0   :  { %v4766_v49 = vmul.f32 %v4994_v56, %v4756_v18 }
0x13b1   :  { %v5674_v20 = vpop.eup %5673 }
0x13b2   :  { %v4757_v2 = vmul.f32 %v5674_v20, %v4729_v27  ;;  %v4776_v28 = vadd.f32 %v4995_v13, %v4766_v49 }
0x13b4   :  { %v4767_v26 = vmul.f32 %v4994_v56, %v4757_v2  ;;  %4780 = vst [vmem:[#allocation31 + $0x10] sm:$0xff] %v4776_v28 }
0x13b6   :  { %v4777_v61 = vadd.f32 %v4995_v13, %v4767_v26 }
0x13b8   :  { %4781 = vst [vmem:[#allocation31 + $0x18] sm:$0xff] %v4777_v61 }
0x13b9   :  { %6082 = shalt.err (!%p6079_p9)
}
0x13ba   :  { %s9246_s20 = sld [smem:[#allocation118_spill]] }
0x13c0   :  { %s6083_s16 = scalar_lea.hbm %s9246_s20, 512 }
0x13c1   :  { %p6084_p10 = scmp.ne.s32.totalorder %s9246_s20, %s6083_s16  ;;  %p6087_p11 = scmp.lt.u32.totalorder %s6083_s16, %s9246_s20 }
0x13c3   :  { %p6089_p12 = pnand %p6087_p11, %p6084_p10 }
0x13c5   :  { %6092 = shalt.err (!%p6089_p12)
}
0x13c6   :  { %s6188_s24 = smov 128   ;;  %s6189_s14 = smov 8  }
0x13c7   :  { %4793 = dma.vmem_to_hbm [thread:$0]  %s4788_s9, 512, %s9246_s20, [#allocation4], %s6188_s24, %s6188_s24, %s6189_s14  }
0x13c8   :  { %6133 = dma.done.wait [#allocation4], 512  }
0x13c9   :  { %6134 = vsyncadd [#allocation4], 4294966784 }
0x13ca   :  { %4797 = vsyncpa [#allocation3], 1 }
0x13cb   :  { %4798 = vsyncpa [#allocation6], 1 }
0x13cc   :  { %4799 = vsyncpa [#allocation9], 1 }
0x13cd   :  { %4800 = vsyncpa [#allocation12], 1 }
0x13ce   :  { %4801 = vsyncpa [#allocation15], 1 }
0x13cf   :  { %4802 = vsyncpa [#allocation18], 1 }
0x13d0   :  { %4803 = vsyncpa [#allocation21], 1 }
0x13d1   :  { %4804 = vsyncpa [#allocation24], 1 }
0x13d2   :  { %4805 = vsyncpa [#allocation27], 1 }
0x13d3   :  { %4806 = vsyncpa [#allocation30], 1 }
0x13d4   :  { %4807 = vsyncpa [#allocation4], 1 }

</bundles_post_ra>
